<compile_context>
chip_gen: v6e
topology: v6e:2x2x1
jax: 0.10.0
libtpu: 0.0.40
codegen_flags: <defaults>
</compile_context>

<pallas_src>
import functools

import numpy as np

import jax
import jax.numpy as jnp
from jax.experimental import pallas as pl
from jax.experimental.pallas import tpu as pltpu

EPS = 1e-5


# ---------------------------------------------------------------------------
# Fused forward kernel (built per static `col_first` layer flags).
# ---------------------------------------------------------------------------
def _make_kernel(col_first):
    def kernel(x_ref, *refs):
        out_ref = refs[-1]
        it = iter(refs[:-1])
        cf_it = iter(col_first)

        def conv_bn_relu(X):
            # X: (Cin*Hi, Bt*Wi) -> (Cout*Ho, Bt*Wo)
            L_ref, C_ref, b_ref = next(it), next(it), next(it)
            cf = next(cf_it)                      # static: matmul association
            acc = b_ref[...]                      # (Cout*Ho, 1) broadcasts on lanes
            for k in range(3):                    # kw = 0, 1, 2
                if cf:                            # L @ (X @ C)
                    t = jnp.dot(X, C_ref[k], preferred_element_type=jnp.float32)
                    acc = acc + jnp.dot(L_ref[k], t,
                                        preferred_element_type=jnp.float32)
                else:                             # (L @ X) @ C
                    t = jnp.dot(L_ref[k], X, preferred_element_type=jnp.float32)
                    acc = acc + jnp.dot(t, C_ref[k],
                                        preferred_element_type=jnp.float32)
            return jnp.maximum(acc, 0.0)

        def maxpool2x2(X):
            # X: (C*H, Bt*W) -> (C*(H//2), Bt*(W//2))
            P_ref, Q_ref = next(it), next(it)
            rows = jnp.maximum(
                jnp.dot(P_ref[0], X, preferred_element_type=jnp.float32),
                jnp.dot(P_ref[1], X, preferred_element_type=jnp.float32))
            return jnp.maximum(
                jnp.dot(rows, Q_ref[0], preferred_element_type=jnp.float32),
                jnp.dot(rows, Q_ref[1], preferred_element_type=jnp.float32))

        X = x_ref[0]                 # (1*32, Bt*32)   Cin = 1
        X = conv_bn_relu(X)          # conv1+bn1+relu -> (8*32,  Bt*32)
        X = conv_bn_relu(X)          # conv3+bn3+relu -> (8*16,  Bt*16)
        X = maxpool2x2(X)            # pool1          -> (8*8,   Bt*8)
        # dropout1: identity in eval mode
        X = conv_bn_relu(X)          # conv4+bn4+relu -> (16*8,  Bt*8)
        X = conv_bn_relu(X)          # conv6+bn6+relu -> (16*4,  Bt*4)
        X = maxpool2x2(X)            # pool2          -> (16*2,  Bt*2)
        # dropout2: identity in eval mode
        X = conv_bn_relu(X)          # conv7+bn7+relu -> (32*2,  Bt*2)
        X = conv_bn_relu(X)          # conv9+relu     -> (32*2,  Bt*2)
        feat = maxpool2x2(X)         # pool3          -> (32,    Bt)
        # bn9 is folded into the fc weights; dropout3: identity in eval mode

        w_ref, bfc_ref = next(it), next(it)
        # logits[:, b] for image b of this tile: (10, 32) @ (32, Bt) + (10, 1)
        logits = jnp.dot(w_ref[...], feat,
                         preferred_element_type=jnp.float32) + bfc_ref[...]
        m = jnp.max(logits, axis=0, keepdims=True)                   # (1, Bt)
        z = logits - m
        lse = jnp.log(jnp.sum(jnp.exp(z), axis=0, keepdims=True))
        out_ref[0] = z - lse         # (10, Bt) log-probabilities

    return kernel


# ---------------------------------------------------------------------------
# Host-side construction of the conv / pool selection matrices.
# ---------------------------------------------------------------------------
def _build_conv_mats(w, scale, bias_eff, Hi, Wi, stride):
    """w: (Cout, Cin, 3, 3). Returns L (3, Cout*Ho, Cin*Hi), C (3, Wi, Wo),
    bias (Cout*Ho, 1).  Padding=1 and `stride` are encoded in L / C."""
    Cout, Cin = w.shape[0], w.shape[1]
    Ho, Wo = Hi // stride, Wi // stride
    sw = (scale[:, None, None, None] * w).astype(np.float32)   # fold BN scale
    L = np.zeros((3, Cout * Ho, Cin * Hi), np.float32)
    Cm = np.zeros((3, Wi, Wo), np.float32)
    for kw in range(3):
        for kh in range(3):
            for ho in range(Ho):
                hi = stride * ho + kh - 1
                if 0 <= hi < Hi:
                    L[kw, ho::Ho, hi::Hi] += sw[:, :, kh, kw]
        for wo in range(Wo):
            wi = stride * wo + kw - 1
            if 0 <= wi < Wi:
                Cm[kw, wi, wo] = 1.0
    b2d = np.repeat(bias_eff.astype(np.float32), Ho)[:, None]  # (Cout*Ho, 1)
    return L, Cm, b2d


def _build_pool_mats(C, H, W):
    """2x2/2 max-pool selection matrices for a (C*H, W) activation."""
    Ho, Wo = H // 2, W // 2
    P = np.zeros((2, C * Ho, C * H), np.float32)
    Q = np.zeros((2, W, Wo), np.float32)
    for c in range(C):
        for j in range(Ho):
            P[0, c * Ho + j, c * H + 2 * j] = 1.0
            P[1, c * Ho + j, c * H + 2 * j + 1] = 1.0
    for j in range(Wo):
        Q[0, 2 * j, j] = 1.0
        Q[1, 2 * j + 1, j] = 1.0
    return P, Q


def _bn_fold(gamma, beta, running_mean, running_var):
    scale = gamma / np.sqrt(running_var + EPS)
    shift = beta - running_mean * scale
    return scale, shift


def init_params(key, batch_tile=4):
    """Synthetic parameters with the PyTorch Net's shapes, precomputed into the
    flat operand list consumed by the fused kernel (in consumption order).
    `batch_tile` images are packed along the lane axis per grid step."""
    Bt = int(batch_tile)
    eyeB = np.eye(Bt, dtype=np.float32)
    conv_cfg = [
        # name, Cin, Cout, stride, Hi, Wi, pool_after
        ("c1", 1, 8, 1, 32, 32, False),
        ("c3", 8, 8, 2, 32, 32, True),
        ("c4", 8, 16, 1, 8, 8, False),
        ("c6", 16, 16, 2, 8, 8, True),
        ("c7", 16, 32, 1, 2, 2, False),
        ("c9", 32, 32, 1, 2, 2, True),
    ]
    keys = jax.random.split(key, len(conv_cfg) + 2)
    weights, col_first, raw_convs = [], [], []
    flops = 0
    s9 = d9 = None

    for (name, cin, cout, stride, Hi, Wi, pool_after), k in zip(
            conv_cfg, keys[:len(conv_cfg)]):
        k1, k2, k3, k4 = jax.random.split(k, 4)
        w = np.asarray(jax.random.normal(k1, (cout, cin, 3, 3), jnp.float32)) / (3.0 * cin ** 0.5)
        b = 0.01 * np.asarray(jax.random.normal(k2, (cout,), jnp.float32))
        gamma = 1.0 + 0.1 * np.asarray(jax.random.normal(k3, (cout,), jnp.float32))
        beta = 0.1 * np.asarray(jax.random.normal(k4, (cout,), jnp.float32))
        rm = np.zeros((cout,), np.float32)   # eval-mode running stats of a fresh net
        rv = np.ones((cout,), np.float32)    # TODO(synk): use real running stats for a trained checkpoint
        raw_convs.append(dict(name=name, w=w, b=b, gamma=gamma, beta=beta,
                              rm=rm, rv=rv, stride=stride))
        if name == "c9":
            # conv9 -> relu has no BN in between; its BN record plays the role
            # of bn9 (applied after pool3) and is folded into the fc layer.
            scale, bias_eff = np.ones((cout,), np.float32), b
            s9, d9 = _bn_fold(gamma, beta, rm, rv)
        else:
            s, d = _bn_fold(gamma, beta, rm, rv)
            scale, bias_eff = s, s * b + d

        L, Cm, b2d = _build_conv_mats(w, scale, bias_eff, Hi, Wi, stride)
        Ho, Wo = Hi // stride, Wi // stride
        # Block-diagonal column operator: batch packing along lanes.
        Cbd = np.stack([np.kron(eyeB, Cm[kk]) for kk in range(3)]).astype(np.float32)
        weights += [L, Cbd, b2d]

        # Pick the cheaper matmul association order for this layer.
        m_, k_, n_, p_ = cout * Ho, cin * Hi, Bt * Wi, Bt * Wo
        cost_row_first = m_ * k_ * n_ + m_ * n_ * p_      # (L @ X) @ C
        cost_col_first = k_ * n_ * p_ + m_ * k_ * p_      # L @ (X @ C)
        col_first.append(bool(cost_col_first < cost_row_first))
        flops += 3 * 2 * min(cost_row_first, cost_col_first)

        if pool_after:
            Hp, Wp = Ho // 2, Wo // 2
            P, Q = _build_pool_mats(cout, Ho, Wo)
            Qbd = np.stack([np.kron(eyeB, Q[kk]) for kk in range(2)]).astype(np.float32)
            weights += [P, Qbd]
            flops += 2 * 2 * (cout * Hp) * (cout * Ho) * (Bt * Wo)
            flops += 2 * 2 * (cout * Hp) * (Bt * Wo) * (Bt * Wp)

    # fc: Linear(32, 10); fold bn9 (applied right before flatten) into it.
    k_fcw, k_fcb = keys[-2], keys[-1]
    w_fc = np.asarray(jax.random.normal(k_fcw, (10, 32), jnp.float32)) / (32.0 ** 0.5)
    b_fc = 0.01 * np.asarray(jax.random.normal(k_fcb, (10,), jnp.float32))
    w_eff = (w_fc * s9[None, :]).astype(np.float32)          # (10, 32)
    b_eff = (b_fc + w_fc @ d9).astype(np.float32)[:, None]   # (10, 1)
    weights += [w_eff, b_eff]
    flops += 2 * 10 * 32 * Bt

    weights = [jnp.asarray(a, dtype=jnp.float32) for a in weights]
    weight_bytes = sum(int(np.prod(a.shape)) * 4 for a in weights)
    return {"weights": weights,
            "col_first": col_first,
            "batch_tile": Bt,
            "flops_per_step": int(flops),
            "weight_bytes": int(weight_bytes),
            "raw": {"convs": raw_convs, "w_fc": w_fc, "b_fc": b_fc}}


# ---------------------------------------------------------------------------
# Forward pass wrapper: one fused pallas_call for the whole network.
# ---------------------------------------------------------------------------
def net_forward(x_nchw, params):
    weights = params["weights"]
    Bt = params["batch_tile"]
    B = x_nchw.shape[0]
    assert x_nchw.shape[1:] == (1, 32, 32), x_nchw.shape

    B_pad = ((B + Bt - 1) // Bt) * Bt
    x = x_nchw.reshape(B, 32, 32).astype(jnp.float32)        # Cin == 1
    if B_pad != B:
        x = jnp.concatenate(
            [x, jnp.zeros((B_pad - B, 32, 32), jnp.float32)], axis=0)
    nsteps = B_pad // Bt
    # Pack Bt images along lanes: column index = b_local*32 + w.
    xp = x.reshape(nsteps, Bt, 32, 32).transpose(0, 2, 1, 3).reshape(
        nsteps, 32, Bt * 32)

    in_specs = [pl.BlockSpec((1, 32, Bt * 32), lambda g: (g, 0, 0))]
    for wa in weights:
        in_specs.append(pl.BlockSpec(wa.shape, lambda g, _n=wa.ndim: (0,) * _n))

    cost = pl.CostEstimate(
        flops=int(nsteps * params["flops_per_step"]),
        transcendentals=int(nsteps * 11 * Bt),
        bytes_accessed=int(xp.size * 4 + params["weight_bytes"]
                           + nsteps * 10 * Bt * 4),
    )

    out = pl.pallas_call(
        _make_kernel(tuple(params["col_first"])),
        out_shape=jax.ShapeDtypeStruct((nsteps, 10, Bt), jnp.float32),
        grid=(nsteps,),
        in_specs=in_specs,
        out_specs=pl.BlockSpec((1, 10, Bt), lambda g: (g, 0, 0)),
        compiler_params=pltpu.CompilerParams(
            dimension_semantics=("parallel",)),
        cost_estimate=cost,
    )(xp, *weights)
    # (nsteps, 10, Bt) -> (B, 10)
    return jnp.transpose(out, (0, 2, 1)).reshape(B_pad, 10)[:B]


# ---------------------------------------------------------------------------
# Pure-JAX/XLA reference (same eval-mode semantics) for verification only.
# ---------------------------------------------------------------------------
def net_forward_reference(x_nchw, params):
    raw = params["raw"]
    hp = jax.lax.Precision.HIGHEST
    x = x_nchw.astype(jnp.float32)

    def conv(x, layer, stride):
        y = jax.lax.conv_general_dilated(
            x, jnp.asarray(layer["w"]), (stride, stride), ((1, 1), (1, 1)),
            dimension_numbers=("NCHW", "OIHW", "NCHW"), precision=hp)
        return y + jnp.asarray(layer["b"])[None, :, None, None]

    def bn(x, layer):
        g = jnp.asarray(layer["gamma"])[None, :, None, None]
        be = jnp.asarray(layer["beta"])[None, :, None, None]
        rm = jnp.asarray(layer["rm"])[None, :, None, None]
        rv = jnp.asarray(layer["rv"])[None, :, None, None]
        return g * (x - rm) / jnp.sqrt(rv + EPS) + be

    def pool(x):
        return jax.lax.reduce_window(x, -jnp.inf, jax.lax.max,
                                     (1, 1, 2, 2), (1, 1, 2, 2), "VALID")

    c1, c3, c4, c6, c7, c9 = raw["convs"]
    x = jax.nn.relu(bn(conv(x, c1, 1), c1))
    x = pool(jax.nn.relu(bn(conv(x, c3, 2), c3)))   # dropout1: identity (eval)
    x = jax.nn.relu(bn(conv(x, c4, 1), c4))
    x = pool(jax.nn.relu(bn(conv(x, c6, 2), c6)))   # dropout2: identity (eval)
    x = jax.nn.relu(bn(conv(x, c7, 1), c7))
    x = jax.nn.relu(conv(x, c9, 1))
    x = bn(pool(x), c9)          # c9's BN record plays the role of bn9
    feat = x.reshape(x.shape[0], -1)                # dropout3: identity (eval)
    logits = jnp.dot(feat, jnp.asarray(raw["w_fc"]).T, precision=hp) \
        + jnp.asarray(raw["b_fc"])
    return jax.nn.log_softmax(logits, axis=-1)


if __name__ == "__main__":
    key = jax.random.PRNGKey(0)
    kx, kp = jax.random.split(key)
    # Spatial size must be 32x32 so that flatten yields 32 features (as in Net).
    x = jax.random.normal(kx, (2, 1, 32, 32), jnp.float32)   # NCHW like PyTorch
    params = init_params(kp, batch_tile=2)

    fwd = jax.jit(functools.partial(net_forward, params=params))
    out = jax.block_until_ready(fwd(x))
    assert out.shape == (2, 10), out.shape

    # log-softmax rows must exponentiate to probability distributions.
    row_sums = jnp.exp(out).sum(axis=1)
    assert bool(jnp.all(jnp.abs(row_sums - 1.0) < 1e-4)), row_sums

    # Compare against the pure-XLA reference.  Loose tolerance absorbs any
    # MXU f32-pass vs XLA-conv precision differences; wiring errors would be O(1).
    ref = jax.block_until_ready(net_forward_reference(x, params))
    max_diff = float(jnp.max(jnp.abs(out - ref)))
    assert max_diff < 1e-1, max_diff

    print("KERNEL_OK")
</pallas_src>

<mosaic_0001>
module attributes {stable_mosaic.version = 11 : i64} {
  func.func @kernel(%arg0: i32, %arg1: memref<1x32x64xf32, #tpu.memory_space<vmem>>, %arg2: memref<3x256x32xf32, #tpu.memory_space<vmem>>, %arg3: memref<3x64x64xf32, #tpu.memory_space<vmem>>, %arg4: memref<256x1xf32, #tpu.memory_space<vmem>>, %arg5: memref<3x128x256xf32, #tpu.memory_space<vmem>>, %arg6: memref<3x64x32xf32, #tpu.memory_space<vmem>>, %arg7: memref<128x1xf32, #tpu.memory_space<vmem>>, %arg8: memref<2x64x128xf32, #tpu.memory_space<vmem>>, %arg9: memref<2x32x16xf32, #tpu.memory_space<vmem>>, %arg10: memref<3x128x64xf32, #tpu.memory_space<vmem>>, %arg11: memref<3x16x16xf32, #tpu.memory_space<vmem>>, %arg12: memref<128x1xf32, #tpu.memory_space<vmem>>, %arg13: memref<3x64x128xf32, #tpu.memory_space<vmem>>, %arg14: memref<3x16x8xf32, #tpu.memory_space<vmem>>, %arg15: memref<64x1xf32, #tpu.memory_space<vmem>>, %arg16: memref<2x32x64xf32, #tpu.memory_space<vmem>>, %arg17: memref<2x8x4xf32, #tpu.memory_space<vmem>>, %arg18: memref<3x64x32xf32, #tpu.memory_space<vmem>>, %arg19: memref<3x4x4xf32, #tpu.memory_space<vmem>>, %arg20: memref<64x1xf32, #tpu.memory_space<vmem>>, %arg21: memref<3x64x64xf32, #tpu.memory_space<vmem>>, %arg22: memref<3x4x4xf32, #tpu.memory_space<vmem>>, %arg23: memref<64x1xf32, #tpu.memory_space<vmem>>, %arg24: memref<2x32x64xf32, #tpu.memory_space<vmem>>, %arg25: memref<2x4x2xf32, #tpu.memory_space<vmem>>, %arg26: memref<10x32xf32, #tpu.memory_space<vmem>>, %arg27: memref<10x1xf32, #tpu.memory_space<vmem>>, %arg28: memref<1x10x2xf32, #tpu.memory_space<vmem>>) attributes {dimension_semantics = [#tpu.dimension_semantics<parallel>], iteration_bounds = array<i64: 1>, scalar_prefetch = 0 : i64, scratch_operands = 0 : i64, tpu.core_type = #tpu.core_type<tc>, window_params = [{transform_indices = @transform_0, window_bounds = array<i64: 1, 32, 64>}, {pipeline_mode = #tpu.pipeline_mode<synchronous>, transform_indices = @transform_1, window_bounds = array<i64: 3, 256, 32>}, {pipeline_mode = #tpu.pipeline_mode<synchronous>, transform_indices = @transform_2, window_bounds = array<i64: 3, 64, 64>}, {pipeline_mode = #tpu.pipeline_mode<synchronous>, transform_indices = @transform_3, window_bounds = array<i64: 256, 1>}, {pipeline_mode = #tpu.pipeline_mode<synchronous>, transform_indices = @transform_4, window_bounds = array<i64: 3, 128, 256>}, {pipeline_mode = #tpu.pipeline_mode<synchronous>, transform_indices = @transform_5, window_bounds = array<i64: 3, 64, 32>}, {pipeline_mode = #tpu.pipeline_mode<synchronous>, transform_indices = @transform_6, window_bounds = array<i64: 128, 1>}, {pipeline_mode = #tpu.pipeline_mode<synchronous>, transform_indices = @transform_7, window_bounds = array<i64: 2, 64, 128>}, {pipeline_mode = #tpu.pipeline_mode<synchronous>, transform_indices = @transform_8, window_bounds = array<i64: 2, 32, 16>}, {pipeline_mode = #tpu.pipeline_mode<synchronous>, transform_indices = @transform_9, window_bounds = array<i64: 3, 128, 64>}, {pipeline_mode = #tpu.pipeline_mode<synchronous>, transform_indices = @transform_10, window_bounds = array<i64: 3, 16, 16>}, {pipeline_mode = #tpu.pipeline_mode<synchronous>, transform_indices = @transform_11, window_bounds = array<i64: 128, 1>}, {pipeline_mode = #tpu.pipeline_mode<synchronous>, transform_indices = @transform_12, window_bounds = array<i64: 3, 64, 128>}, {pipeline_mode = #tpu.pipeline_mode<synchronous>, transform_indices = @transform_13, window_bounds = array<i64: 3, 16, 8>}, {pipeline_mode = #tpu.pipeline_mode<synchronous>, transform_indices = @transform_14, window_bounds = array<i64: 64, 1>}, {pipeline_mode = #tpu.pipeline_mode<synchronous>, transform_indices = @transform_15, window_bounds = array<i64: 2, 32, 64>}, {pipeline_mode = #tpu.pipeline_mode<synchronous>, transform_indices = @transform_16, window_bounds = array<i64: 2, 8, 4>}, {pipeline_mode = #tpu.pipeline_mode<synchronous>, transform_indices = @transform_17, window_bounds = array<i64: 3, 64, 32>}, {pipeline_mode = #tpu.pipeline_mode<synchronous>, transform_indices = @transform_18, window_bounds = array<i64: 3, 4, 4>}, {pipeline_mode = #tpu.pipeline_mode<synchronous>, transform_indices = @transform_19, window_bounds = array<i64: 64, 1>}, {pipeline_mode = #tpu.pipeline_mode<synchronous>, transform_indices = @transform_20, window_bounds = array<i64: 3, 64, 64>}, {pipeline_mode = #tpu.pipeline_mode<synchronous>, transform_indices = @transform_21, window_bounds = array<i64: 3, 4, 4>}, {pipeline_mode = #tpu.pipeline_mode<synchronous>, transform_indices = @transform_22, window_bounds = array<i64: 64, 1>}, {pipeline_mode = #tpu.pipeline_mode<synchronous>, transform_indices = @transform_23, window_bounds = array<i64: 2, 32, 64>}, {pipeline_mode = #tpu.pipeline_mode<synchronous>, transform_indices = @transform_24, window_bounds = array<i64: 2, 4, 2>}, {pipeline_mode = #tpu.pipeline_mode<synchronous>, transform_indices = @transform_25, window_bounds = array<i64: 10, 32>}, {pipeline_mode = #tpu.pipeline_mode<synchronous>, transform_indices = @transform_26, window_bounds = array<i64: 10, 1>}, {transform_indices = @transform_27, window_bounds = array<i64: 1, 10, 2>}]} {
    %c0 = arith.constant 0 : index
    %c0_0 = arith.constant 0 : index
    %c0_1 = arith.constant 0 : index
    %0 = vector.load %arg1[%c0, %c0_0, %c0_1] : memref<1x32x64xf32, #tpu.memory_space<vmem>>, vector<1x32x64xf32>
    %1 = vector.shape_cast %0 : vector<1x32x64xf32> to vector<32x64xf32>
    %c0_2 = arith.constant 0 : index
    %c0_3 = arith.constant 0 : index
    %2 = vector.load %arg4[%c0_2, %c0_3] : memref<256x1xf32, #tpu.memory_space<vmem>>, vector<256x1xf32>
    %c0_4 = arith.constant 0 : index
    %c0_5 = arith.constant 0 : index
    %c0_6 = arith.constant 0 : index
    %3 = vector.load %arg3[%c0_4, %c0_5, %c0_6] : memref<3x64x64xf32, #tpu.memory_space<vmem>>, vector<1x64x64xf32>
    %4 = vector.shape_cast %3 : vector<1x64x64xf32> to vector<64x64xf32>
    %cst = arith.constant dense<0.000000e+00> : vector<32x64xf32>
    %5 = tpu.matmul %1, %4, %cst {dimension_numbers = #tpu.dot_dimension_numbers<[1], [0], [0], [1], [0, 0, 1, 1], [], []>} : vector<32x64xf32>, vector<64x64xf32>, vector<32x64xf32> -> vector<32x64xf32>
    %c0_7 = arith.constant 0 : index
    %c0_8 = arith.constant 0 : index
    %c0_9 = arith.constant 0 : index
    %6 = vector.load %arg2[%c0_7, %c0_8, %c0_9] : memref<3x256x32xf32, #tpu.memory_space<vmem>>, vector<1x256x32xf32>
    %7 = vector.shape_cast %6 : vector<1x256x32xf32> to vector<256x32xf32>
    %cst_10 = arith.constant dense<0.000000e+00> : vector<256x64xf32>
    %8 = tpu.matmul %7, %5, %cst_10 {dimension_numbers = #tpu.dot_dimension_numbers<[1], [0], [0], [1], [0, 0, 1, 1], [], []>} : vector<256x32xf32>, vector<32x64xf32>, vector<256x64xf32> -> vector<256x64xf32>
    %9 = vector.broadcast %2 : vector<256x1xf32> to vector<256x64xf32>
    %10 = arith.addf %9, %8 : vector<256x64xf32>
    %c1 = arith.constant 1 : index
    %c0_11 = arith.constant 0 : index
    %c0_12 = arith.constant 0 : index
    %11 = vector.load %arg3[%c1, %c0_11, %c0_12] : memref<3x64x64xf32, #tpu.memory_space<vmem>>, vector<1x64x64xf32>
    %12 = vector.shape_cast %11 : vector<1x64x64xf32> to vector<64x64xf32>
    %cst_13 = arith.constant dense<0.000000e+00> : vector<32x64xf32>
    %13 = tpu.matmul %1, %12, %cst_13 {dimension_numbers = #tpu.dot_dimension_numbers<[1], [0], [0], [1], [0, 0, 1, 1], [], []>} : vector<32x64xf32>, vector<64x64xf32>, vector<32x64xf32> -> vector<32x64xf32>
    %c1_14 = arith.constant 1 : index
    %c0_15 = arith.constant 0 : index
    %c0_16 = arith.constant 0 : index
    %14 = vector.load %arg2[%c1_14, %c0_15, %c0_16] : memref<3x256x32xf32, #tpu.memory_space<vmem>>, vector<1x256x32xf32>
    %15 = vector.shape_cast %14 : vector<1x256x32xf32> to vector<256x32xf32>
    %cst_17 = arith.constant dense<0.000000e+00> : vector<256x64xf32>
    %16 = tpu.matmul %15, %13, %cst_17 {dimension_numbers = #tpu.dot_dimension_numbers<[1], [0], [0], [1], [0, 0, 1, 1], [], []>} : vector<256x32xf32>, vector<32x64xf32>, vector<256x64xf32> -> vector<256x64xf32>
    %17 = arith.addf %10, %16 : vector<256x64xf32>
    %c2 = arith.constant 2 : index
    %c0_18 = arith.constant 0 : index
    %c0_19 = arith.constant 0 : index
    %18 = vector.load %arg3[%c2, %c0_18, %c0_19] : memref<3x64x64xf32, #tpu.memory_space<vmem>>, vector<1x64x64xf32>
    %19 = vector.shape_cast %18 : vector<1x64x64xf32> to vector<64x64xf32>
    %cst_20 = arith.constant dense<0.000000e+00> : vector<32x64xf32>
    %20 = tpu.matmul %1, %19, %cst_20 {dimension_numbers = #tpu.dot_dimension_numbers<[1], [0], [0], [1], [0, 0, 1, 1], [], []>} : vector<32x64xf32>, vector<64x64xf32>, vector<32x64xf32> -> vector<32x64xf32>
    %c2_21 = arith.constant 2 : index
    %c0_22 = arith.constant 0 : index
    %c0_23 = arith.constant 0 : index
    %21 = vector.load %arg2[%c2_21, %c0_22, %c0_23] : memref<3x256x32xf32, #tpu.memory_space<vmem>>, vector<1x256x32xf32>
    %22 = vector.shape_cast %21 : vector<1x256x32xf32> to vector<256x32xf32>
    %cst_24 = arith.constant dense<0.000000e+00> : vector<256x64xf32>
    %23 = tpu.matmul %22, %20, %cst_24 {dimension_numbers = #tpu.dot_dimension_numbers<[1], [0], [0], [1], [0, 0, 1, 1], [], []>} : vector<256x32xf32>, vector<32x64xf32>, vector<256x64xf32> -> vector<256x64xf32>
    %24 = arith.addf %17, %23 : vector<256x64xf32>
    %cst_25 = arith.constant 0.000000e+00 : f32
    %25 = vector.broadcast %cst_25 : f32 to vector<256x64xf32>
    %26 = arith.maximumf %24, %25 : vector<256x64xf32>
    %c0_26 = arith.constant 0 : index
    %c0_27 = arith.constant 0 : index
    %27 = vector.load %arg7[%c0_26, %c0_27] : memref<128x1xf32, #tpu.memory_space<vmem>>, vector<128x1xf32>
    %c0_28 = arith.constant 0 : index
    %c0_29 = arith.constant 0 : index
    %c0_30 = arith.constant 0 : index
    %28 = vector.load %arg6[%c0_28, %c0_29, %c0_30] : memref<3x64x32xf32, #tpu.memory_space<vmem>>, vector<1x64x32xf32>
    %29 = vector.shape_cast %28 : vector<1x64x32xf32> to vector<64x32xf32>
    %cst_31 = arith.constant dense<0.000000e+00> : vector<256x32xf32>
    %30 = tpu.matmul %26, %29, %cst_31 {dimension_numbers = #tpu.dot_dimension_numbers<[1], [0], [0], [1], [0, 0, 1, 1], [], []>} : vector<256x64xf32>, vector<64x32xf32>, vector<256x32xf32> -> vector<256x32xf32>
    %c0_32 = arith.constant 0 : index
    %c0_33 = arith.constant 0 : index
    %c0_34 = arith.constant 0 : index
    %31 = vector.load %arg5[%c0_32, %c0_33, %c0_34] : memref<3x128x256xf32, #tpu.memory_space<vmem>>, vector<1x128x256xf32>
    %32 = vector.shape_cast %31 : vector<1x128x256xf32> to vector<128x256xf32>
    %cst_35 = arith.constant dense<0.000000e+00> : vector<128x32xf32>
    %33 = tpu.matmul %32, %30, %cst_35 {dimension_numbers = #tpu.dot_dimension_numbers<[1], [0], [0], [1], [0, 0, 1, 1], [], []>} : vector<128x256xf32>, vector<256x32xf32>, vector<128x32xf32> -> vector<128x32xf32>
    %34 = vector.broadcast %27 : vector<128x1xf32> to vector<128x32xf32>
    %35 = arith.addf %34, %33 : vector<128x32xf32>
    %c1_36 = arith.constant 1 : index
    %c0_37 = arith.constant 0 : index
    %c0_38 = arith.constant 0 : index
    %36 = vector.load %arg6[%c1_36, %c0_37, %c0_38] : memref<3x64x32xf32, #tpu.memory_space<vmem>>, vector<1x64x32xf32>
    %37 = vector.shape_cast %36 : vector<1x64x32xf32> to vector<64x32xf32>
    %cst_39 = arith.constant dense<0.000000e+00> : vector<256x32xf32>
    %38 = tpu.matmul %26, %37, %cst_39 {dimension_numbers = #tpu.dot_dimension_numbers<[1], [0], [0], [1], [0, 0, 1, 1], [], []>} : vector<256x64xf32>, vector<64x32xf32>, vector<256x32xf32> -> vector<256x32xf32>
    %c1_40 = arith.constant 1 : index
    %c0_41 = arith.constant 0 : index
    %c0_42 = arith.constant 0 : index
    %39 = vector.load %arg5[%c1_40, %c0_41, %c0_42] : memref<3x128x256xf32, #tpu.memory_space<vmem>>, vector<1x128x256xf32>
    %40 = vector.shape_cast %39 : vector<1x128x256xf32> to vector<128x256xf32>
    %cst_43 = arith.constant dense<0.000000e+00> : vector<128x32xf32>
    %41 = tpu.matmul %40, %38, %cst_43 {dimension_numbers = #tpu.dot_dimension_numbers<[1], [0], [0], [1], [0, 0, 1, 1], [], []>} : vector<128x256xf32>, vector<256x32xf32>, vector<128x32xf32> -> vector<128x32xf32>
    %42 = arith.addf %35, %41 : vector<128x32xf32>
    %c2_44 = arith.constant 2 : index
    %c0_45 = arith.constant 0 : index
    %c0_46 = arith.constant 0 : index
    %43 = vector.load %arg6[%c2_44, %c0_45, %c0_46] : memref<3x64x32xf32, #tpu.memory_space<vmem>>, vector<1x64x32xf32>
    %44 = vector.shape_cast %43 : vector<1x64x32xf32> to vector<64x32xf32>
    %cst_47 = arith.constant dense<0.000000e+00> : vector<256x32xf32>
    %45 = tpu.matmul %26, %44, %cst_47 {dimension_numbers = #tpu.dot_dimension_numbers<[1], [0], [0], [1], [0, 0, 1, 1], [], []>} : vector<256x64xf32>, vector<64x32xf32>, vector<256x32xf32> -> vector<256x32xf32>
    %c2_48 = arith.constant 2 : index
    %c0_49 = arith.constant 0 : index
    %c0_50 = arith.constant 0 : index
    %46 = vector.load %arg5[%c2_48, %c0_49, %c0_50] : memref<3x128x256xf32, #tpu.memory_space<vmem>>, vector<1x128x256xf32>
    %47 = vector.shape_cast %46 : vector<1x128x256xf32> to vector<128x256xf32>
    %cst_51 = arith.constant dense<0.000000e+00> : vector<128x32xf32>
    %48 = tpu.matmul %47, %45, %cst_51 {dimension_numbers = #tpu.dot_dimension_numbers<[1], [0], [0], [1], [0, 0, 1, 1], [], []>} : vector<128x256xf32>, vector<256x32xf32>, vector<128x32xf32> -> vector<128x32xf32>
    %49 = arith.addf %42, %48 : vector<128x32xf32>
    %cst_52 = arith.constant 0.000000e+00 : f32
    %50 = vector.broadcast %cst_52 : f32 to vector<128x32xf32>
    %51 = arith.maximumf %49, %50 : vector<128x32xf32>
    %c0_53 = arith.constant 0 : index
    %c0_54 = arith.constant 0 : index
    %c0_55 = arith.constant 0 : index
    %52 = vector.load %arg8[%c0_53, %c0_54, %c0_55] : memref<2x64x128xf32, #tpu.memory_space<vmem>>, vector<1x64x128xf32>
    %53 = vector.shape_cast %52 : vector<1x64x128xf32> to vector<64x128xf32>
    %cst_56 = arith.constant dense<0.000000e+00> : vector<64x32xf32>
    %54 = tpu.matmul %53, %51, %cst_56 {dimension_numbers = #tpu.dot_dimension_numbers<[1], [0], [0], [1], [0, 0, 1, 1], [], []>} : vector<64x128xf32>, vector<128x32xf32>, vector<64x32xf32> -> vector<64x32xf32>
    %c1_57 = arith.constant 1 : index
    %c0_58 = arith.constant 0 : index
    %c0_59 = arith.constant 0 : index
    %55 = vector.load %arg8[%c1_57, %c0_58, %c0_59] : memref<2x64x128xf32, #tpu.memory_space<vmem>>, vector<1x64x128xf32>
    %56 = vector.shape_cast %55 : vector<1x64x128xf32> to vector<64x128xf32>
    %cst_60 = arith.constant dense<0.000000e+00> : vector<64x32xf32>
    %57 = tpu.matmul %56, %51, %cst_60 {dimension_numbers = #tpu.dot_dimension_numbers<[1], [0], [0], [1], [0, 0, 1, 1], [], []>} : vector<64x128xf32>, vector<128x32xf32>, vector<64x32xf32> -> vector<64x32xf32>
    %58 = arith.maximumf %54, %57 : vector<64x32xf32>
    %c0_61 = arith.constant 0 : index
    %c0_62 = arith.constant 0 : index
    %c0_63 = arith.constant 0 : index
    %59 = vector.load %arg9[%c0_61, %c0_62, %c0_63] : memref<2x32x16xf32, #tpu.memory_space<vmem>>, vector<1x32x16xf32>
    %60 = vector.shape_cast %59 : vector<1x32x16xf32> to vector<32x16xf32>
    %cst_64 = arith.constant dense<0.000000e+00> : vector<64x16xf32>
    %61 = tpu.matmul %58, %60, %cst_64 {dimension_numbers = #tpu.dot_dimension_numbers<[1], [0], [0], [1], [0, 0, 1, 1], [], []>} : vector<64x32xf32>, vector<32x16xf32>, vector<64x16xf32> -> vector<64x16xf32>
    %c1_65 = arith.constant 1 : index
    %c0_66 = arith.constant 0 : index
    %c0_67 = arith.constant 0 : index
    %62 = vector.load %arg9[%c1_65, %c0_66, %c0_67] : memref<2x32x16xf32, #tpu.memory_space<vmem>>, vector<1x32x16xf32>
    %63 = vector.shape_cast %62 : vector<1x32x16xf32> to vector<32x16xf32>
    %cst_68 = arith.constant dense<0.000000e+00> : vector<64x16xf32>
    %64 = tpu.matmul %58, %63, %cst_68 {dimension_numbers = #tpu.dot_dimension_numbers<[1], [0], [0], [1], [0, 0, 1, 1], [], []>} : vector<64x32xf32>, vector<32x16xf32>, vector<64x16xf32> -> vector<64x16xf32>
    %65 = arith.maximumf %61, %64 : vector<64x16xf32>
    %c0_69 = arith.constant 0 : index
    %c0_70 = arith.constant 0 : index
    %66 = vector.load %arg12[%c0_69, %c0_70] : memref<128x1xf32, #tpu.memory_space<vmem>>, vector<128x1xf32>
    %c0_71 = arith.constant 0 : index
    %c0_72 = arith.constant 0 : index
    %c0_73 = arith.constant 0 : index
    %67 = vector.load %arg11[%c0_71, %c0_72, %c0_73] : memref<3x16x16xf32, #tpu.memory_space<vmem>>, vector<1x16x16xf32>
    %68 = vector.shape_cast %67 : vector<1x16x16xf32> to vector<16x16xf32>
    %cst_74 = arith.constant dense<0.000000e+00> : vector<64x16xf32>
    %69 = tpu.matmul %65, %68, %cst_74 {dimension_numbers = #tpu.dot_dimension_numbers<[1], [0], [0], [1], [0, 0, 1, 1], [], []>} : vector<64x16xf32>, vector<16x16xf32>, vector<64x16xf32> -> vector<64x16xf32>
    %c0_75 = arith.constant 0 : index
    %c0_76 = arith.constant 0 : index
    %c0_77 = arith.constant 0 : index
    %70 = vector.load %arg10[%c0_75, %c0_76, %c0_77] : memref<3x128x64xf32, #tpu.memory_space<vmem>>, vector<1x128x64xf32>
    %71 = vector.shape_cast %70 : vector<1x128x64xf32> to vector<128x64xf32>
    %cst_78 = arith.constant dense<0.000000e+00> : vector<128x16xf32>
    %72 = tpu.matmul %71, %69, %cst_78 {dimension_numbers = #tpu.dot_dimension_numbers<[1], [0], [0], [1], [0, 0, 1, 1], [], []>} : vector<128x64xf32>, vector<64x16xf32>, vector<128x16xf32> -> vector<128x16xf32>
    %73 = vector.broadcast %66 : vector<128x1xf32> to vector<128x16xf32>
    %74 = arith.addf %73, %72 : vector<128x16xf32>
    %c1_79 = arith.constant 1 : index
    %c0_80 = arith.constant 0 : index
    %c0_81 = arith.constant 0 : index
    %75 = vector.load %arg11[%c1_79, %c0_80, %c0_81] : memref<3x16x16xf32, #tpu.memory_space<vmem>>, vector<1x16x16xf32>
    %76 = vector.shape_cast %75 : vector<1x16x16xf32> to vector<16x16xf32>
    %cst_82 = arith.constant dense<0.000000e+00> : vector<64x16xf32>
    %77 = tpu.matmul %65, %76, %cst_82 {dimension_numbers = #tpu.dot_dimension_numbers<[1], [0], [0], [1], [0, 0, 1, 1], [], []>} : vector<64x16xf32>, vector<16x16xf32>, vector<64x16xf32> -> vector<64x16xf32>
    %c1_83 = arith.constant 1 : index
    %c0_84 = arith.constant 0 : index
    %c0_85 = arith.constant 0 : index
    %78 = vector.load %arg10[%c1_83, %c0_84, %c0_85] : memref<3x128x64xf32, #tpu.memory_space<vmem>>, vector<1x128x64xf32>
    %79 = vector.shape_cast %78 : vector<1x128x64xf32> to vector<128x64xf32>
    %cst_86 = arith.constant dense<0.000000e+00> : vector<128x16xf32>
    %80 = tpu.matmul %79, %77, %cst_86 {dimension_numbers = #tpu.dot_dimension_numbers<[1], [0], [0], [1], [0, 0, 1, 1], [], []>} : vector<128x64xf32>, vector<64x16xf32>, vector<128x16xf32> -> vector<128x16xf32>
    %81 = arith.addf %74, %80 : vector<128x16xf32>
    %c2_87 = arith.constant 2 : index
    %c0_88 = arith.constant 0 : index
    %c0_89 = arith.constant 0 : index
    %82 = vector.load %arg11[%c2_87, %c0_88, %c0_89] : memref<3x16x16xf32, #tpu.memory_space<vmem>>, vector<1x16x16xf32>
    %83 = vector.shape_cast %82 : vector<1x16x16xf32> to vector<16x16xf32>
    %cst_90 = arith.constant dense<0.000000e+00> : vector<64x16xf32>
    %84 = tpu.matmul %65, %83, %cst_90 {dimension_numbers = #tpu.dot_dimension_numbers<[1], [0], [0], [1], [0, 0, 1, 1], [], []>} : vector<64x16xf32>, vector<16x16xf32>, vector<64x16xf32> -> vector<64x16xf32>
    %c2_91 = arith.constant 2 : index
    %c0_92 = arith.constant 0 : index
    %c0_93 = arith.constant 0 : index
    %85 = vector.load %arg10[%c2_91, %c0_92, %c0_93] : memref<3x128x64xf32, #tpu.memory_space<vmem>>, vector<1x128x64xf32>
    %86 = vector.shape_cast %85 : vector<1x128x64xf32> to vector<128x64xf32>
    %cst_94 = arith.constant dense<0.000000e+00> : vector<128x16xf32>
    %87 = tpu.matmul %86, %84, %cst_94 {dimension_numbers = #tpu.dot_dimension_numbers<[1], [0], [0], [1], [0, 0, 1, 1], [], []>} : vector<128x64xf32>, vector<64x16xf32>, vector<128x16xf32> -> vector<128x16xf32>
    %88 = arith.addf %81, %87 : vector<128x16xf32>
    %cst_95 = arith.constant 0.000000e+00 : f32
    %89 = vector.broadcast %cst_95 : f32 to vector<128x16xf32>
    %90 = arith.maximumf %88, %89 : vector<128x16xf32>
    %c0_96 = arith.constant 0 : index
    %c0_97 = arith.constant 0 : index
    %91 = vector.load %arg15[%c0_96, %c0_97] : memref<64x1xf32, #tpu.memory_space<vmem>>, vector<64x1xf32>
    %c0_98 = arith.constant 0 : index
    %c0_99 = arith.constant 0 : index
    %c0_100 = arith.constant 0 : index
    %92 = vector.load %arg14[%c0_98, %c0_99, %c0_100] : memref<3x16x8xf32, #tpu.memory_space<vmem>>, vector<1x16x8xf32>
    %93 = vector.shape_cast %92 : vector<1x16x8xf32> to vector<16x8xf32>
    %cst_101 = arith.constant dense<0.000000e+00> : vector<128x8xf32>
    %94 = tpu.matmul %90, %93, %cst_101 {dimension_numbers = #tpu.dot_dimension_numbers<[1], [0], [0], [1], [0, 0, 1, 1], [], []>} : vector<128x16xf32>, vector<16x8xf32>, vector<128x8xf32> -> vector<128x8xf32>
    %c0_102 = arith.constant 0 : index
    %c0_103 = arith.constant 0 : index
    %c0_104 = arith.constant 0 : index
    %95 = vector.load %arg13[%c0_102, %c0_103, %c0_104] : memref<3x64x128xf32, #tpu.memory_space<vmem>>, vector<1x64x128xf32>
    %96 = vector.shape_cast %95 : vector<1x64x128xf32> to vector<64x128xf32>
    %cst_105 = arith.constant dense<0.000000e+00> : vector<64x8xf32>
    %97 = tpu.matmul %96, %94, %cst_105 {dimension_numbers = #tpu.dot_dimension_numbers<[1], [0], [0], [1], [0, 0, 1, 1], [], []>} : vector<64x128xf32>, vector<128x8xf32>, vector<64x8xf32> -> vector<64x8xf32>
    %98 = vector.broadcast %91 : vector<64x1xf32> to vector<64x8xf32>
    %99 = arith.addf %98, %97 : vector<64x8xf32>
    %c1_106 = arith.constant 1 : index
    %c0_107 = arith.constant 0 : index
    %c0_108 = arith.constant 0 : index
    %100 = vector.load %arg14[%c1_106, %c0_107, %c0_108] : memref<3x16x8xf32, #tpu.memory_space<vmem>>, vector<1x16x8xf32>
    %101 = vector.shape_cast %100 : vector<1x16x8xf32> to vector<16x8xf32>
    %cst_109 = arith.constant dense<0.000000e+00> : vector<128x8xf32>
    %102 = tpu.matmul %90, %101, %cst_109 {dimension_numbers = #tpu.dot_dimension_numbers<[1], [0], [0], [1], [0, 0, 1, 1], [], []>} : vector<128x16xf32>, vector<16x8xf32>, vector<128x8xf32> -> vector<128x8xf32>
    %c1_110 = arith.constant 1 : index
    %c0_111 = arith.constant 0 : index
    %c0_112 = arith.constant 0 : index
    %103 = vector.load %arg13[%c1_110, %c0_111, %c0_112] : memref<3x64x128xf32, #tpu.memory_space<vmem>>, vector<1x64x128xf32>
    %104 = vector.shape_cast %103 : vector<1x64x128xf32> to vector<64x128xf32>
    %cst_113 = arith.constant dense<0.000000e+00> : vector<64x8xf32>
    %105 = tpu.matmul %104, %102, %cst_113 {dimension_numbers = #tpu.dot_dimension_numbers<[1], [0], [0], [1], [0, 0, 1, 1], [], []>} : vector<64x128xf32>, vector<128x8xf32>, vector<64x8xf32> -> vector<64x8xf32>
    %106 = arith.addf %99, %105 : vector<64x8xf32>
    %c2_114 = arith.constant 2 : index
    %c0_115 = arith.constant 0 : index
    %c0_116 = arith.constant 0 : index
    %107 = vector.load %arg14[%c2_114, %c0_115, %c0_116] : memref<3x16x8xf32, #tpu.memory_space<vmem>>, vector<1x16x8xf32>
    %108 = vector.shape_cast %107 : vector<1x16x8xf32> to vector<16x8xf32>
    %cst_117 = arith.constant dense<0.000000e+00> : vector<128x8xf32>
    %109 = tpu.matmul %90, %108, %cst_117 {dimension_numbers = #tpu.dot_dimension_numbers<[1], [0], [0], [1], [0, 0, 1, 1], [], []>} : vector<128x16xf32>, vector<16x8xf32>, vector<128x8xf32> -> vector<128x8xf32>
    %c2_118 = arith.constant 2 : index
    %c0_119 = arith.constant 0 : index
    %c0_120 = arith.constant 0 : index
    %110 = vector.load %arg13[%c2_118, %c0_119, %c0_120] : memref<3x64x128xf32, #tpu.memory_space<vmem>>, vector<1x64x128xf32>
    %111 = vector.shape_cast %110 : vector<1x64x128xf32> to vector<64x128xf32>
    %cst_121 = arith.constant dense<0.000000e+00> : vector<64x8xf32>
    %112 = tpu.matmul %111, %109, %cst_121 {dimension_numbers = #tpu.dot_dimension_numbers<[1], [0], [0], [1], [0, 0, 1, 1], [], []>} : vector<64x128xf32>, vector<128x8xf32>, vector<64x8xf32> -> vector<64x8xf32>
    %113 = arith.addf %106, %112 : vector<64x8xf32>
    %cst_122 = arith.constant 0.000000e+00 : f32
    %114 = vector.broadcast %cst_122 : f32 to vector<64x8xf32>
    %115 = arith.maximumf %113, %114 : vector<64x8xf32>
    %c0_123 = arith.constant 0 : index
    %c0_124 = arith.constant 0 : index
    %c0_125 = arith.constant 0 : index
    %116 = vector.load %arg16[%c0_123, %c0_124, %c0_125] : memref<2x32x64xf32, #tpu.memory_space<vmem>>, vector<1x32x64xf32>
    %117 = vector.shape_cast %116 : vector<1x32x64xf32> to vector<32x64xf32>
    %cst_126 = arith.constant dense<0.000000e+00> : vector<32x8xf32>
    %118 = tpu.matmul %117, %115, %cst_126 {dimension_numbers = #tpu.dot_dimension_numbers<[1], [0], [0], [1], [0, 0, 1, 1], [], []>} : vector<32x64xf32>, vector<64x8xf32>, vector<32x8xf32> -> vector<32x8xf32>
    %c1_127 = arith.constant 1 : index
    %c0_128 = arith.constant 0 : index
    %c0_129 = arith.constant 0 : index
    %119 = vector.load %arg16[%c1_127, %c0_128, %c0_129] : memref<2x32x64xf32, #tpu.memory_space<vmem>>, vector<1x32x64xf32>
    %120 = vector.shape_cast %119 : vector<1x32x64xf32> to vector<32x64xf32>
    %cst_130 = arith.constant dense<0.000000e+00> : vector<32x8xf32>
    %121 = tpu.matmul %120, %115, %cst_130 {dimension_numbers = #tpu.dot_dimension_numbers<[1], [0], [0], [1], [0, 0, 1, 1], [], []>} : vector<32x64xf32>, vector<64x8xf32>, vector<32x8xf32> -> vector<32x8xf32>
    %122 = arith.maximumf %118, %121 : vector<32x8xf32>
    %c0_131 = arith.constant 0 : index
    %c0_132 = arith.constant 0 : index
    %c0_133 = arith.constant 0 : index
    %123 = vector.load %arg17[%c0_131, %c0_132, %c0_133] : memref<2x8x4xf32, #tpu.memory_space<vmem>>, vector<1x8x4xf32>
    %124 = vector.shape_cast %123 : vector<1x8x4xf32> to vector<8x4xf32>
    %cst_134 = arith.constant dense<0.000000e+00> : vector<32x4xf32>
    %125 = tpu.matmul %122, %124, %cst_134 {dimension_numbers = #tpu.dot_dimension_numbers<[1], [0], [0], [1], [0, 0, 1, 1], [], []>} : vector<32x8xf32>, vector<8x4xf32>, vector<32x4xf32> -> vector<32x4xf32>
    %c1_135 = arith.constant 1 : index
    %c0_136 = arith.constant 0 : index
    %c0_137 = arith.constant 0 : index
    %126 = vector.load %arg17[%c1_135, %c0_136, %c0_137] : memref<2x8x4xf32, #tpu.memory_space<vmem>>, vector<1x8x4xf32>
    %127 = vector.shape_cast %126 : vector<1x8x4xf32> to vector<8x4xf32>
    %cst_138 = arith.constant dense<0.000000e+00> : vector<32x4xf32>
    %128 = tpu.matmul %122, %127, %cst_138 {dimension_numbers = #tpu.dot_dimension_numbers<[1], [0], [0], [1], [0, 0, 1, 1], [], []>} : vector<32x8xf32>, vector<8x4xf32>, vector<32x4xf32> -> vector<32x4xf32>
    %129 = arith.maximumf %125, %128 : vector<32x4xf32>
    %c0_139 = arith.constant 0 : index
    %c0_140 = arith.constant 0 : index
    %130 = vector.load %arg20[%c0_139, %c0_140] : memref<64x1xf32, #tpu.memory_space<vmem>>, vector<64x1xf32>
    %c0_141 = arith.constant 0 : index
    %c0_142 = arith.constant 0 : index
    %c0_143 = arith.constant 0 : index
    %131 = vector.load %arg19[%c0_141, %c0_142, %c0_143] : memref<3x4x4xf32, #tpu.memory_space<vmem>>, vector<1x4x4xf32>
    %132 = vector.shape_cast %131 : vector<1x4x4xf32> to vector<4x4xf32>
    %cst_144 = arith.constant dense<0.000000e+00> : vector<32x4xf32>
    %133 = tpu.matmul %129, %132, %cst_144 {dimension_numbers = #tpu.dot_dimension_numbers<[1], [0], [0], [1], [0, 0, 1, 1], [], []>} : vector<32x4xf32>, vector<4x4xf32>, vector<32x4xf32> -> vector<32x4xf32>
    %c0_145 = arith.constant 0 : index
    %c0_146 = arith.constant 0 : index
    %c0_147 = arith.constant 0 : index
    %134 = vector.load %arg18[%c0_145, %c0_146, %c0_147] : memref<3x64x32xf32, #tpu.memory_space<vmem>>, vector<1x64x32xf32>
    %135 = vector.shape_cast %134 : vector<1x64x32xf32> to vector<64x32xf32>
    %cst_148 = arith.constant dense<0.000000e+00> : vector<64x4xf32>
    %136 = tpu.matmul %135, %133, %cst_148 {dimension_numbers = #tpu.dot_dimension_numbers<[1], [0], [0], [1], [0, 0, 1, 1], [], []>} : vector<64x32xf32>, vector<32x4xf32>, vector<64x4xf32> -> vector<64x4xf32>
    %137 = vector.broadcast %130 : vector<64x1xf32> to vector<64x4xf32>
    %138 = arith.addf %137, %136 : vector<64x4xf32>
    %c1_149 = arith.constant 1 : index
    %c0_150 = arith.constant 0 : index
    %c0_151 = arith.constant 0 : index
    %139 = vector.load %arg19[%c1_149, %c0_150, %c0_151] : memref<3x4x4xf32, #tpu.memory_space<vmem>>, vector<1x4x4xf32>
    %140 = vector.shape_cast %139 : vector<1x4x4xf32> to vector<4x4xf32>
    %cst_152 = arith.constant dense<0.000000e+00> : vector<32x4xf32>
    %141 = tpu.matmul %129, %140, %cst_152 {dimension_numbers = #tpu.dot_dimension_numbers<[1], [0], [0], [1], [0, 0, 1, 1], [], []>} : vector<32x4xf32>, vector<4x4xf32>, vector<32x4xf32> -> vector<32x4xf32>
    %c1_153 = arith.constant 1 : index
    %c0_154 = arith.constant 0 : index
    %c0_155 = arith.constant 0 : index
    %142 = vector.load %arg18[%c1_153, %c0_154, %c0_155] : memref<3x64x32xf32, #tpu.memory_space<vmem>>, vector<1x64x32xf32>
    %143 = vector.shape_cast %142 : vector<1x64x32xf32> to vector<64x32xf32>
    %cst_156 = arith.constant dense<0.000000e+00> : vector<64x4xf32>
    %144 = tpu.matmul %143, %141, %cst_156 {dimension_numbers = #tpu.dot_dimension_numbers<[1], [0], [0], [1], [0, 0, 1, 1], [], []>} : vector<64x32xf32>, vector<32x4xf32>, vector<64x4xf32> -> vector<64x4xf32>
    %145 = arith.addf %138, %144 : vector<64x4xf32>
    %c2_157 = arith.constant 2 : index
    %c0_158 = arith.constant 0 : index
    %c0_159 = arith.constant 0 : index
    %146 = vector.load %arg19[%c2_157, %c0_158, %c0_159] : memref<3x4x4xf32, #tpu.memory_space<vmem>>, vector<1x4x4xf32>
    %147 = vector.shape_cast %146 : vector<1x4x4xf32> to vector<4x4xf32>
    %cst_160 = arith.constant dense<0.000000e+00> : vector<32x4xf32>
    %148 = tpu.matmul %129, %147, %cst_160 {dimension_numbers = #tpu.dot_dimension_numbers<[1], [0], [0], [1], [0, 0, 1, 1], [], []>} : vector<32x4xf32>, vector<4x4xf32>, vector<32x4xf32> -> vector<32x4xf32>
    %c2_161 = arith.constant 2 : index
    %c0_162 = arith.constant 0 : index
    %c0_163 = arith.constant 0 : index
    %149 = vector.load %arg18[%c2_161, %c0_162, %c0_163] : memref<3x64x32xf32, #tpu.memory_space<vmem>>, vector<1x64x32xf32>
    %150 = vector.shape_cast %149 : vector<1x64x32xf32> to vector<64x32xf32>
    %cst_164 = arith.constant dense<0.000000e+00> : vector<64x4xf32>
    %151 = tpu.matmul %150, %148, %cst_164 {dimension_numbers = #tpu.dot_dimension_numbers<[1], [0], [0], [1], [0, 0, 1, 1], [], []>} : vector<64x32xf32>, vector<32x4xf32>, vector<64x4xf32> -> vector<64x4xf32>
    %152 = arith.addf %145, %151 : vector<64x4xf32>
    %cst_165 = arith.constant 0.000000e+00 : f32
    %153 = vector.broadcast %cst_165 : f32 to vector<64x4xf32>
    %154 = arith.maximumf %152, %153 : vector<64x4xf32>
    %c0_166 = arith.constant 0 : index
    %c0_167 = arith.constant 0 : index
    %155 = vector.load %arg23[%c0_166, %c0_167] : memref<64x1xf32, #tpu.memory_space<vmem>>, vector<64x1xf32>
    %c0_168 = arith.constant 0 : index
    %c0_169 = arith.constant 0 : index
    %c0_170 = arith.constant 0 : index
    %156 = vector.load %arg21[%c0_168, %c0_169, %c0_170] : memref<3x64x64xf32, #tpu.memory_space<vmem>>, vector<1x64x64xf32>
    %157 = vector.shape_cast %156 : vector<1x64x64xf32> to vector<64x64xf32>
    %cst_171 = arith.constant dense<0.000000e+00> : vector<64x4xf32>
    %158 = tpu.matmul %157, %154, %cst_171 {dimension_numbers = #tpu.dot_dimension_numbers<[1], [0], [0], [1], [0, 0, 1, 1], [], []>} : vector<64x64xf32>, vector<64x4xf32>, vector<64x4xf32> -> vector<64x4xf32>
    %c0_172 = arith.constant 0 : index
    %c0_173 = arith.constant 0 : index
    %c0_174 = arith.constant 0 : index
    %159 = vector.load %arg22[%c0_172, %c0_173, %c0_174] : memref<3x4x4xf32, #tpu.memory_space<vmem>>, vector<1x4x4xf32>
    %160 = vector.shape_cast %159 : vector<1x4x4xf32> to vector<4x4xf32>
    %cst_175 = arith.constant dense<0.000000e+00> : vector<64x4xf32>
    %161 = tpu.matmul %158, %160, %cst_175 {dimension_numbers = #tpu.dot_dimension_numbers<[1], [0], [0], [1], [0, 0, 1, 1], [], []>} : vector<64x4xf32>, vector<4x4xf32>, vector<64x4xf32> -> vector<64x4xf32>
    %162 = vector.broadcast %155 : vector<64x1xf32> to vector<64x4xf32>
    %163 = arith.addf %162, %161 : vector<64x4xf32>
    %c1_176 = arith.constant 1 : index
    %c0_177 = arith.constant 0 : index
    %c0_178 = arith.constant 0 : index
    %164 = vector.load %arg21[%c1_176, %c0_177, %c0_178] : memref<3x64x64xf32, #tpu.memory_space<vmem>>, vector<1x64x64xf32>
    %165 = vector.shape_cast %164 : vector<1x64x64xf32> to vector<64x64xf32>
    %cst_179 = arith.constant dense<0.000000e+00> : vector<64x4xf32>
    %166 = tpu.matmul %165, %154, %cst_179 {dimension_numbers = #tpu.dot_dimension_numbers<[1], [0], [0], [1], [0, 0, 1, 1], [], []>} : vector<64x64xf32>, vector<64x4xf32>, vector<64x4xf32> -> vector<64x4xf32>
    %c1_180 = arith.constant 1 : index
    %c0_181 = arith.constant 0 : index
    %c0_182 = arith.constant 0 : index
    %167 = vector.load %arg22[%c1_180, %c0_181, %c0_182] : memref<3x4x4xf32, #tpu.memory_space<vmem>>, vector<1x4x4xf32>
    %168 = vector.shape_cast %167 : vector<1x4x4xf32> to vector<4x4xf32>
    %cst_183 = arith.constant dense<0.000000e+00> : vector<64x4xf32>
    %169 = tpu.matmul %166, %168, %cst_183 {dimension_numbers = #tpu.dot_dimension_numbers<[1], [0], [0], [1], [0, 0, 1, 1], [], []>} : vector<64x4xf32>, vector<4x4xf32>, vector<64x4xf32> -> vector<64x4xf32>
    %170 = arith.addf %163, %169 : vector<64x4xf32>
    %c2_184 = arith.constant 2 : index
    %c0_185 = arith.constant 0 : index
    %c0_186 = arith.constant 0 : index
    %171 = vector.load %arg21[%c2_184, %c0_185, %c0_186] : memref<3x64x64xf32, #tpu.memory_space<vmem>>, vector<1x64x64xf32>
    %172 = vector.shape_cast %171 : vector<1x64x64xf32> to vector<64x64xf32>
    %cst_187 = arith.constant dense<0.000000e+00> : vector<64x4xf32>
    %173 = tpu.matmul %172, %154, %cst_187 {dimension_numbers = #tpu.dot_dimension_numbers<[1], [0], [0], [1], [0, 0, 1, 1], [], []>} : vector<64x64xf32>, vector<64x4xf32>, vector<64x4xf32> -> vector<64x4xf32>
    %c2_188 = arith.constant 2 : index
    %c0_189 = arith.constant 0 : index
    %c0_190 = arith.constant 0 : index
    %174 = vector.load %arg22[%c2_188, %c0_189, %c0_190] : memref<3x4x4xf32, #tpu.memory_space<vmem>>, vector<1x4x4xf32>
    %175 = vector.shape_cast %174 : vector<1x4x4xf32> to vector<4x4xf32>
    %cst_191 = arith.constant dense<0.000000e+00> : vector<64x4xf32>
    %176 = tpu.matmul %173, %175, %cst_191 {dimension_numbers = #tpu.dot_dimension_numbers<[1], [0], [0], [1], [0, 0, 1, 1], [], []>} : vector<64x4xf32>, vector<4x4xf32>, vector<64x4xf32> -> vector<64x4xf32>
    %177 = arith.addf %170, %176 : vector<64x4xf32>
    %cst_192 = arith.constant 0.000000e+00 : f32
    %178 = vector.broadcast %cst_192 : f32 to vector<64x4xf32>
    %179 = arith.maximumf %177, %178 : vector<64x4xf32>
    %c0_193 = arith.constant 0 : index
    %c0_194 = arith.constant 0 : index
    %c0_195 = arith.constant 0 : index
    %180 = vector.load %arg24[%c0_193, %c0_194, %c0_195] : memref<2x32x64xf32, #tpu.memory_space<vmem>>, vector<1x32x64xf32>
    %181 = vector.shape_cast %180 : vector<1x32x64xf32> to vector<32x64xf32>
    %cst_196 = arith.constant dense<0.000000e+00> : vector<32x4xf32>
    %182 = tpu.matmul %181, %179, %cst_196 {dimension_numbers = #tpu.dot_dimension_numbers<[1], [0], [0], [1], [0, 0, 1, 1], [], []>} : vector<32x64xf32>, vector<64x4xf32>, vector<32x4xf32> -> vector<32x4xf32>
    %c1_197 = arith.constant 1 : index
    %c0_198 = arith.constant 0 : index
    %c0_199 = arith.constant 0 : index
    %183 = vector.load %arg24[%c1_197, %c0_198, %c0_199] : memref<2x32x64xf32, #tpu.memory_space<vmem>>, vector<1x32x64xf32>
    %184 = vector.shape_cast %183 : vector<1x32x64xf32> to vector<32x64xf32>
    %cst_200 = arith.constant dense<0.000000e+00> : vector<32x4xf32>
    %185 = tpu.matmul %184, %179, %cst_200 {dimension_numbers = #tpu.dot_dimension_numbers<[1], [0], [0], [1], [0, 0, 1, 1], [], []>} : vector<32x64xf32>, vector<64x4xf32>, vector<32x4xf32> -> vector<32x4xf32>
    %186 = arith.maximumf %182, %185 : vector<32x4xf32>
    %c0_201 = arith.constant 0 : index
    %c0_202 = arith.constant 0 : index
    %c0_203 = arith.constant 0 : index
    %187 = vector.load %arg25[%c0_201, %c0_202, %c0_203] : memref<2x4x2xf32, #tpu.memory_space<vmem>>, vector<1x4x2xf32>
    %188 = vector.shape_cast %187 : vector<1x4x2xf32> to vector<4x2xf32>
    %cst_204 = arith.constant dense<0.000000e+00> : vector<32x2xf32>
    %189 = tpu.matmul %186, %188, %cst_204 {dimension_numbers = #tpu.dot_dimension_numbers<[1], [0], [0], [1], [0, 0, 1, 1], [], []>} : vector<32x4xf32>, vector<4x2xf32>, vector<32x2xf32> -> vector<32x2xf32>
    %c1_205 = arith.constant 1 : index
    %c0_206 = arith.constant 0 : index
    %c0_207 = arith.constant 0 : index
    %190 = vector.load %arg25[%c1_205, %c0_206, %c0_207] : memref<2x4x2xf32, #tpu.memory_space<vmem>>, vector<1x4x2xf32>
    %191 = vector.shape_cast %190 : vector<1x4x2xf32> to vector<4x2xf32>
    %cst_208 = arith.constant dense<0.000000e+00> : vector<32x2xf32>
    %192 = tpu.matmul %186, %191, %cst_208 {dimension_numbers = #tpu.dot_dimension_numbers<[1], [0], [0], [1], [0, 0, 1, 1], [], []>} : vector<32x4xf32>, vector<4x2xf32>, vector<32x2xf32> -> vector<32x2xf32>
    %193 = arith.maximumf %189, %192 : vector<32x2xf32>
    %c0_209 = arith.constant 0 : index
    %c0_210 = arith.constant 0 : index
    %194 = vector.load %arg26[%c0_209, %c0_210] : memref<10x32xf32, #tpu.memory_space<vmem>>, vector<10x32xf32>
    %cst_211 = arith.constant dense<0.000000e+00> : vector<10x2xf32>
    %195 = tpu.matmul %194, %193, %cst_211 {dimension_numbers = #tpu.dot_dimension_numbers<[1], [0], [0], [1], [0, 0, 1, 1], [], []>} : vector<10x32xf32>, vector<32x2xf32>, vector<10x2xf32> -> vector<10x2xf32>
    %c0_212 = arith.constant 0 : index
    %c0_213 = arith.constant 0 : index
    %196 = vector.load %arg27[%c0_212, %c0_213] : memref<10x1xf32, #tpu.memory_space<vmem>>, vector<10x1xf32>
    %197 = vector.broadcast %196 : vector<10x1xf32> to vector<10x2xf32>
    %198 = arith.addf %195, %197 : vector<10x2xf32>
    %cst_214 = arith.constant dense<0xFF800000> : vector<2xf32>
    %199 = vector.multi_reduction <maximumf>, %198, %cst_214 [0] : vector<10x2xf32> to vector<2xf32>
    %200 = vector.shape_cast %199 : vector<2xf32> to vector<1x2xf32>
    %201 = vector.broadcast %200 : vector<1x2xf32> to vector<10x2xf32>
    %202 = arith.subf %198, %201 : vector<10x2xf32>
    %203 = math.exp %202 : vector<10x2xf32>
    %cst_215 = arith.constant dense<0.000000e+00> : vector<2xf32>
    %204 = vector.multi_reduction <add>, %203, %cst_215 [0] : vector<10x2xf32> to vector<2xf32>
    %205 = vector.shape_cast %204 : vector<2xf32> to vector<1x2xf32>
    %206 = math.log %205 : vector<1x2xf32>
    %207 = vector.broadcast %206 : vector<1x2xf32> to vector<10x2xf32>
    %208 = arith.subf %202, %207 : vector<10x2xf32>
    %c0_216 = arith.constant 0 : index
    %c0_217 = arith.constant 0 : index
    %c0_218 = arith.constant 0 : index
    %209 = vector.load %arg28[%c0_216, %c0_217, %c0_218] : memref<1x10x2xf32, #tpu.memory_space<vmem>>, vector<1x10x2xf32>
    %210 = vector.shape_cast %209 : vector<1x10x2xf32> to vector<10x2xf32>
    %211 = vector.shape_cast %208 : vector<10x2xf32> to vector<1x10x2xf32>
    tpu.vector_store %arg28[%c0_216, %c0_217, %c0_218], %211 {strides = array<i32>} : memref<1x10x2xf32, #tpu.memory_space<vmem>>, vector<1x10x2xf32>,
    return
  }
  func.func @transform_0(%arg0: i32) -> (i32, i32, i32) {
    %c0_i32 = arith.constant 0 : i32
    %c0_i32_0 = arith.constant 0 : i32
    %c0_i32_1 = arith.constant 0 : i32
    return %arg0, %c0_i32, %c0_i32_0 : i32, i32, i32
  }
  func.func @transform_1(%arg0: i32) -> (i32, i32, i32) {
    %c0_i32 = arith.constant 0 : i32
    %c0_i32_0 = arith.constant 0 : i32
    %c0_i32_1 = arith.constant 0 : i32
    %c0_i32_2 = arith.constant 0 : i32
    return %c0_i32, %c0_i32_0, %c0_i32_1 : i32, i32, i32
  }
  func.func @transform_2(%arg0: i32) -> (i32, i32, i32) {
    %c0_i32 = arith.constant 0 : i32
    %c0_i32_0 = arith.constant 0 : i32
    %c0_i32_1 = arith.constant 0 : i32
    %c0_i32_2 = arith.constant 0 : i32
    return %c0_i32, %c0_i32_0, %c0_i32_1 : i32, i32, i32
  }
  func.func @transform_3(%arg0: i32) -> (i32, i32) {
    %c0_i32 = arith.constant 0 : i32
    %c0_i32_0 = arith.constant 0 : i32
    %c0_i32_1 = arith.constant 0 : i32
    return %c0_i32, %c0_i32_0 : i32, i32
  }
  func.func @transform_4(%arg0: i32) -> (i32, i32, i32) {
    %c0_i32 = arith.constant 0 : i32
    %c0_i32_0 = arith.constant 0 : i32
    %c0_i32_1 = arith.constant 0 : i32
    %c0_i32_2 = arith.constant 0 : i32
    return %c0_i32, %c0_i32_0, %c0_i32_1 : i32, i32, i32
  }
  func.func @transform_5(%arg0: i32) -> (i32, i32, i32) {
    %c0_i32 = arith.constant 0 : i32
    %c0_i32_0 = arith.constant 0 : i32
    %c0_i32_1 = arith.constant 0 : i32
    %c0_i32_2 = arith.constant 0 : i32
    return %c0_i32, %c0_i32_0, %c0_i32_1 : i32, i32, i32
  }
  func.func @transform_6(%arg0: i32) -> (i32, i32) {
    %c0_i32 = arith.constant 0 : i32
    %c0_i32_0 = arith.constant 0 : i32
    %c0_i32_1 = arith.constant 0 : i32
    return %c0_i32, %c0_i32_0 : i32, i32
  }
  func.func @transform_7(%arg0: i32) -> (i32, i32, i32) {
    %c0_i32 = arith.constant 0 : i32
    %c0_i32_0 = arith.constant 0 : i32
    %c0_i32_1 = arith.constant 0 : i32
    %c0_i32_2 = arith.constant 0 : i32
    return %c0_i32, %c0_i32_0, %c0_i32_1 : i32, i32, i32
  }
  func.func @transform_8(%arg0: i32) -> (i32, i32, i32) {
    %c0_i32 = arith.constant 0 : i32
    %c0_i32_0 = arith.constant 0 : i32
    %c0_i32_1 = arith.constant 0 : i32
    %c0_i32_2 = arith.constant 0 : i32
    return %c0_i32, %c0_i32_0, %c0_i32_1 : i32, i32, i32
  }
  func.func @transform_9(%arg0: i32) -> (i32, i32, i32) {
    %c0_i32 = arith.constant 0 : i32
    %c0_i32_0 = arith.constant 0 : i32
    %c0_i32_1 = arith.constant 0 : i32
    %c0_i32_2 = arith.constant 0 : i32
    return %c0_i32, %c0_i32_0, %c0_i32_1 : i32, i32, i32
  }
  func.func @transform_10(%arg0: i32) -> (i32, i32, i32) {
    %c0_i32 = arith.constant 0 : i32
    %c0_i32_0 = arith.constant 0 : i32
    %c0_i32_1 = arith.constant 0 : i32
    %c0_i32_2 = arith.constant 0 : i32
    return %c0_i32, %c0_i32_0, %c0_i32_1 : i32, i32, i32
  }
  func.func @transform_11(%arg0: i32) -> (i32, i32) {
    %c0_i32 = arith.constant 0 : i32
    %c0_i32_0 = arith.constant 0 : i32
    %c0_i32_1 = arith.constant 0 : i32
    return %c0_i32, %c0_i32_0 : i32, i32
  }
  func.func @transform_12(%arg0: i32) -> (i32, i32, i32) {
    %c0_i32 = arith.constant 0 : i32
    %c0_i32_0 = arith.constant 0 : i32
    %c0_i32_1 = arith.constant 0 : i32
    %c0_i32_2 = arith.constant 0 : i32
    return %c0_i32, %c0_i32_0, %c0_i32_1 : i32, i32, i32
  }
  func.func @transform_13(%arg0: i32) -> (i32, i32, i32) {
    %c0_i32 = arith.constant 0 : i32
    %c0_i32_0 = arith.constant 0 : i32
    %c0_i32_1 = arith.constant 0 : i32
    %c0_i32_2 = arith.constant 0 : i32
    return %c0_i32, %c0_i32_0, %c0_i32_1 : i32, i32, i32
  }
  func.func @transform_14(%arg0: i32) -> (i32, i32) {
    %c0_i32 = arith.constant 0 : i32
    %c0_i32_0 = arith.constant 0 : i32
    %c0_i32_1 = arith.constant 0 : i32
    return %c0_i32, %c0_i32_0 : i32, i32
  }
  func.func @transform_15(%arg0: i32) -> (i32, i32, i32) {
    %c0_i32 = arith.constant 0 : i32
    %c0_i32_0 = arith.constant 0 : i32
    %c0_i32_1 = arith.constant 0 : i32
    %c0_i32_2 = arith.constant 0 : i32
    return %c0_i32, %c0_i32_0, %c0_i32_1 : i32, i32, i32
  }
  func.func @transform_16(%arg0: i32) -> (i32, i32, i32) {
    %c0_i32 = arith.constant 0 : i32
    %c0_i32_0 = arith.constant 0 : i32
    %c0_i32_1 = arith.constant 0 : i32
    %c0_i32_2 = arith.constant 0 : i32
    return %c0_i32, %c0_i32_0, %c0_i32_1 : i32, i32, i32
  }
  func.func @transform_17(%arg0: i32) -> (i32, i32, i32) {
    %c0_i32 = arith.constant 0 : i32
    %c0_i32_0 = arith.constant 0 : i32
    %c0_i32_1 = arith.constant 0 : i32
    %c0_i32_2 = arith.constant 0 : i32
    return %c0_i32, %c0_i32_0, %c0_i32_1 : i32, i32, i32
  }
  func.func @transform_18(%arg0: i32) -> (i32, i32, i32) {
    %c0_i32 = arith.constant 0 : i32
    %c0_i32_0 = arith.constant 0 : i32
    %c0_i32_1 = arith.constant 0 : i32
    %c0_i32_2 = arith.constant 0 : i32
    return %c0_i32, %c0_i32_0, %c0_i32_1 : i32, i32, i32
  }
  func.func @transform_19(%arg0: i32) -> (i32, i32) {
    %c0_i32 = arith.constant 0 : i32
    %c0_i32_0 = arith.constant 0 : i32
    %c0_i32_1 = arith.constant 0 : i32
    return %c0_i32, %c0_i32_0 : i32, i32
  }
  func.func @transform_20(%arg0: i32) -> (i32, i32, i32) {
    %c0_i32 = arith.constant 0 : i32
    %c0_i32_0 = arith.constant 0 : i32
    %c0_i32_1 = arith.constant 0 : i32
    %c0_i32_2 = arith.constant 0 : i32
    return %c0_i32, %c0_i32_0, %c0_i32_1 : i32, i32, i32
  }
  func.func @transform_21(%arg0: i32) -> (i32, i32, i32) {
    %c0_i32 = arith.constant 0 : i32
    %c0_i32_0 = arith.constant 0 : i32
    %c0_i32_1 = arith.constant 0 : i32
    %c0_i32_2 = arith.constant 0 : i32
    return %c0_i32, %c0_i32_0, %c0_i32_1 : i32, i32, i32
  }
  func.func @transform_22(%arg0: i32) -> (i32, i32) {
    %c0_i32 = arith.constant 0 : i32
    %c0_i32_0 = arith.constant 0 : i32
    %c0_i32_1 = arith.constant 0 : i32
    return %c0_i32, %c0_i32_0 : i32, i32
  }
  func.func @transform_23(%arg0: i32) -> (i32, i32, i32) {
    %c0_i32 = arith.constant 0 : i32
    %c0_i32_0 = arith.constant 0 : i32
    %c0_i32_1 = arith.constant 0 : i32
    %c0_i32_2 = arith.constant 0 : i32
    return %c0_i32, %c0_i32_0, %c0_i32_1 : i32, i32, i32
  }
  func.func @transform_24(%arg0: i32) -> (i32, i32, i32) {
    %c0_i32 = arith.constant 0 : i32
    %c0_i32_0 = arith.constant 0 : i32
    %c0_i32_1 = arith.constant 0 : i32
    %c0_i32_2 = arith.constant 0 : i32
    return %c0_i32, %c0_i32_0, %c0_i32_1 : i32, i32, i32
  }
  func.func @transform_25(%arg0: i32) -> (i32, i32) {
    %c0_i32 = arith.constant 0 : i32
    %c0_i32_0 = arith.constant 0 : i32
    %c0_i32_1 = arith.constant 0 : i32
    return %c0_i32, %c0_i32_0 : i32, i32
  }
  func.func @transform_26(%arg0: i32) -> (i32, i32) {
    %c0_i32 = arith.constant 0 : i32
    %c0_i32_0 = arith.constant 0 : i32
    %c0_i32_1 = arith.constant 0 : i32
    return %c0_i32, %c0_i32_0 : i32, i32
  }
  func.func @transform_27(%arg0: i32) -> (i32, i32, i32) {
    %c0_i32 = arith.constant 0 : i32
    %c0_i32_0 = arith.constant 0 : i32
    %c0_i32_1 = arith.constant 0 : i32
    return %arg0, %c0_i32, %c0_i32_0 : i32, i32, i32
  }
}

</mosaic_0001>

<bundles_post_ra>
// kernel: net_forward.1
= control target key start
LH: loop header
LB: loop body
LE: loop exit
PB: predicated region body
PF: predicated region fallthrough
CT: control target
= control target key end

     0   :  { %s13881_s0 = inlined_call_operand.vmem [shape: f32[1,32,64], index: 0, kind: input, shape index: {}]   ;;  %s13882_s1 = inlined_call_operand.hbm [shape: f32[3,256,32], index: 1, kind: input, shape index: {}]   ;;  %s13883_s2 = inlined_call_operand.hbm [shape: f32[3,64,64], index: 2, kind: input, shape index: {}]   ;;  %s13884_s3 = inlined_call_operand.hbm [shape: f32[256,1], index: 3, kind: input, shape index: {}]   ;;  %s13885_s4 = inlined_call_operand.hbm [shape: f32[3,128,256], index: 4, kind: input, shape index: {}]   ;;  %s13886_s5 = inlined_call_operand.hbm [shape: f32[3,64,32], index: 5, kind: input, shape index: {}]   ;;  %s13887_s6 = inlined_call_operand.hbm [shape: f32[128,1], index: 6, kind: input, shape index: {}]   ;;  %s13888_s7 = inlined_call_operand.hbm [shape: f32[2,64,128], index: 7, kind: input, shape index: {}]   ;;  %s13889_s8 = inlined_call_operand.hbm [shape: f32[2,32,16], index: 8, kind: input, shape index: {}]   ;;  %s13890_s9 = inlined_call_operand.hbm [shape: f32[3,128,64], index: 9, kind: input, shape index: {}]   ;;  %s13891_s10 = inlined_call_operand.hbm [shape: f32[3,16,16], index: 10, kind: input, shape index: {}]   ;;  %s13892_s11 = inlined_call_operand.hbm [shape: f32[128,1], index: 11, kind: input, shape index: {}]   ;;  %s13893_s12 = inlined_call_operand.hbm [shape: f32[3,64,128], index: 12, kind: input, shape index: {}]   ;;  %s13894_s13 = inlined_call_operand.hbm [shape: f32[3,16,8], index: 13, kind: input, shape index: {}]   ;;  %s13895_s14 = inlined_call_operand.hbm [shape: f32[64,1], index: 14, kind: input, shape index: {}]   ;;  %s13896_s15 = inlined_call_operand.vmem [shape: f32[2,32,64], index: 15, kind: input, shape index: {}, may-alias: {15,23}]   ;;  %s13897_s16 = inlined_call_operand.hbm [shape: f32[2,8,4], index: 16, kind: input, shape index: {}]   ;;  %s13898_s17 = inlined_call_operand.hbm [shape: f32[3,64,32], index: 17, kind: input, shape index: {}]   ;;  %s13899_s18 = inlined_call_operand.hbm [shape: f32[3,4,4], index: 18, kind: input, shape index: {}, may-alias: {18,21}]   ;;  %s13900_s19 = inlined_call_operand.hbm [shape: f32[64,1], index: 19, kind: input, shape index: {}]   ;;  %s13901_s20 = inlined_call_operand.vmem [shape: f32[3,64,64], index: 20, kind: input, shape index: {}]   ;;  %s13902_s21 = inlined_call_operand.hbm [shape: f32[3,4,4], index: 21, kind: input, shape index: {}, may-alias: {18,21}]   ;;  %s13903_s22 = inlined_call_operand.hbm [shape: f32[64,1], index: 22, kind: input, shape index: {}]   ;;  %s13904_s23 = inlined_call_operand.vmem [shape: f32[2,32,64], index: 23, kind: input, shape index: {}, may-alias: {15,23}]   ;;  %s13905_s24 = inlined_call_operand.vmem [shape: f32[2,4,2], index: 24, kind: input, shape index: {}]   ;;  %s13906_s25 = inlined_call_operand.hbm [shape: f32[10,32], index: 25, kind: input, shape index: {}]   ;;  %s13907_s26 = inlined_call_operand.hbm [shape: f32[10,1], index: 26, kind: input, shape index: {}]   ;;  %s13908_s27 = inlined_call_operand.vmem [shape: f32[1,10,2], index: 27, kind: output, shape index: {}]  }
   0x1   :  { %13912 = sst [smem:[#allocation60_spill]] %s13881_s0 }
   0x2   :  { %13913 = sst [smem:[#allocation61_spill]] %s13882_s1 }
   0x3   :  { %13914 = sst [smem:[#allocation62_spill]] %s13883_s2 }
   0x4   :  { %13915 = sst [smem:[#allocation63_spill]] %s13884_s3 }
   0x5   :  { %13916 = sst [smem:[#allocation64_spill]] %s13885_s4 }
   0x6   :  { %13917 = sst [smem:[#allocation65_spill]] %s13886_s5 }
   0x7   :  { %13918 = sst [smem:[#allocation66_spill]] %s13887_s6 }
   0x8   :  { %13919 = sst [smem:[#allocation67_spill]] %s13888_s7 }
   0x9   :  { %13920 = sst [smem:[#allocation68_spill]] %s13889_s8 }
   0xa   :  { %13921 = sst [smem:[#allocation69_spill]] %s13890_s9 }
   0xb   :  { %13922 = sst [smem:[#allocation70_spill]] %s13891_s10 }
   0xc   :  { %13923 = sst [smem:[#allocation71_spill]] %s13892_s11 }
   0xd   :  { %13924 = sst [smem:[#allocation72_spill]] %s13905_s24 }
   0xe   :  { %13925 = sst [smem:[#allocation73_spill]] %s13908_s27 }
   0xf   :  { %32 = vsyncpa [#allocation3], 0 }
  0x10   :  { %33 = vsyncpa [#allocation5], 0 }
  0x11   :  { %34 = vsyncpa [#allocation8], 0 }
  0x12   :  { %35 = vsyncpa [#allocation11], 0 }
  0x13   :  { %36 = vsyncpa [#allocation14], 0 }
  0x14   :  { %37 = vsyncpa [#allocation17], 0 }
  0x15   :  { %38 = vsyncpa [#allocation20], 0 }
  0x16   :  { %39 = vsyncpa [#allocation23], 0 }
  0x17   :  { %40 = vsyncpa [#allocation26], 0 }
  0x18   :  { %41 = vsyncpa [#allocation29], 0 }
  0x19   :  { %42 = vsyncpa [#allocation32], 0 }
  0x1a   :  { %43 = vsyncpa [#allocation35], 0  ;;  %s11976_s7 = smov [#allocation4]   ;;  %s11977_s8 = smov [#allocation7]  }
  0x1b   :  { %s63_s4 = sshll.u32 %s11976_s7, 4  ;;  %s87_s30 = sshll.u32 %s11977_s8, 4  ;;  %s64_s4 = int_to_ptr.vmem [resolvable:$true] %s63_s4  ;;  %s88_s30 = int_to_ptr.vmem [resolvable:$true] %s87_s30 }
  0x1c   :  { %s11520_s9 = scalar_lea.vmem %s64_s4, 3072  ;;  %p11525_p1 = scmp.lt.s32.totalorder %s64_s4, %s64_s4 }
  0x1d   :  { %p11521_p0 = scmp.ne.s32.totalorder %s64_s4, %s11520_s9  ;;  %p11526_p2 = scmp.lt.s32.totalorder %s11520_s9, %s11520_s9 }
  0x1f   :  { %p11527_p3 = por %p11526_p2, %p11525_p1 }
  0x21   :  { %p11528_p4 = pnand %p11527_p3, %p11521_p0 }
  0x23   :  { %11531 = shalt.err (!%p11528_p4)
}
  0x24   :  { %s11978_s5 = smov 128   ;;  %s11979_s28 = smov 8  }
  0x25   :  { %s13926_s29 = sld [smem:[#allocation62_spill]]  ;;  %s11540_s1 = scalar_lea.vmem %s88_s30, 12288 }
  0x26   :  { %p11541_p5 = scmp.ne.s32.totalorder %s88_s30, %s11540_s1  ;;  %p11545_p6 = scmp.lt.s32.totalorder %s88_s30, %s88_s30 }
  0x27   :  { %p11546_p7 = scmp.lt.s32.totalorder %s11540_s1, %s11540_s1 }
  0x29   :  { %p11547_p8 = por %p11546_p7, %p11545_p6 }
  0x2b   :  { %69 = dma.hbm_to_vmem [thread:$0]  %s13926_s29, 3072, %s64_s4, [#allocation5], %s11978_s5, %s11978_s5, %s11979_s28  }
  0x2c   :  { %p11548_p9 = pnand %p11547_p8, %p11541_p5 }
  0x2e   :  { %11551 = shalt.err (!%p11548_p9)
}
  0x2f   :  { %s11980_s6 = smov 256   ;;  %s11981_s11 = smov 16  }
  0x30   :  { %s13927_s7 = sld [smem:[#allocation64_spill]]  ;;  %s11982_s8 = smov [#allocation10]  }
  0x31   :  { %s111_s9 = sshll.u32 %s11982_s8, 4  ;;  %s11983_s27 = smov [#allocation13]   ;;  %s112_s9 = int_to_ptr.vmem [resolvable:$true] %s111_s9 }
  0x32   :  { %s135_s24 = sshll.u32 %s11983_s27, 4  ;;  %s11560_s4 = scalar_lea.vmem %s112_s9, 2048  ;;  %s136_s24 = int_to_ptr.vmem [resolvable:$true] %s135_s24 }
  0x33   :  { %p11561_p10 = scmp.ne.s32.totalorder %s112_s9, %s11560_s4  ;;  %p11565_p11 = scmp.lt.s32.totalorder %s112_s9, %s112_s9 }
  0x34   :  { %p11566_p12 = scmp.lt.s32.totalorder %s11560_s4, %s11560_s4 }
  0x36   :  { %93 = dma.hbm_to_vmem [thread:$0]  %s13927_s7, 12288, %s88_s30, [#allocation8], %s11980_s6, %s11980_s6, %s11981_s11  }
  0x37   :  { %p11567_p13 = por %p11566_p12, %p11565_p11 }
  0x39   :  { %p11568_p0 = pnand %p11567_p13, %p11561_p10 }
  0x3b   :  { %11571 = shalt.err (!%p11568_p0)
}
  0x3c   :  { %s13928_s29 = sld [smem:[#allocation66_spill]]  ;;  %s11580_s30 = scalar_lea.vmem %s136_s24, 1024 }
  0x3d   :  { %p11581_p1 = scmp.ne.s32.totalorder %s136_s24, %s11580_s30  ;;  %p11585_p2 = scmp.lt.s32.totalorder %s136_s24, %s136_s24 }
  0x3e   :  { %p11586_p3 = scmp.lt.s32.totalorder %s11580_s30, %s11580_s30 }
  0x40   :  { %p11587_p4 = por %p11586_p3, %p11585_p2 }
  0x42   :  { %117 = dma.hbm_to_vmem [thread:$0]  %s13928_s29, 2048, %s112_s9, [#allocation11], %s11978_s5, %s11978_s5, %s11979_s28  }
  0x43   :  { %p11588_p5 = pnand %p11587_p4, %p11581_p1 }
  0x45   :  { %11591 = shalt.err (!%p11588_p5)
}
  0x46   :  { %s13929_s6 = sld [smem:[#allocation68_spill]]  ;;  %s11984_s11 = smov [#allocation16]  }
  0x47   :  { %s159_s2 = sshll.u32 %s11984_s11, 4  ;;  %s11985_s3 = smov [#allocation19]   ;;  %s160_s2 = int_to_ptr.vmem [resolvable:$true] %s159_s2 }
  0x48   :  { %s183_s7 = sshll.u32 %s11985_s3, 4  ;;  %s11600_s8 = scalar_lea.vmem %s160_s2, 768  ;;  %s184_s7 = int_to_ptr.vmem [resolvable:$true] %s183_s7 }
  0x49   :  { %p11601_p6 = scmp.ne.s32.totalorder %s160_s2, %s11600_s8  ;;  %p11605_p7 = scmp.lt.s32.totalorder %s160_s2, %s160_s2 }
  0x4a   :  { %p11606_p8 = scmp.lt.s32.totalorder %s11600_s8, %s11600_s8 }
  0x4c   :  { %141 = dma.hbm_to_vmem [thread:$0]  %s13929_s6, 1024, %s136_s24, [#allocation14], %s11978_s5, %s11978_s5, %s11979_s28  }
  0x4d   :  { %p11607_p9 = por %p11606_p8, %p11605_p7 }
  0x4f   :  { %p11608_p10 = pnand %p11607_p9, %p11601_p6 }
  0x51   :  { %11611 = shalt.err (!%p11608_p10)
}
  0x52   :  { %s13930_s0 = sld [smem:[#allocation70_spill]]  ;;  %s11620_s24 = scalar_lea.vmem %s184_s7, 3072 }
  0x53   :  { %p11621_p11 = scmp.ne.s32.totalorder %s184_s7, %s11620_s24  ;;  %p11625_p12 = scmp.lt.s32.totalorder %s184_s7, %s184_s7 }
  0x54   :  { %p11626_p13 = scmp.lt.s32.totalorder %s11620_s24, %s11620_s24 }
  0x56   :  { %p11627_p0 = por %p11626_p13, %p11625_p12 }
  0x58   :  { %165 = dma.hbm_to_vmem [thread:$0]  %s13930_s0, 768, %s160_s2, [#allocation17], %s11978_s5, %s11978_s5, %s11979_s28  }
  0x59   :  { %p11628_p1 = pnand %p11627_p0, %p11621_p11 }
  0x5b   :  { %11631 = shalt.err (!%p11628_p1)
}
  0x5c   :  { %189 = dma.hbm_to_vmem [thread:$0]  %s13893_s12, 3072, %s184_s7, [#allocation20], %s11978_s5, %s11978_s5, %s11979_s28  }
  0x5d   :  { %s11986_s30 = smov [#allocation22]   ;;  %s11987_s1 = smov [#allocation25]  }
  0x5e   :  { %s207_s27 = sshll.u32 %s11986_s30, 4  ;;  %s233_s6 = sshll.u32 %s11987_s1, 4  ;;  %s208_s27 = int_to_ptr.vmem [resolvable:$true] %s207_s27  ;;  %s234_s6 = int_to_ptr.vmem [resolvable:$true] %s233_s6 }
  0x5f   :  { %s11640_s11 = scalar_lea.vmem %s208_s27, 1024  ;;  %p11645_p3 = scmp.lt.s32.totalorder %s208_s27, %s208_s27 }
  0x60   :  { %p11641_p2 = scmp.ne.s32.totalorder %s208_s27, %s11640_s11  ;;  %p11646_p4 = scmp.lt.s32.totalorder %s11640_s11, %s11640_s11 }
  0x62   :  { %p11647_p5 = por %p11646_p4, %p11645_p3 }
  0x64   :  { %p11648_p6 = pnand %p11647_p5, %p11641_p2 }
  0x66   :  { %11651 = shalt.err (!%p11648_p6)
}
  0x67   :  { %213 = dma.hbm_to_vmem [thread:$0]  %s13895_s14, 1024, %s208_s27, [#allocation23], %s11978_s5, %s11978_s5, %s11979_s28  }
  0x68   :  { %s11660_s12 = scalar_lea.vmem %s234_s6, 3072  ;;  %p11665_p8 = scmp.lt.s32.totalorder %s234_s6, %s234_s6 }
  0x69   :  { %p11661_p7 = scmp.ne.s32.totalorder %s234_s6, %s11660_s12  ;;  %p11666_p9 = scmp.lt.s32.totalorder %s11660_s12, %s11660_s12 }
  0x6b   :  { %p11667_p10 = por %p11666_p9, %p11665_p8 }
  0x6d   :  { %p11668_p11 = pnand %p11667_p10, %p11661_p7 }
  0x6f   :  { %11671 = shalt.err (!%p11668_p11)
}
  0x70   :  { %239 = dma.hbm_to_vmem [thread:$0]  %s13898_s17, 3072, %s234_s6, [#allocation26], %s11978_s5, %s11978_s5, %s11979_s28  }
  0x71   :  { %s11988_s9 = smov [#allocation28]   ;;  %s11989_s0 = smov [#allocation31]  }
  0x72   :  { %s257_s4 = sshll.u32 %s11988_s9, 4  ;;  %s283_s24 = sshll.u32 %s11989_s0, 4  ;;  %s258_s4 = int_to_ptr.vmem [resolvable:$true] %s257_s4  ;;  %s284_s24 = int_to_ptr.vmem [resolvable:$true] %s283_s24 }
  0x73   :  { %s11680_s14 = scalar_lea.vmem %s258_s4, 1024  ;;  %p11685_p13 = scmp.lt.s32.totalorder %s258_s4, %s258_s4 }
  0x74   :  { %p11681_p12 = scmp.ne.s32.totalorder %s258_s4, %s11680_s14  ;;  %p11686_p0 = scmp.lt.s32.totalorder %s11680_s14, %s11680_s14 }
  0x76   :  { %p11687_p1 = por %p11686_p0, %p11685_p13 }
  0x78   :  { %p11688_p2 = pnand %p11687_p1, %p11681_p12 }
  0x7a   :  { %11691 = shalt.err (!%p11688_p2)
}
  0x7b   :  { %263 = dma.hbm_to_vmem [thread:$0]  %s13900_s19, 1024, %s258_s4, [#allocation29], %s11978_s5, %s11978_s5, %s11979_s28  }
  0x7c   :  { %s11700_s17 = scalar_lea.vmem %s284_s24, 1024  ;;  %p11705_p4 = scmp.lt.s32.totalorder %s284_s24, %s284_s24 }
  0x7d   :  { %p11701_p3 = scmp.ne.s32.totalorder %s284_s24, %s11700_s17  ;;  %p11706_p5 = scmp.lt.s32.totalorder %s11700_s17, %s11700_s17 }
  0x7f   :  { %p11707_p6 = por %p11706_p5, %p11705_p4 }
  0x81   :  { %p11708_p7 = pnand %p11707_p6, %p11701_p3 }
  0x83   :  { %11711 = shalt.err (!%p11708_p7)
}
  0x84   :  { %289 = dma.hbm_to_vmem [thread:$0]  %s13903_s22, 1024, %s284_s24, [#allocation32], %s11978_s5, %s11978_s5, %s11979_s28  }
  0x85   :  { %s11990_s1 = smov [#allocation2]   ;;  %s11991_s11 = smov [#allocation6]  }
  0x86   :  { %s51_s6 = sshll.u32 %s11990_s1, 4  ;;  %s75_s2 = sshll.u32 %s11991_s11, 4  ;;  %s52_s6 = int_to_ptr.vmem [resolvable:$true] %s51_s6  ;;  %s76_s2 = int_to_ptr.vmem [resolvable:$true] %s75_s2 }
  0x87   :  { %s11720_s19 = scalar_lea.vmem %s52_s6, 12288  ;;  %p11725_p9 = scmp.lt.s32.totalorder %s52_s6, %s52_s6 }
  0x88   :  { %p11721_p8 = scmp.ne.s32.totalorder %s52_s6, %s11720_s19  ;;  %p11726_p10 = scmp.lt.s32.totalorder %s11720_s19, %s11720_s19 }
  0x8a   :  { %p11727_p11 = por %p11726_p10, %p11725_p9 }
  0x8c   :  { %p11728_p12 = pnand %p11727_p11, %p11721_p8 }
  0x8e   :  { %11731 = shalt.err (!%p11728_p12)
}
  0x8f   :  { %s13931_s7 = sld [smem:[#allocation61_spill]]  ;;  %s11740_s22 = scalar_lea.vmem %s76_s2, 4096 }
  0x90   :  { %p11741_p13 = scmp.ne.s32.totalorder %s76_s2, %s11740_s22  ;;  %p11745_p0 = scmp.lt.s32.totalorder %s76_s2, %s76_s2 }
  0x91   :  { %p11746_p1 = scmp.lt.s32.totalorder %s11740_s22, %s11740_s22 }
  0x93   :  { %p11747_p2 = por %p11746_p1, %p11745_p0 }
  0x95   :  { %57 = dma.hbm_to_vmem [thread:$0]  %s13931_s7, 12288, %s52_s6, [#allocation3], %s11978_s5, %s11978_s5, %s11979_s28  }
  0x96   :  { %p11748_p3 = pnand %p11747_p2, %p11741_p13 }
  0x98   :  { %11751 = shalt.err (!%p11748_p3)
}
  0x99   :  { %s13932_s4 = sld [smem:[#allocation63_spill]]  ;;  %s11992_s0 = smov [#allocation9]  }
  0x9a   :  { %s99_s24 = sshll.u32 %s11992_s0, 4  ;;  %s11993_s14 = smov [#allocation12]   ;;  %s100_s24 = int_to_ptr.vmem [resolvable:$true] %s99_s24 }
  0x9b   :  { %s123_s10 = sshll.u32 %s11993_s14, 4  ;;  %s11760_s29 = scalar_lea.vmem %s100_s24, 3072  ;;  %s124_s10 = int_to_ptr.vmem [resolvable:$true] %s123_s10 }
  0x9c   :  { %p11761_p4 = scmp.ne.s32.totalorder %s100_s24, %s11760_s29  ;;  %p11765_p5 = scmp.lt.s32.totalorder %s100_s24, %s100_s24 }
  0x9d   :  { %p11766_p6 = scmp.lt.s32.totalorder %s11760_s29, %s11760_s29 }
  0x9f   :  { %81 = dma.hbm_to_vmem [thread:$0]  %s13932_s4, 4096, %s76_s2, [#allocation5], %s11978_s5, %s11978_s5, %s11979_s28  }
  0xa0   :  { %p11767_p7 = por %p11766_p6, %p11765_p5 }
  0xa2   :  { %p11768_p8 = pnand %p11767_p7, %p11761_p4 }
  0xa4   :  { %11771 = shalt.err (!%p11768_p8)
}
  0xa5   :  { %s13933_s27 = sld [smem:[#allocation65_spill]]  ;;  %s11780_s1 = scalar_lea.vmem %s124_s10, 2048 }
  0xa6   :  { %p11781_p9 = scmp.ne.s32.totalorder %s124_s10, %s11780_s1  ;;  %p11785_p10 = scmp.lt.s32.totalorder %s124_s10, %s124_s10 }
  0xa7   :  { %p11786_p11 = scmp.lt.s32.totalorder %s11780_s1, %s11780_s1 }
  0xa9   :  { %p11787_p12 = por %p11786_p11, %p11785_p10 }
  0xab   :  { %105 = dma.hbm_to_vmem [thread:$0]  %s13933_s27, 3072, %s100_s24, [#allocation8], %s11978_s5, %s11978_s5, %s11979_s28  }
  0xac   :  { %p11788_p13 = pnand %p11787_p12, %p11781_p9 }
  0xae   :  { %11791 = shalt.err (!%p11788_p13)
}
  0xaf   :  { %s13934_s2 = sld [smem:[#allocation67_spill]]  ;;  %s11994_s19 = smov [#allocation15]  }
  0xb0   :  { %s147_s3 = sshll.u32 %s11994_s19, 4  ;;  %s11995_s12 = smov [#allocation18]   ;;  %s148_s3 = int_to_ptr.vmem [resolvable:$true] %s147_s3 }
  0xb1   :  { %s171_s7 = sshll.u32 %s11995_s12, 4  ;;  %s11800_s22 = scalar_lea.vmem %s148_s3, 6144  ;;  %s172_s7 = int_to_ptr.vmem [resolvable:$true] %s171_s7 }
  0xb2   :  { %p11801_p0 = scmp.ne.s32.totalorder %s148_s3, %s11800_s22  ;;  %p11805_p1 = scmp.lt.s32.totalorder %s148_s3, %s148_s3 }
  0xb3   :  { %p11806_p2 = scmp.lt.s32.totalorder %s11800_s22, %s11800_s22 }
  0xb5   :  { %129 = dma.hbm_to_vmem [thread:$0]  %s13934_s2, 2048, %s124_s10, [#allocation11], %s11978_s5, %s11978_s5, %s11979_s28  }
  0xb6   :  { %p11807_p3 = por %p11806_p2, %p11805_p1 }
  0xb8   :  { %p11808_p4 = pnand %p11807_p3, %p11801_p0 }
  0xba   :  { %11811 = shalt.err (!%p11808_p4)
}
  0xbb   :  { %s13935_s4 = sld [smem:[#allocation69_spill]]  ;;  %s11820_s0 = scalar_lea.vmem %s172_s7, 2048 }
  0xbc   :  { %p11821_p5 = scmp.ne.s32.totalorder %s172_s7, %s11820_s0  ;;  %p11825_p6 = scmp.lt.s32.totalorder %s172_s7, %s172_s7 }
  0xbd   :  { %p11826_p7 = scmp.lt.s32.totalorder %s11820_s0, %s11820_s0 }
  0xbf   :  { %p11827_p8 = por %p11826_p7, %p11825_p6 }
  0xc1   :  { %153 = dma.hbm_to_vmem [thread:$0]  %s13935_s4, 6144, %s148_s3, [#allocation14], %s11978_s5, %s11978_s5, %s11979_s28  }
  0xc2   :  { %p11828_p9 = pnand %p11827_p8, %p11821_p5 }
  0xc4   :  { %11831 = shalt.err (!%p11828_p9)
}
  0xc5   :  { %s13936_s10 = sld [smem:[#allocation71_spill]]  ;;  %s11996_s29 = smov [#allocation21]  }
  0xc6   :  { %s195_s17 = sshll.u32 %s11996_s29, 4  ;;  %s11997_s30 = smov [#allocation24]   ;;  %s196_s17 = int_to_ptr.vmem [resolvable:$true] %s195_s17 }
  0xc7   :  { %s221_s27 = sshll.u32 %s11997_s30, 4  ;;  %s11840_s1 = scalar_lea.vmem %s196_s17, 768  ;;  %s222_s27 = int_to_ptr.vmem [resolvable:$true] %s221_s27 }
  0xc8   :  { %p11841_p10 = scmp.ne.s32.totalorder %s196_s17, %s11840_s1  ;;  %p11845_p11 = scmp.lt.s32.totalorder %s196_s17, %s196_s17 }
  0xc9   :  { %p11846_p12 = scmp.lt.s32.totalorder %s11840_s1, %s11840_s1 }
  0xcb   :  { %177 = dma.hbm_to_vmem [thread:$0]  %s13936_s10, 2048, %s172_s7, [#allocation17], %s11978_s5, %s11978_s5, %s11979_s28  }
  0xcc   :  { %p11847_p13 = por %p11846_p12, %p11845_p11 }
  0xce   :  { %p11848_p0 = pnand %p11847_p13, %p11841_p10 }
  0xd0   :  { %11851 = shalt.err (!%p11848_p0)
}
  0xd1   :  { %201 = dma.hbm_to_vmem [thread:$0]  %s13894_s13, 768, %s196_s17, [#allocation20], %s11978_s5, %s11978_s5, %s11979_s28  }
  0xd2   :  { %s11860_s2 = scalar_lea.vmem %s222_s27, 256  ;;  %p11865_p2 = scmp.lt.s32.totalorder %s222_s27, %s222_s27 }
  0xd3   :  { %p11861_p1 = scmp.ne.s32.totalorder %s222_s27, %s11860_s2  ;;  %p11866_p3 = scmp.lt.s32.totalorder %s11860_s2, %s11860_s2 }
  0xd5   :  { %p11867_p4 = por %p11866_p3, %p11865_p2 }
  0xd7   :  { %p11868_p5 = pnand %p11867_p4, %p11861_p1 }
  0xd9   :  { %11871 = shalt.err (!%p11868_p5)
}
  0xda   :  { %227 = dma.hbm_to_vmem [thread:$0]  %s13897_s16, 256, %s222_s27, [#allocation23], %s11978_s5, %s11978_s5, %s11979_s28  }
  0xdb   :  { %s11998_s12 = smov [#allocation27]  }
  0xdc   :  { %s245_s7 = sshll.u32 %s11998_s12, 4  ;;  %s246_s7 = int_to_ptr.vmem [resolvable:$true] %s245_s7 }
  0xdd   :  { %s11880_s22 = scalar_lea.vmem %s246_s7, 192  ;;  %p11885_p7 = scmp.lt.s32.totalorder %s246_s7, %s246_s7 }
  0xde   :  { %p11881_p6 = scmp.ne.s32.totalorder %s246_s7, %s11880_s22  ;;  %p11886_p8 = scmp.lt.s32.totalorder %s11880_s22, %s11880_s22 }
  0xe0   :  { %p11887_p9 = por %p11886_p8, %p11885_p7 }
  0xe2   :  { %p11888_p10 = pnand %p11887_p9, %p11881_p6 }
  0xe4   :  { %11891 = shalt.err (!%p11888_p10)
}
  0xe5   :  { %s11999_s13 = smov 64   ;;  %s12000_s8 = smov 4  }
  0xe6   :  { %251 = dma.hbm_to_vmem [thread:$0]  %s13899_s18, 192, %s246_s7, [#allocation26], %s11999_s13, %s11999_s13, %s12000_s8  }
  0xe7   :  { %s12001_s0 = smov [#allocation30]   ;;  %s12002_s16 = smov [#allocation33]  }
  0xe8   :  { %s271_s24 = sshll.u32 %s12001_s0, 4  ;;  %s299_s14 = sshll.u32 %s12002_s16, 4  ;;  %s272_s24 = int_to_ptr.vmem [resolvable:$true] %s271_s24  ;;  %s300_s14 = int_to_ptr.vmem [resolvable:$true] %s299_s14 }
  0xe9   :  { %s11900_s10 = scalar_lea.vmem %s272_s24, 192  ;;  %p11905_p12 = scmp.lt.s32.totalorder %s272_s24, %s272_s24 }
  0xea   :  { %p11901_p11 = scmp.ne.s32.totalorder %s272_s24, %s11900_s10  ;;  %p11906_p13 = scmp.lt.s32.totalorder %s11900_s10, %s11900_s10 }
  0xec   :  { %p11907_p0 = por %p11906_p13, %p11905_p12 }
  0xee   :  { %p11908_p1 = pnand %p11907_p0, %p11901_p11 }
  0xf0   :  { %11911 = shalt.err (!%p11908_p1)
}
  0xf1   :  { %277 = dma.hbm_to_vmem [thread:$0]  %s13902_s21, 192, %s272_s24, [#allocation29], %s11999_s13, %s11999_s13, %s12000_s8  }
  0xf2   :  { %s11920_s30 = scalar_lea.vmem %s300_s14, 256  ;;  %p11925_p3 = scmp.lt.s32.totalorder %s300_s14, %s300_s14 }
  0xf3   :  { %p11921_p2 = scmp.ne.s32.totalorder %s300_s14, %s11920_s30  ;;  %p11926_p4 = scmp.lt.s32.totalorder %s11920_s30, %s11920_s30 }
  0xf5   :  { %p11927_p5 = por %p11926_p4, %p11925_p3 }
  0xf7   :  { %p11928_p6 = pnand %p11927_p5, %p11921_p2 }
  0xf9   :  { %11931 = shalt.err (!%p11928_p6)
}
  0xfa   :  { %305 = dma.hbm_to_vmem [thread:$0]  %s13906_s25, 256, %s300_s14, [#allocation32], %s11978_s5, %s11978_s5, %s11979_s28  }
  0xfb   :  { %s12003_s1 = smov [#allocation34]  }
  0xfc   :  { %s311_s6 = sshll.u32 %s12003_s1, 4  ;;  %s312_s6 = int_to_ptr.vmem [resolvable:$true] %s311_s6 }
  0xfd   :  { %s11940_s11 = scalar_lea.vmem %s312_s6, 256  ;;  %p11945_p8 = scmp.lt.s32.totalorder %s312_s6, %s312_s6 }
  0xfe   :  { %p11941_p7 = scmp.ne.s32.totalorder %s312_s6, %s11940_s11  ;;  %p11946_p9 = scmp.lt.s32.totalorder %s11940_s11, %s11940_s11 }
 0x100   :  { %p11947_p10 = por %p11946_p9, %p11945_p8 }
 0x102   :  { %p11948_p11 = pnand %p11947_p10, %p11941_p7 }
 0x104   :  { %11951 = shalt.err (!%p11948_p11)
}
 0x105   :  { %317 = dma.hbm_to_vmem [thread:$0]  %s13907_s26, 256, %s312_s6, [#allocation35], %s11978_s5, %s11978_s5, %s11979_s28  }
 0x106   :  { %11952 = dma.done.wait [#allocation3], 12288  }
 0x107   :  { %11953 = vsyncadd [#allocation3], 4294955008 }
 0x108   :  { %11954 = dma.done.wait [#allocation5], 7168  }
 0x109   :  { %11955 = vsyncadd [#allocation5], 4294960128 }
 0x10a   :  { %11956 = dma.done.wait [#allocation8], 15360  }
 0x10b   :  { %11957 = vsyncadd [#allocation8], 4294951936 }
 0x10c   :  { %11958 = dma.done.wait [#allocation11], 4096  }
 0x10d   :  { %11959 = vsyncadd [#allocation11], 4294963200 }
 0x10e   :  { %11960 = dma.done.wait [#allocation14], 7168  }
 0x10f   :  { %11961 = vsyncadd [#allocation14], 4294960128 }
 0x110   :  { %11962 = dma.done.wait [#allocation17], 2816  }
 0x111   :  { %11963 = vsyncadd [#allocation17], 4294964480 }
 0x112   :  { %11964 = dma.done.wait [#allocation20], 3840  }
 0x113   :  { %11965 = vsyncadd [#allocation20], 4294963456 }
 0x114   :  { %11966 = dma.done.wait [#allocation23], 1280  }
 0x115   :  { %11967 = vsyncadd [#allocation23], 4294966016 }
 0x116   :  { %11968 = dma.done.wait [#allocation26], 3264  }
 0x117   :  { %11969 = vsyncadd [#allocation26], 4294964032 }
 0x118   :  { %11970 = dma.done.wait [#allocation29], 1216  }
 0x119   :  { %11971 = vsyncadd [#allocation29], 4294966080 }
 0x11a   :  { %11972 = dma.done.wait [#allocation32], 1280  }
 0x11b   :  { %11973 = vsyncadd [#allocation32], 4294966016 }
 0x11c   :  { %11974 = dma.done.wait [#allocation35], 256  }
 0x11d   :  { %11975 = vsyncadd [#allocation35], 4294967040  ;;  %v427_v0 = vld [vmem:[#allocation4 + $0x38] sm:$0xff]  ;;  %v426_v1 = vld [vmem:[#allocation4 + $0x30] sm:$0xff]  ;;  %vm428_vm0 = vcmask 523264   ;;  %s13937_s5 = sld [smem:[#allocation60_spill]] }
 0x11e   :  { %10196 = vmatprep.subr.mxu0 %v427_v0  ;;  %v425_v2 = vld [vmem:[#allocation4 + $0x28] sm:$0xff]  ;;  %v424_v4 = vld [vmem:[#allocation4 + $0x20] sm:$0xff]  ;;  %v423_v5 = vld [vmem:[#allocation4 + $0x18] sm:$0xff]  ;;  %vm558_vm1 = vcmask 261120   ;;  %v12004_v22 = vmov 0   ;;  %vm4058_vm2 = vcmask 130048  }
 0x11f   :  { %10197 = vmatpush3.msra.mxu0 %v427_v0  ;;  %v422_v6 = vld [vmem:[#allocation4 + $0x10] sm:$0xff]  ;;  %v421_v7 = vld [vmem:[#allocation4 + $0x8] sm:$0xff]  ;;  %v420_v8 = vld [vmem:[#allocation4] sm:$0xff]  ;;  %11504 = vset.pattern.permute.xlu0 %v12004_v22  ;;  %vm6297_vm3 = vcmask 64512   ;;  %vm6508_vm4 = vcmask 1043456   ;;  %vm6495_vm5 = vcmask 31744  }
 0x120   :  { %10198 = vmatprep.subr.mxu0 %v426_v1  ;;  %v1080_v10 = vld [vmem:[#allocation4 + $0x78] sm:$0xff]  ;;  %v1079_v12 = vld [vmem:[#allocation4 + $0x70] sm:$0xff]  ;;  %v1078_v14 = vld [vmem:[#allocation4 + $0x68] sm:$0xff]  ;;  %11505 = vset.pattern.permute.xlu1 %v12004_v22  ;;  %s13966_s28 = sld [smem:[#allocation72_spill]]  ;;  %vm8655_vm6 = vcmask 9216   ;;  %vm8653_vm7 = vcmask 15360  }
 0x121   :  { %10199 = vmatpush3.msra.mxu0 %v426_v1  ;;  %v1077_v15 = vld [vmem:[#allocation4 + $0x60] sm:$0xff]  ;;  %v1076_v16 = vld [vmem:[#allocation4 + $0x58] sm:$0xff]  ;;  %v1075_v17 = vld [vmem:[#allocation4 + $0x50] sm:$0xff]  ;;  %s13967_s7 = sld [smem:[#allocation73_spill]] }
 0x122   :  { %10200 = vmatprep.subr.mxu0 %v425_v2  ;;  %v1074_v18 = vld [vmem:[#allocation4 + $0x48] sm:$0xff]  ;;  %v1073_v19 = vld [vmem:[#allocation4 + $0x40] sm:$0xff]  ;;  %v390_v24 = vld [vmem:[#allocation6 + $0x10] sm:$0xff] }
 0x123   :  { %v12271_v3 = vld [vmem:[%s13937_s5] sm:$0xff]  ;;  %10201 = vmatpush3.msra.mxu0 %v425_v2  ;;  %v12278_v9 = vld [vmem:[%s13937_s5 + $0x8] sm:$0xff]  ;;  %v12283_v11 = vld [vmem:[%s13937_s5 + $0x10] sm:$0xff]  ;;  %892 = vperm.xlu1 %11505, %v390_v24  }
 0x124   :  { %10212 = vmatprep.mubr.msk.f32.mxu0 %vm428_vm0, %v12271_v3  ;;  %10202 = vmatprep.subr.mxu0 %v424_v4  ;;  %v12292_v13 = vld [vmem:[%s13937_s5 + $0x18] sm:$0xff]  ;;  %v526_v20 = vld [vmem:[#allocation2] sm:$0xff]  ;;  %v389_v25 = vld [vmem:[#allocation6 + $0x8] sm:$0xff] }
 0x125   :  { %10203 = vmatpush3.msra.mxu0 %v424_v4  ;;  %10226 = vmatprep.mubr.msk.f32.mxu1 %vm558_vm1, %v526_v20  ;;  %v1167_v21 = vld [vmem:[#allocation2 + $0x100] sm:$0xff]  ;;  %v391_v26 = vld [vmem:[#allocation6 + $0x18] sm:$0xff]  ;;  %v393_v27 = vld [vmem:[#allocation6 + $0x28] sm:$0xff] }
 0x126   :  { %10204 = vmatprep.subr.mxu0 %v423_v5  ;;  %v388_v23 = vld [vmem:[#allocation6] sm:$0xff]  ;;  %v395_v29 = vld [vmem:[#allocation6 + $0x38] sm:$0xff]  ;;  %v394_v30 = vld [vmem:[#allocation6 + $0x30] sm:$0xff] }
 0x127   :  { %10205 = vmatpush3.msra.mxu0 %v423_v5  ;;  %882 = vperm.xlu0 %11504, %v388_v23   ;;  %v392_v28 = vld [vmem:[#allocation6 + $0x20] sm:$0xff]  ;;  %v397_v31 = vld [vmem:[#allocation6 + $0x48] sm:$0xff]  ;;  %v399_v33 = vld [vmem:[#allocation6 + $0x58] sm:$0xff] }
 0x128   :  { %10206 = vmatprep.subr.mxu0 %v422_v6  ;;  %897 = vperm.xlu1 %11505, %v391_v26   ;;  %v396_v32 = vld [vmem:[#allocation6 + $0x40] sm:$0xff]  ;;  %v398_v34 = vld [vmem:[#allocation6 + $0x50] sm:$0xff]  ;;  %v401_v35 = vld [vmem:[#allocation6 + $0x68] sm:$0xff] }
 0x129   :  { %10207 = vmatpush3.msra.mxu0 %v422_v6  ;;  %v400_v36 = vld [vmem:[#allocation6 + $0x60] sm:$0xff]  ;;  %v403_v37 = vld [vmem:[#allocation6 + $0x78] sm:$0xff]  ;;  %v402_v38 = vld [vmem:[#allocation6 + $0x70] sm:$0xff] }
 0x12a   :  { %10208 = vmatprep.subr.mxu0 %v421_v7  ;;  %v405_v39 = vld [vmem:[#allocation6 + $0x88] sm:$0xff]  ;;  %v404_v40 = vld [vmem:[#allocation6 + $0x80] sm:$0xff]  ;;  %v407_v41 = vld [vmem:[#allocation6 + $0x98] sm:$0xff] }
 0x12b   :  { %10209 = vmatpush3.msra.mxu0 %v421_v7  ;;  %887 = vperm.xlu0 %11504, %v389_v25   ;;  %v406_v42 = vld [vmem:[#allocation6 + $0x90] sm:$0xff]  ;;  %v409_v43 = vld [vmem:[#allocation6 + $0xa8] sm:$0xff]  ;;  %v408_v44 = vld [vmem:[#allocation6 + $0xa0] sm:$0xff] }
 0x12c   :  { %10210 = vmatprep.subr.mxu0 %v420_v8  ;;  %907 = vperm.xlu1 %11505, %v393_v27   ;;  %v411_v45 = vld [vmem:[#allocation6 + $0xb8] sm:$0xff]  ;;  %v410_v46 = vld [vmem:[#allocation6 + $0xb0] sm:$0xff]  ;;  %v413_v47 = vld [vmem:[#allocation6 + $0xc8] sm:$0xff] }
 0x12d   :  { %10211 = vmatpush3.msra.mxu0 %v420_v8  ;;  %v412_v48 = vld [vmem:[#allocation6 + $0xc0] sm:$0xff]  ;;  %v415_v51 = vld [vmem:[#allocation6 + $0xd8] sm:$0xff]  ;;  %v414_v53 = vld [vmem:[#allocation6 + $0xd0] sm:$0xff] }
 0x12e   :  { %10213 = vmatmul.mubr.msk.f32.vlgmr.msra.gmra.mxu0 %vm428_vm0, %v12278_v9  ;;  %10274 = vmatprep.subr.mxu0 %v1080_v10  ;;  %v417_v55 = vld [vmem:[#allocation6 + $0xe8] sm:$0xff]  ;;  %v416_v56 = vld [vmem:[#allocation6 + $0xe0] sm:$0xff]  ;;  %v1560_v58 = vld [vmem:[#allocation4 + $0xb8] sm:$0xff] }
 0x12f   :  { %10275 = vmatpush3.msra.mxu0 %v1080_v10  ;;  %10215 = vmatprep.mubr.msk.f32.mxu0 %vm428_vm0, %v12283_v11  ;;  %v527_v57 = vld [vmem:[#allocation2 + $0x8] sm:$0xff]  ;;  %v528_v59 = vld [vmem:[#allocation2 + $0x10] sm:$0xff]  ;;  %v419_v61 = vld [vmem:[#allocation6 + $0xf8] sm:$0xff] }
 0x130   :  { %10276 = vmatprep.subr.mxu0 %v1079_v12  ;;  %902 = vperm.xlu0 %11504, %v392_v28   ;;  %v1559_v60 = vld [vmem:[#allocation4 + $0xb0] sm:$0xff]  ;;  %v529_v63 = vld [vmem:[#allocation2 + $0x18] sm:$0xff]  ;;  %v1558_v0 = vld [vmem:[#allocation4 + $0xa8] sm:$0xff] }
 0x131   :  { %10277 = vmatpush3.msra.mxu0 %v1079_v12  ;;  %917 = vperm.xlu1 %11505, %v395_v29   ;;  %v418_v62 = vld [vmem:[#allocation6 + $0xf0] sm:$0xff]  ;;  %v530_v1 = vld [vmem:[#allocation2 + $0x20] sm:$0xff]  ;;  %v531_v6 = vld [vmem:[#allocation2 + $0x28] sm:$0xff] }
 0x132   :  { %10216 = vmatmul.mubr.msk.f32.gmra.mxu0 %vm428_vm0, %v12292_v13  ;;  %10278 = vmatprep.subr.mxu0 %v1078_v14  ;;  %v1557_v4 = vld [vmem:[#allocation4 + $0xa0] sm:$0xff]  ;;  %v532_v7 = vld [vmem:[#allocation2 + $0x30] sm:$0xff]  ;;  %v1556_v10 = vld [vmem:[#allocation4 + $0x98] sm:$0xff] }
 0x133   :  { %10279 = vmatpush3.msra.mxu0 %v1078_v14  ;;  %10290 = vmatprep.mubr.msk.f32.mxu0 %vm428_vm0, %v12271_v3  ;;  %v533_v14 = vld [vmem:[#allocation2 + $0x38] sm:$0xff]  ;;  %v1169_v20 = vld [vmem:[#allocation2 + $0x110] sm:$0xff]  ;;  %v538_v24 = vld [vmem:[#allocation2 + $0x60] sm:$0xff] }
 0x134   :  { %10280 = vmatprep.subr.mxu0 %v1077_v15  ;;  %912 = vperm.xlu0 %11504, %v394_v30   ;;  %v537_v22 = vld [vmem:[#allocation2 + $0x58] sm:$0xff]  ;;  %v1171_v25 = vld [vmem:[#allocation2 + $0x120] sm:$0xff]  ;;  %v539_v27 = vld [vmem:[#allocation2 + $0x68] sm:$0xff] }
 0x135   :  { %10281 = vmatpush3.msra.mxu0 %v1077_v15  ;;  %927 = vperm.xlu1 %11505, %v397_v31   ;;  %v534_v15 = vld [vmem:[#allocation2 + $0x40] sm:$0xff]  ;;  %v1170_v23 = vld [vmem:[#allocation2 + $0x118] sm:$0xff]  ;;  %v1172_v28 = vld [vmem:[#allocation2 + $0x128] sm:$0xff] }
 0x136   :  { %10282 = vmatprep.subr.mxu0 %v1076_v16  ;;  %v1553_v26 = vld [vmem:[#allocation4 + $0x80] sm:$0xff]  ;;  %v540_v29 = vld [vmem:[#allocation2 + $0x70] sm:$0xff]  ;;  %v541_v31 = vld [vmem:[#allocation2 + $0x78] sm:$0xff] }
 0x137   :  { %10283 = vmatpush3.msra.mxu0 %v1076_v16  ;;  %v1555_v16 = vld [vmem:[#allocation4 + $0x90] sm:$0xff] }
 0x138   :  { %10284 = vmatprep.subr.mxu0 %v1075_v17  ;;  %922 = vperm.xlu0 %11504, %v396_v32   ;;  %v1173_v30 = vld [vmem:[#allocation2 + $0x130] sm:$0xff]  ;;  %v1174_v32 = vld [vmem:[#allocation2 + $0x138] sm:$0xff] }
 0x139   :  { %10285 = vmatpush3.msra.mxu0 %v1075_v17  ;;  %937 = vperm.xlu1 %11505, %v399_v33   ;;  %v535_v17 = vld [vmem:[#allocation2 + $0x48] sm:$0xff]  ;;  %v542_v33 = vld [vmem:[#allocation2 + $0x80] sm:$0xff] }
 0x13a   :  { %10286 = vmatprep.subr.mxu0 %v1074_v18 }
 0x13b   :  { %10287 = vmatpush3.msra.mxu0 %v1074_v18  ;;  %v1168_v18 = vld [vmem:[#allocation2 + $0x108] sm:$0xff] }
 0x13c   :  { %10288 = vmatprep.subr.mxu0 %v1073_v19  ;;  %932 = vperm.xlu0 %11504, %v398_v34   ;;  %v1175_v34 = vld [vmem:[#allocation2 + $0x140] sm:$0xff] }
 0x13d   :  { %10289 = vmatpush3.msra.mxu0 %v1073_v19  ;;  %947 = vperm.xlu1 %11505, %v401_v35   ;;  %v536_v19 = vld [vmem:[#allocation2 + $0x50] sm:$0xff]  ;;  %v543_v35 = vld [vmem:[#allocation2 + $0x88] sm:$0xff] }
 0x13e   :  { %10291 = vmatmul.mubr.msk.f32.vlgmr.msra.gmra.mxu0 %vm428_vm0, %v12278_v9 }
 0x13f   :  { %10293 = vmatprep.mubr.msk.f32.mxu0 %vm428_vm0, %v12283_v11 }
 0x140   :  { %942 = vperm.xlu0 %11504, %v400_v36   ;;  %v1176_v36 = vld [vmem:[#allocation2 + $0x148] sm:$0xff] }
 0x141   :  { %957 = vperm.xlu1 %11505, %v403_v37   ;;  %v544_v37 = vld [vmem:[#allocation2 + $0x90] sm:$0xff] }
 0x142   :  { %10294 = vmatmul.mubr.msk.f32.gmra.mxu0 %vm428_vm0, %v12292_v13 }
 0x143   :  { %10304 = vmatprep.mubr.msk.f32.mxu0 %vm558_vm1, %v1167_v21  ;;  %v1554_v21 = vld [vmem:[#allocation4 + $0x88] sm:$0xff] }
 0x144   :  { %952 = vperm.xlu0 %11504, %v402_v38   ;;  %v1177_v38 = vld [vmem:[#allocation2 + $0x150] sm:$0xff] }
 0x145   :  { %967 = vperm.xlu1 %11505, %v405_v39   ;;  %v545_v39 = vld [vmem:[#allocation2 + $0x98] sm:$0xff] }
 0x148   :  { %962 = vperm.xlu0 %11504, %v404_v40   ;;  %v1178_v40 = vld [vmem:[#allocation2 + $0x158] sm:$0xff] }
 0x149   :  { %977 = vperm.xlu1 %11505, %v407_v41   ;;  %v546_v41 = vld [vmem:[#allocation2 + $0xa0] sm:$0xff] }
 0x14c   :  { %972 = vperm.xlu0 %11504, %v406_v42   ;;  %v1179_v42 = vld [vmem:[#allocation2 + $0x160] sm:$0xff] }
 0x14d   :  { %987 = vperm.xlu1 %11505, %v409_v43   ;;  %v547_v43 = vld [vmem:[#allocation2 + $0xa8] sm:$0xff] }
 0x150   :  { %982 = vperm.xlu0 %11504, %v408_v44   ;;  %v1180_v44 = vld [vmem:[#allocation2 + $0x168] sm:$0xff] }
 0x151   :  { %997 = vperm.xlu1 %11505, %v411_v45   ;;  %v548_v45 = vld [vmem:[#allocation2 + $0xb0] sm:$0xff] }
 0x154   :  { %992 = vperm.xlu0 %11504, %v410_v46   ;;  %v1181_v46 = vld [vmem:[#allocation2 + $0x170] sm:$0xff] }
 0x155   :  { %1007 = vperm.xlu1 %11505, %v413_v47   ;;  %v549_v47 = vld [vmem:[#allocation2 + $0xb8] sm:$0xff] }
 0x158   :  { %1002 = vperm.xlu0 %11504, %v412_v48   ;;  %v1182_v48 = vld [vmem:[#allocation2 + $0x178] sm:$0xff] }
 0x159   :  { %1017 = vperm.xlu1 %11505, %v415_v51   ;;  %v551_v51 = vld [vmem:[#allocation2 + $0xc8] sm:$0xff] }
 0x15c   :  { %1012 = vperm.xlu0 %11504, %v414_v53   ;;  %v552_v53 = vld [vmem:[#allocation2 + $0xd0] sm:$0xff] }
 0x15d   :  { %1027 = vperm.xlu1 %11505, %v417_v55   ;;  %v553_v55 = vld [vmem:[#allocation2 + $0xd8] sm:$0xff] }
 0x160   :  { %1022 = vperm.xlu0 %11504, %v416_v56   ;;  %v1186_v56 = vld [vmem:[#allocation2 + $0x198] sm:$0xff] }
 0x161   :  { %1037 = vperm.xlu1 %11505, %v419_v61   ;;  %v556_v61 = vld [vmem:[#allocation2 + $0xf0] sm:$0xff] }
 0x164   :  { %1032 = vperm.xlu0 %11504, %v418_v62   ;;  %v1189_v62 = vld [vmem:[#allocation2 + $0x1b0] sm:$0xff] }
 0x1ee   :  { %v10214_v49 = vpop.f32.mrf.mxu0 }
 0x1f0   :  { %v507_v50 = vpop.f32.mrf.mxu0 }
 0x1f2   :  { %v10217_v52 = vpop.f32.mrf.mxu0 }
 0x1f3   :  { %10218 = vmatprep.subr.mxu1 %v10217_v52 }
 0x1f4   :  { %v517_v54 = vpop.f32.mrf.mxu0  ;;  %10219 = vmatpush3.msra.mxu1 %v10217_v52  ;;  %v1184_v52 = vld [vmem:[#allocation2 + $0x188] sm:$0xff] }
 0x1f5   :  { %10220 = vmatprep.subr.mxu1 %v517_v54 }
 0x1f6   :  { %10221 = vmatpush3.msra.mxu1 %v517_v54  ;;  %v1185_v54 = vld [vmem:[#allocation2 + $0x190] sm:$0xff] }
 0x1f7   :  { %10222 = vmatprep.subr.mxu1 %v10214_v49 }
 0x1f8   :  { %10223 = vmatpush3.msra.mxu1 %v10214_v49  ;;  %v550_v49 = vld [vmem:[#allocation2 + $0xc0] sm:$0xff] }
 0x1f9   :  { %10224 = vmatprep.subr.mxu1 %v507_v50 }
 0x1fa   :  { %10225 = vmatpush3.msra.mxu1 %v507_v50  ;;  %v1183_v50 = vld [vmem:[#allocation2 + $0x180] sm:$0xff] }
 0x1fb   :  { %10227 = vmatmul.mubr.msk.f32.vlgmr.msra.gmra.mxu1 %vm558_vm1, %v527_v57  ;;  %10352 = vmatprep.subr.mxu1 %v1560_v58  ;;  %v554_v57 = vld [vmem:[#allocation2 + $0xe0] sm:$0xff] }
 0x1fc   :  { %10229 = vmatprep.mubr.msk.f32.mxu1 %vm558_vm1, %v528_v59  ;;  %10353 = vmatpush3.msra.mxu1 %v1560_v58  ;;  %v1187_v58 = vld [vmem:[#allocation2 + $0x1a0] sm:$0xff]  ;;  %v555_v59 = vld [vmem:[#allocation2 + $0xe8] sm:$0xff] }
 0x1fd   :  { %10354 = vmatprep.subr.mxu1 %v1559_v60 }
 0x1fe   :  { %v10292_v2 = vpop.f32.mrf.mxu0  ;;  %10355 = vmatpush3.msra.mxu1 %v1559_v60  ;;  %v1188_v60 = vld [vmem:[#allocation2 + $0x1a8] sm:$0xff] }
 0x1ff   :  { %10230 = vmatmul.mubr.msk.f32.gmra.mxu1 %vm558_vm1, %v529_v63  ;;  %10356 = vmatprep.subr.mxu1 %v1558_v0  ;;  %v557_v63 = vld [vmem:[#allocation2 + $0xf8] sm:$0xff] }
 0x200   :  { %v1147_v5 = vpop.f32.mrf.mxu0  ;;  %10232 = vmatprep.mubr.msk.f32.mxu1 %vm558_vm1, %v530_v1  ;;  %10357 = vmatpush3.msra.mxu1 %v1558_v0  ;;  %v1190_v0 = vld [vmem:[#allocation2 + $0x1b8] sm:$0xff]  ;;  %v1191_v1 = vld [vmem:[#allocation2 + $0x1c0] sm:$0xff] }
 0x201   :  { %10358 = vmatprep.subr.mxu1 %v1557_v4 }
 0x202   :  { %v10295_v8 = vpop.f32.mrf.mxu0  ;;  %10359 = vmatpush3.msra.mxu1 %v1557_v4  ;;  %v1193_v4 = vld [vmem:[#allocation2 + $0x1d0] sm:$0xff] }
 0x203   :  { %10233 = vmatmul.mubr.msk.f32.gmra.mxu1 %vm558_vm1, %v531_v6  ;;  %10296 = vmatprep.subr.mxu0 %v10295_v8  ;;  %v1195_v6 = vld [vmem:[#allocation2 + $0x1e0] sm:$0xff] }
 0x204   :  { %v1157_v12 = vpop.f32.mrf.mxu0  ;;  %10297 = vmatpush3.msra.mxu0 %v10295_v8  ;;  %10235 = vmatprep.mubr.msk.f32.mxu1 %vm558_vm1, %v532_v7  ;;  %v1197_v7 = vld [vmem:[#allocation2 + $0x1f0] sm:$0xff]  ;;  %v2079_v8 = vld [vmem:[#allocation10 + $0x78] sm:$0xff] }
 0x205   :  { %10298 = vmatprep.subr.mxu0 %v1157_v12  ;;  %10360 = vmatprep.subr.mxu1 %v1556_v10 }
 0x206   :  { %10299 = vmatpush3.msra.mxu0 %v1157_v12  ;;  %10361 = vmatpush3.msra.mxu1 %v1556_v10  ;;  %v2077_v10 = vld [vmem:[#allocation10 + $0x68] sm:$0xff]  ;;  %v2076_v12 = vld [vmem:[#allocation10 + $0x60] sm:$0xff] }
 0x207   :  { %10236 = vmatmul.mubr.msk.f32.gmra.mxu1 %vm558_vm1, %v533_v14  ;;  %10300 = vmatprep.subr.mxu0 %v10292_v2  ;;  %v2075_v14 = vld [vmem:[#allocation10 + $0x58] sm:$0xff] }
 0x208   :  { %10301 = vmatpush3.msra.mxu0 %v10292_v2  ;;  %10238 = vmatprep.mubr.msk.f32.mxu1 %vm558_vm1, %v534_v15  ;;  %v1192_v2 = vld [vmem:[#allocation2 + $0x1c8] sm:$0xff] }
 0x209   :  { %10302 = vmatprep.subr.mxu0 %v1147_v5  ;;  %10362 = vmatprep.subr.mxu1 %v1555_v16  ;;  %v2073_v15 = vld [vmem:[#allocation10 + $0x48] sm:$0xff] }
 0x20a   :  { %10303 = vmatpush3.msra.mxu0 %v1147_v5  ;;  %10363 = vmatpush3.msra.mxu1 %v1555_v16  ;;  %v1194_v5 = vld [vmem:[#allocation2 + $0x1d8] sm:$0xff]  ;;  %v2072_v16 = vld [vmem:[#allocation10 + $0x40] sm:$0xff] }
 0x20b   :  { %10239 = vmatmul.mubr.msk.f32.gmra.mxu1 %vm558_vm1, %v535_v17  ;;  %10305 = vmatmul.mubr.msk.f32.vlgmr.msra.gmra.mxu0 %vm558_vm1, %v1168_v18  ;;  %v2071_v17 = vld [vmem:[#allocation10 + $0x38] sm:$0xff]  ;;  %v2070_v18 = vld [vmem:[#allocation10 + $0x30] sm:$0xff] }
 0x20c   :  { %10241 = vmatprep.mubr.msk.f32.mxu1 %vm558_vm1, %v536_v19  ;;  %10307 = vmatprep.mubr.msk.f32.mxu0 %vm558_vm1, %v1169_v20  ;;  %v2069_v19 = vld [vmem:[#allocation10 + $0x28] sm:$0xff]  ;;  %v2068_v20 = vld [vmem:[#allocation10 + $0x20] sm:$0xff] }
 0x20d   :  { %10364 = vmatprep.subr.mxu1 %v1554_v21  ;;  %2663 = vperm.xlu0 %11504, %v2079_v8   ;;  %v2087_v8 = vld [vmem:[#allocation9 + $0x38] sm:$0xff] }
 0x20e   :  { %10365 = vmatpush3.msra.mxu1 %v1554_v21  ;;  %v2067_v21 = vld [vmem:[#allocation10 + $0x18] sm:$0xff]  ;;  %10430 = vmatprep.subr.mxu0 %v2087_v8 }
 0x20f   :  { %10242 = vmatmul.mubr.msk.f32.gmra.mxu1 %vm558_vm1, %v537_v22  ;;  %10308 = vmatmul.mubr.msk.f32.gmra.mxu0 %vm558_vm1, %v1170_v23  ;;  %v2066_v22 = vld [vmem:[#allocation10 + $0x10] sm:$0xff]  ;;  %v2065_v23 = vld [vmem:[#allocation10 + $0x8] sm:$0xff] }
 0x210   :  { %10244 = vmatprep.mubr.msk.f32.mxu1 %vm558_vm1, %v538_v24  ;;  %10310 = vmatprep.mubr.msk.f32.mxu0 %vm558_vm1, %v1171_v25  ;;  %v2064_v24 = vld [vmem:[#allocation10] sm:$0xff]  ;;  %v4040_v25 = vld [vmem:[#allocation18] sm:$0xff] }
 0x211   :  { %10366 = vmatprep.subr.mxu1 %v1553_v26  ;;  %2653 = vperm.xlu0 %11504, %v2077_v10  }
 0x212   :  { %10367 = vmatpush3.msra.mxu1 %v1553_v26  ;;  %v4041_v26 = vld [vmem:[#allocation18 + $0x8] sm:$0xff]  ;;  %10431 = vmatpush3.msra.mxu0 %v2087_v8  ;;  %v1671_v8 = vld [vmem:[#allocation2 + $0x2c0] sm:$0xff] }
 0x213   :  { %10245 = vmatmul.mubr.msk.f32.gmra.mxu1 %vm558_vm1, %v539_v27  ;;  %10311 = vmatmul.mubr.msk.f32.gmra.mxu0 %vm558_vm1, %v1172_v28  ;;  %v4042_v27 = vld [vmem:[#allocation18 + $0x10] sm:$0xff]  ;;  %v4043_v28 = vld [vmem:[#allocation18 + $0x18] sm:$0xff] }
 0x214   :  { %10247 = vmatprep.mubr.msk.f32.mxu1 %vm558_vm1, %v540_v29  ;;  %10313 = vmatprep.mubr.msk.f32.mxu0 %vm558_vm1, %v1173_v30  ;;  %v4044_v29 = vld [vmem:[#allocation18 + $0x20] sm:$0xff]  ;;  %v4045_v30 = vld [vmem:[#allocation18 + $0x28] sm:$0xff] }
 0x215   :  { %2643 = vperm.xlu0 %11504, %v2075_v14  }
 0x217   :  { %10248 = vmatmul.mubr.msk.f32.gmra.mxu1 %vm558_vm1, %v541_v31  ;;  %10314 = vmatmul.mubr.msk.f32.gmra.mxu0 %vm558_vm1, %v1174_v32  ;;  %v4046_v31 = vld [vmem:[#allocation18 + $0x30] sm:$0xff] }
 0x218   :  { %10250 = vmatprep.mubr.msk.f32.mxu1 %vm558_vm1, %v542_v33  ;;  %10316 = vmatprep.mubr.msk.f32.mxu0 %vm558_vm1, %v1175_v34  ;;  %v1647_v32 = vld [vmem:[#allocation2 + $0x200] sm:$0xff]  ;;  %v4047_v33 = vld [vmem:[#allocation18 + $0x38] sm:$0xff]  ;;  %v4048_v34 = vld [vmem:[#allocation18 + $0x40] sm:$0xff] }
 0x219   :  { %2633 = vperm.xlu0 %11504, %v2073_v15   ;;  %v2084_v15 = vld [vmem:[#allocation9 + $0x20] sm:$0xff] }
 0x21b   :  { %10251 = vmatmul.mubr.msk.f32.gmra.mxu1 %vm558_vm1, %v543_v35  ;;  %10317 = vmatmul.mubr.msk.f32.gmra.mxu0 %vm558_vm1, %v1176_v36  ;;  %v4049_v35 = vld [vmem:[#allocation18 + $0x48] sm:$0xff]  ;;  %v4050_v36 = vld [vmem:[#allocation18 + $0x50] sm:$0xff] }
 0x21c   :  { %10253 = vmatprep.mubr.msk.f32.mxu1 %vm558_vm1, %v544_v37  ;;  %10319 = vmatprep.mubr.msk.f32.mxu0 %vm558_vm1, %v1177_v38  ;;  %v4051_v37 = vld [vmem:[#allocation18 + $0x58] sm:$0xff]  ;;  %v4052_v38 = vld [vmem:[#allocation18 + $0x60] sm:$0xff] }
 0x21d   :  { %2623 = vperm.xlu0 %11504, %v2071_v17  }
 0x21f   :  { %10254 = vmatmul.mubr.msk.f32.gmra.mxu1 %vm558_vm1, %v545_v39  ;;  %10320 = vmatmul.mubr.msk.f32.gmra.mxu0 %vm558_vm1, %v1178_v40  ;;  %v4053_v39 = vld [vmem:[#allocation18 + $0x68] sm:$0xff]  ;;  %v4054_v40 = vld [vmem:[#allocation18 + $0x70] sm:$0xff] }
 0x220   :  { %10256 = vmatprep.mubr.msk.f32.mxu1 %vm558_vm1, %v546_v41  ;;  %10322 = vmatprep.mubr.msk.f32.mxu0 %vm558_vm1, %v1179_v42  ;;  %v4055_v41 = vld [vmem:[#allocation18 + $0x78] sm:$0xff]  ;;  %v5184_v42 = vld [vmem:[#allocation22 + $0x38] sm:$0xff] }
 0x221   :  { %2613 = vperm.xlu0 %11504, %v2069_v19  }
 0x223   :  { %10257 = vmatmul.mubr.msk.f32.gmra.mxu1 %vm558_vm1, %v547_v43  ;;  %10323 = vmatmul.mubr.msk.f32.gmra.mxu0 %vm558_vm1, %v1180_v44  ;;  %v5183_v43 = vld [vmem:[#allocation22 + $0x30] sm:$0xff]  ;;  %v5182_v44 = vld [vmem:[#allocation22 + $0x28] sm:$0xff] }
 0x224   :  { %10259 = vmatprep.mubr.msk.f32.mxu1 %vm558_vm1, %v548_v45  ;;  %10325 = vmatprep.mubr.msk.f32.mxu0 %vm558_vm1, %v1181_v46  ;;  %v5181_v45 = vld [vmem:[#allocation22 + $0x20] sm:$0xff]  ;;  %v5180_v46 = vld [vmem:[#allocation22 + $0x18] sm:$0xff] }
 0x225   :  { %2603 = vperm.xlu0 %11504, %v2067_v21  }
 0x227   :  { %10260 = vmatmul.mubr.msk.f32.gmra.mxu1 %vm558_vm1, %v549_v47  ;;  %10326 = vmatmul.mubr.msk.f32.gmra.mxu0 %vm558_vm1, %v1182_v48  ;;  %v5179_v47 = vld [vmem:[#allocation22 + $0x10] sm:$0xff]  ;;  %v5178_v48 = vld [vmem:[#allocation22 + $0x8] sm:$0xff] }
 0x228   :  { %10262 = vmatprep.mubr.msk.f32.mxu1 %vm558_vm1, %v550_v49  ;;  %10328 = vmatprep.mubr.msk.f32.mxu0 %vm558_vm1, %v1183_v50  ;;  %v5177_v49 = vld [vmem:[#allocation22] sm:$0xff]  ;;  %v6493_v50 = vld [vmem:[#allocation28 + $0x38] sm:$0xff] }
 0x229   :  { %2593 = vperm.xlu0 %11504, %v2065_v23  }
 0x22b   :  { %10263 = vmatmul.mubr.msk.f32.gmra.mxu1 %vm558_vm1, %v551_v51  ;;  %10329 = vmatmul.mubr.msk.f32.gmra.mxu0 %vm558_vm1, %v1184_v52  ;;  %v6492_v51 = vld [vmem:[#allocation28 + $0x30] sm:$0xff]  ;;  %v6491_v52 = vld [vmem:[#allocation28 + $0x28] sm:$0xff] }
 0x22c   :  { %10265 = vmatprep.mubr.msk.f32.mxu1 %vm558_vm1, %v552_v53  ;;  %10331 = vmatprep.mubr.msk.f32.mxu0 %vm558_vm1, %v1185_v54  ;;  %v6490_v53 = vld [vmem:[#allocation28 + $0x20] sm:$0xff]  ;;  %v6489_v54 = vld [vmem:[#allocation28 + $0x18] sm:$0xff] }
 0x22d   :  { %4399 = vperm.xlu0 %11504, %v4040_v25  }
 0x22f   :  { %10266 = vmatmul.mubr.msk.f32.gmra.mxu1 %vm558_vm1, %v553_v55  ;;  %10332 = vmatmul.mubr.msk.f32.gmra.mxu0 %vm558_vm1, %v1186_v56  ;;  %v6488_v55 = vld [vmem:[#allocation28 + $0x10] sm:$0xff]  ;;  %v6487_v56 = vld [vmem:[#allocation28 + $0x8] sm:$0xff] }
 0x230   :  { %10268 = vmatprep.mubr.msk.f32.mxu1 %vm558_vm1, %v554_v57  ;;  %10334 = vmatprep.mubr.msk.f32.mxu0 %vm558_vm1, %v1187_v58  ;;  %v6486_v57 = vld [vmem:[#allocation28] sm:$0xff] }
 0x231   :  { %4409 = vperm.xlu0 %11504, %v4042_v27   ;;  %v7269_v58 = vld [vmem:[#allocation31 + $0x38] sm:$0xff] }
 0x233   :  { %10269 = vmatmul.mubr.msk.f32.gmra.mxu1 %vm558_vm1, %v555_v59  ;;  %10335 = vmatmul.mubr.msk.f32.gmra.mxu0 %vm558_vm1, %v1188_v60  ;;  %v7268_v59 = vld [vmem:[#allocation31 + $0x30] sm:$0xff]  ;;  %v7267_v60 = vld [vmem:[#allocation31 + $0x28] sm:$0xff] }
 0x234   :  { %10271 = vmatprep.mubr.msk.f32.mxu1 %vm558_vm1, %v556_v61  ;;  %10337 = vmatprep.mubr.msk.f32.mxu0 %vm558_vm1, %v1189_v62 }
 0x235   :  { %4419 = vperm.xlu0 %11504, %v4044_v29  }
 0x237   :  { %10272 = vmatmul.mubr.msk.f32.gmra.mxu1 %vm558_vm1, %v557_v63  ;;  %10338 = vmatmul.mubr.msk.f32.gmra.mxu0 %vm558_vm1, %v1190_v0  ;;  %v7266_v63 = vld [vmem:[#allocation31 + $0x20] sm:$0xff]  ;;  %v7265_v0 = vld [vmem:[#allocation31 + $0x18] sm:$0xff] }
 0x238   :  { %10340 = vmatprep.mubr.msk.f32.mxu0 %vm558_vm1, %v1191_v1  ;;  %10368 = vmatprep.mubr.msk.f32.mxu1 %vm428_vm0, %v12271_v3  ;;  %v1196_v3 = vld [vmem:[#allocation2 + $0x1e8] sm:$0xff] }
 0x239   :  { %4429 = vperm.xlu0 %11504, %v4046_v31  }
 0x23b   :  { %10341 = vmatmul.mubr.msk.f32.gmra.mxu0 %vm558_vm1, %v1192_v2  ;;  %10369 = vmatmul.mubr.msk.f32.vlgmr.msra.gmra.mxu1 %vm428_vm0, %v12278_v9  ;;  %v1198_v9 = vld [vmem:[#allocation2 + $0x1f8] sm:$0xff] }
 0x23c   :  { %10343 = vmatprep.mubr.msk.f32.mxu0 %vm558_vm1, %v1193_v4  ;;  %10371 = vmatprep.mubr.msk.f32.mxu1 %vm428_vm0, %v12283_v11  ;;  %v2078_v11 = vld [vmem:[#allocation10 + $0x70] sm:$0xff]  ;;  %v7264_v4 = vld [vmem:[#allocation31 + $0x10] sm:$0xff] }
 0x23d   :  { %2658 = vperm.xlu1 %11505, %v2078_v11   ;;  %4439 = vperm.xlu0 %11504, %v4048_v34   ;;  %v2086_v11 = vld [vmem:[#allocation9 + $0x30] sm:$0xff] }
 0x23e   :  { %10432 = vmatprep.subr.mxu0 %v2086_v11 }
 0x23f   :  { %10344 = vmatmul.mubr.msk.f32.gmra.mxu0 %vm558_vm1, %v1194_v5  ;;  %10372 = vmatmul.mubr.msk.f32.gmra.mxu1 %vm428_vm0, %v12292_v13  ;;  %v2074_v13 = vld [vmem:[#allocation10 + $0x50] sm:$0xff] }
 0x240   :  { %10346 = vmatprep.mubr.msk.f32.mxu0 %vm558_vm1, %v1195_v6  ;;  %10382 = vmatprep.mubr.msk.f32.mxu1 %vm558_vm1, %v1647_v32  ;;  %v7263_v5 = vld [vmem:[#allocation31 + $0x8] sm:$0xff] }
 0x241   :  { %2648 = vperm.xlu1 %11505, %v2076_v12   ;;  %4449 = vperm.xlu0 %11504, %v4050_v36   ;;  %v2085_v12 = vld [vmem:[#allocation9 + $0x28] sm:$0xff] }
 0x242   :  { %10433 = vmatpush3.msra.mxu0 %v2086_v11  ;;  %v1672_v11 = vld [vmem:[#allocation2 + $0x2c8] sm:$0xff] }
 0x243   :  { %10347 = vmatmul.mubr.msk.f32.gmra.mxu0 %vm558_vm1, %v1196_v3  ;;  %10434 = vmatprep.subr.mxu0 %v2085_v12 }
 0x244   :  { %10349 = vmatprep.mubr.msk.f32.mxu0 %vm558_vm1, %v1197_v7  ;;  %v7262_v7 = vld [vmem:[#allocation31] sm:$0xff]  ;;  %10435 = vmatpush3.msra.mxu0 %v2085_v12  ;;  %v1673_v12 = vld [vmem:[#allocation2 + $0x2d0] sm:$0xff] }
 0x245   :  { %2638 = vperm.xlu1 %11505, %v2074_v13   ;;  %4459 = vperm.xlu0 %11504, %v4052_v38   ;;  %v8561_v13 = vld [vmem:[#allocation34 + $0x8] sm:$0x3] }
 0x246   :  { %10436 = vmatprep.subr.mxu0 %v2084_v15 }
 0x247   :  { %10350 = vmatmul.mubr.msk.f32.gmra.mxu0 %vm558_vm1, %v1198_v9  ;;  %v8560_v9 = vld [vmem:[#allocation34] sm:$0xff] }
 0x248   :  { %10437 = vmatpush3.msra.mxu0 %v2084_v15  ;;  %v1675_v15 = vld [vmem:[#allocation2 + $0x2e0] sm:$0xff] }
 0x249   :  { %2628 = vperm.xlu1 %11505, %v2072_v16   ;;  %4469 = vperm.xlu0 %11504, %v4054_v40  }
 0x24d   :  { %2618 = vperm.xlu1 %11505, %v2070_v18   ;;  %5530 = vperm.xlu0 %11504, %v5184_v42  }
 0x251   :  { %2608 = vperm.xlu1 %11505, %v2068_v20   ;;  %5520 = vperm.xlu0 %11504, %v5182_v44   ;;  %v1648_v44 = vld [vmem:[#allocation2 + $0x208] sm:$0xff] }
 0x255   :  { %2598 = vperm.xlu1 %11505, %v2066_v22   ;;  %5510 = vperm.xlu0 %11504, %v5180_v46   ;;  %v1650_v46 = vld [vmem:[#allocation2 + $0x218] sm:$0xff] }
 0x259   :  { %2588 = vperm.xlu1 %11505, %v2064_v24   ;;  %5500 = vperm.xlu0 %11504, %v5178_v48   ;;  %v1652_v48 = vld [vmem:[#allocation2 + $0x228] sm:$0xff] }
 0x25d   :  { %4404 = vperm.xlu1 %11505, %v4041_v26   ;;  %6771 = vperm.xlu0 %11504, %v6493_v50   ;;  %v1654_v50 = vld [vmem:[#allocation2 + $0x238] sm:$0xff] }
 0x261   :  { %4414 = vperm.xlu1 %11505, %v4043_v28   ;;  %6761 = vperm.xlu0 %11504, %v6491_v52   ;;  %v1656_v52 = vld [vmem:[#allocation2 + $0x248] sm:$0xff] }
 0x265   :  { %4424 = vperm.xlu1 %11505, %v4045_v30   ;;  %6751 = vperm.xlu0 %11504, %v6489_v54   ;;  %v1658_v54 = vld [vmem:[#allocation2 + $0x258] sm:$0xff] }
 0x269   :  { %4434 = vperm.xlu1 %11505, %v4047_v33   ;;  %6741 = vperm.xlu0 %11504, %v6487_v56   ;;  %v1660_v56 = vld [vmem:[#allocation2 + $0x268] sm:$0xff] }
 0x26d   :  { %4444 = vperm.xlu1 %11505, %v4049_v35   ;;  %7577 = vperm.xlu0 %11504, %v7269_v58   ;;  %v1662_v58 = vld [vmem:[#allocation2 + $0x278] sm:$0xff] }
 0x271   :  { %4454 = vperm.xlu1 %11505, %v4051_v37   ;;  %7567 = vperm.xlu0 %11504, %v7267_v60   ;;  %v1664_v60 = vld [vmem:[#allocation2 + $0x288] sm:$0xff] }
 0x275   :  { %4464 = vperm.xlu1 %11505, %v4053_v39   ;;  %7557 = vperm.xlu0 %11504, %v7265_v0   ;;  %v1666_v0 = vld [vmem:[#allocation2 + $0x298] sm:$0xff] }
 0x279   :  { %4474 = vperm.xlu1 %11505, %v4055_v41   ;;  %7547 = vperm.xlu0 %11504, %v7263_v5   ;;  %v1668_v5 = vld [vmem:[#allocation2 + $0x2a8] sm:$0xff] }
 0x27d   :  { %5525 = vperm.xlu1 %11505, %v5183_v43   ;;  %8564 = vperm.xlu0 %11504, %v8560_v9   ;;  %v1670_v9 = vld [vmem:[#allocation2 + $0x2b8] sm:$0xff] }
 0x281   :  { %5515 = vperm.xlu1 %11505, %v5181_v45   ;;  %v1649_v45 = vld [vmem:[#allocation2 + $0x210] sm:$0xff] }
 0x285   :  { %5505 = vperm.xlu1 %11505, %v5179_v47   ;;  %v1651_v47 = vld [vmem:[#allocation2 + $0x220] sm:$0xff] }
 0x289   :  { %5495 = vperm.xlu1 %11505, %v5177_v49   ;;  %v1653_v49 = vld [vmem:[#allocation2 + $0x230] sm:$0xff] }
 0x28d   :  { %6766 = vperm.xlu1 %11505, %v6492_v51   ;;  %v1655_v51 = vld [vmem:[#allocation2 + $0x240] sm:$0xff] }
 0x291   :  { %6756 = vperm.xlu1 %11505, %v6490_v53   ;;  %v1657_v53 = vld [vmem:[#allocation2 + $0x250] sm:$0xff] }
 0x295   :  { %6746 = vperm.xlu1 %11505, %v6488_v55   ;;  %v1659_v55 = vld [vmem:[#allocation2 + $0x260] sm:$0xff] }
 0x299   :  { %6736 = vperm.xlu1 %11505, %v6486_v57   ;;  %v1661_v57 = vld [vmem:[#allocation2 + $0x270] sm:$0xff] }
 0x29d   :  { %7572 = vperm.xlu1 %11505, %v7268_v59   ;;  %v1663_v59 = vld [vmem:[#allocation2 + $0x280] sm:$0xff] }
 0x2a1   :  { %7562 = vperm.xlu1 %11505, %v7266_v63   ;;  %v1665_v63 = vld [vmem:[#allocation2 + $0x290] sm:$0xff] }
 0x2a5   :  { %7552 = vperm.xlu1 %11505, %v7264_v4   ;;  %v1667_v4 = vld [vmem:[#allocation2 + $0x2a0] sm:$0xff] }
 0x2a9   :  { %7542 = vperm.xlu1 %11505, %v7262_v7   ;;  %v1669_v7 = vld [vmem:[#allocation2 + $0x2b0] sm:$0xff] }
 0x2ad   :  { %8569 = vperm.xlu1 %11505, %v8561_v13   ;;  %v1674_v13 = vld [vmem:[#allocation2 + $0x2d8] sm:$0xff] }
 0x2bb   :  { %v12377_v61 = vpop.f32.mrf.mxu1 }
 0x2bd   :  { %v12379_v62 = vpop.f32.mrf.mxu1 }
 0x2bf   :  { %v12381_v1 = vpop.f32.mrf.mxu1 }
 0x2c1   :  { %v12383_v2 = vpop.f32.mrf.mxu1 }
 0x2c3   :  { %v12385_v6 = vpop.f32.mrf.mxu1 }
 0x2c5   :  { %v12387_v3 = vpop.f32.mrf.mxu1 }
 0x2c7   :  { %v12389_v10 = vpop.f32.mrf.mxu1 }
 0x2c9   :  { %v12391_v14 = vpop.f32.mrf.mxu1 }
 0x2cb   :  { %v12393_v16 = vpop.f32.mrf.mxu1 }
 0x2cd   :  { %v12395_v17 = vpop.f32.mrf.mxu1 }
 0x2cf   :  { %v12397_v18 = vpop.f32.mrf.mxu1 }
 0x2d1   :  { %v12399_v19 = vpop.f32.mrf.mxu1 }
 0x2d3   :  { %v12401_v20 = vpop.f32.mrf.mxu1 }
 0x2d5   :  { %v12403_v21 = vpop.f32.mrf.mxu1 }
 0x2d7   :  { %v12405_v22 = vpop.f32.mrf.mxu1 }
 0x2d9   :  { %v12407_v23 = vpop.f32.mrf.mxu1 }
 0x2db   :  { %v12409_v24 = vpop.f32.mrf.mxu1 }
 0x2dd   :  { %v12411_v25 = vpop.f32.mrf.mxu1 }
 0x2df   :  { %v12413_v26 = vpop.f32.mrf.mxu1 }
 0x2e1   :  { %v12415_v27 = vpop.f32.mrf.mxu1 }
 0x2e3   :  { %v12417_v28 = vpop.f32.mrf.mxu1 }
 0x2e4   :  { %13938 = vst [vmem:[#allocation48_spill] sm:$0xff] %v12417_v28 }
 0x2e5   :  { %v12419_v29 = vpop.f32.mrf.mxu1 }
 0x2e6   :  { %13939 = vst [vmem:[#allocation49_spill] sm:$0xff] %v12419_v29 }
 0x2e7   :  { %v12421_v30 = vpop.f32.mrf.mxu1 }
 0x2e8   :  { %13940 = vst [vmem:[#allocation50_spill] sm:$0xff] %v12421_v30 }
 0x2e9   :  { %v12423_v31 = vpop.f32.mrf.mxu1 }
 0x2ea   :  { %13941 = vst [vmem:[#allocation51_spill] sm:$0xff] %v12423_v31 }
 0x2eb   :  { %v12425_v32 = vpop.f32.mrf.mxu1 }
 0x2ec   :  { %13942 = vst [vmem:[#allocation52_spill] sm:$0xff] %v12425_v32 }
 0x2ed   :  { %v12427_v33 = vpop.f32.mrf.mxu1 }
 0x2ee   :  { %13943 = vst [vmem:[#allocation53_spill] sm:$0xff] %v12427_v33 }
 0x2ef   :  { %v12429_v34 = vpop.f32.mrf.mxu1 }
 0x2f0   :  { %13944 = vst [vmem:[#allocation54_spill] sm:$0xff] %v12429_v34 }
 0x2f1   :  { %v12431_v35 = vpop.f32.mrf.mxu1 }
 0x2f2   :  { %13945 = vst [vmem:[#allocation55_spill] sm:$0xff] %v12431_v35 }
 0x2f3   :  { %v12433_v36 = vpop.f32.mrf.mxu1 }
 0x2f4   :  { %13946 = vst [vmem:[#allocation56_spill] sm:$0xff] %v12433_v36 }
 0x2f5   :  { %v12435_v37 = vpop.f32.mrf.mxu1 }
 0x2f6   :  { %13947 = vst [vmem:[#allocation57_spill] sm:$0xff] %v12435_v37 }
 0x2f7   :  { %v12437_v38 = vpop.f32.mrf.mxu1 }
 0x2f8   :  { %13948 = vst [vmem:[#allocation58_spill] sm:$0xff] %v12437_v38 }
 0x2f9   :  { %v12439_v39 = vpop.f32.mrf.mxu1 }
 0x2fa   :  { %13949 = vst [vmem:[#allocation59_spill] sm:$0xff] %v12439_v39 }
 0x2fb   :  { %v10370_v40 = vpop.f32.mrf.mxu1 }
 0x2fd   :  { %v1627_v41 = vpop.f32.mrf.mxu1 }
 0x2ff   :  { %v10373_v42 = vpop.f32.mrf.mxu1 }
 0x300   :  { %10374 = vmatprep.subr.mxu1 %v10373_v42 }
 0x301   :  { %v1637_v43 = vpop.f32.mrf.mxu1  ;;  %10375 = vmatpush3.msra.mxu1 %v10373_v42  ;;  %v1678_v42 = vld [vmem:[#allocation2 + $0x2f8] sm:$0xff] }
 0x302   :  { %10376 = vmatprep.subr.mxu1 %v1637_v43 }
 0x303   :  { %10377 = vmatpush3.msra.mxu1 %v1637_v43  ;;  %v2083_v43 = vld [vmem:[#allocation9 + $0x18] sm:$0xff] }
 0x304   :  { %10378 = vmatprep.subr.mxu1 %v10370_v40  ;;  %10438 = vmatprep.subr.mxu0 %v2083_v43 }
 0x305   :  { %10379 = vmatpush3.msra.mxu1 %v10370_v40  ;;  %v1676_v40 = vld [vmem:[#allocation2 + $0x2e8] sm:$0xff]  ;;  %10439 = vmatpush3.msra.mxu0 %v2083_v43 }
 0x306   :  { %10380 = vmatprep.subr.mxu1 %v1627_v41 }
 0x307   :  { %10381 = vmatpush3.msra.mxu1 %v1627_v41  ;;  %v1677_v41 = vld [vmem:[#allocation2 + $0x2f0] sm:$0xff] }
 0x308   :  { %10383 = vmatmul.mubr.msk.f32.vlgmr.msra.gmra.mxu1 %vm558_vm1, %v1648_v44  ;;  %v2082_v44 = vld [vmem:[#allocation9 + $0x10] sm:$0xff] }
 0x309   :  { %10385 = vmatprep.mubr.msk.f32.mxu1 %vm558_vm1, %v1649_v45  ;;  %10440 = vmatprep.subr.mxu0 %v2082_v44  ;;  %v2081_v45 = vld [vmem:[#allocation9 + $0x8] sm:$0xff] }
 0x30a   :  { %10441 = vmatpush3.msra.mxu0 %v2082_v44 }
 0x30b   :  { %10442 = vmatprep.subr.mxu0 %v2081_v45 }
 0x30c   :  { %10386 = vmatmul.mubr.msk.f32.gmra.mxu1 %vm558_vm1, %v1650_v46  ;;  %10443 = vmatpush3.msra.mxu0 %v2081_v45  ;;  %v2080_v46 = vld [vmem:[#allocation9] sm:$0xff] }
 0x30d   :  { %10388 = vmatprep.mubr.msk.f32.mxu1 %vm558_vm1, %v1651_v47  ;;  %10444 = vmatprep.subr.mxu0 %v2080_v46  ;;  %v12472_v47 = vld [vmem:[#allocation9 + $0x78] sm:$0xff] }
 0x30e   :  { %10445 = vmatpush3.msra.mxu0 %v2080_v46 }
 0x30f   :  { %10494 = vmatprep.subr.mxu0 %v12472_v47 }
 0x310   :  { %10389 = vmatmul.mubr.msk.f32.gmra.mxu1 %vm558_vm1, %v1652_v48  ;;  %v10306_v48 = vpop.f32.mrf.mxu0 }
 0x311   :  { %10391 = vmatprep.mubr.msk.f32.mxu1 %vm558_vm1, %v1653_v49 }
 0x312   :  { %v1361_v49 = vpop.f32.mrf.mxu0 }
 0x314   :  { %10392 = vmatmul.mubr.msk.f32.gmra.mxu1 %vm558_vm1, %v1654_v50  ;;  %v10309_v50 = vpop.f32.mrf.mxu0 }
 0x315   :  { %10394 = vmatprep.mubr.msk.f32.mxu1 %vm558_vm1, %v1655_v51 }
 0x316   :  { %v1371_v51 = vpop.f32.mrf.mxu0 }
 0x318   :  { %10395 = vmatmul.mubr.msk.f32.gmra.mxu1 %vm558_vm1, %v1656_v52  ;;  %v10312_v52 = vpop.f32.mrf.mxu0 }
 0x319   :  { %10397 = vmatprep.mubr.msk.f32.mxu1 %vm558_vm1, %v1657_v53 }
 0x31a   :  { %v1381_v53 = vpop.f32.mrf.mxu0 }
 0x31c   :  { %10398 = vmatmul.mubr.msk.f32.gmra.mxu1 %vm558_vm1, %v1658_v54  ;;  %v12475_v54 = vpop.f32.mrf.mxu0 }
 0x31d   :  { %10400 = vmatprep.mubr.msk.f32.mxu1 %vm558_vm1, %v1659_v55 }
 0x31e   :  { %v12477_v55 = vpop.f32.mrf.mxu0 }
 0x320   :  { %10401 = vmatmul.mubr.msk.f32.gmra.mxu1 %vm558_vm1, %v1660_v56  ;;  %v893_v56 = vpop.permute.xlu1 %892 }
 0x321   :  { %10403 = vmatprep.mubr.msk.f32.mxu1 %vm558_vm1, %v1661_v57  ;;  %v12479_v57 = vpop.f32.mrf.mxu0  ;;  %v1042_v30 = vadd.f32 %v893_v56, %v12383_v2 }
 0x323   :  { %v1522_v28 = vadd.f32 %v1371_v51, %v1042_v30  ;;  %v2689_v30 = vld [vmem:[#allocation9 + $0x70] sm:$0xff] }
 0x324   :  { %10404 = vmatmul.mubr.msk.f32.gmra.mxu1 %vm558_vm1, %v1662_v58  ;;  %v883_v58 = vpop.permute.xlu0 %882 }
 0x325   :  { %10406 = vmatprep.mubr.msk.f32.mxu1 %vm558_vm1, %v1663_v59  ;;  %v12481_v59 = vpop.f32.mrf.mxu0  ;;  %v1040_v46 = vadd.f32 %v883_v58, %v12379_v62 }
 0x327   :  { %v1520_v37 = vadd.f32 %v1361_v49, %v1040_v46 }
 0x328   :  { %10407 = vmatmul.mubr.msk.f32.gmra.mxu1 %vm558_vm1, %v1664_v60  ;;  %v898_v60 = vpop.permute.xlu1 %897 }
 0x329   :  { %10409 = vmatprep.mubr.msk.f32.mxu1 %vm558_vm1, %v1665_v63  ;;  %v888_v63 = vpop.permute.xlu0 %887  ;;  %v1043_v34 = vadd.f32 %v12381_v1, %v898_v60 }
 0x32a   :  { %v1041_v44 = vadd.f32 %v12377_v61, %v888_v63 }
 0x32b   :  { %v1523_v63 = vadd.f32 %v10309_v50, %v1043_v34 }
 0x32c   :  { %10410 = vmatmul.mubr.msk.f32.gmra.mxu1 %vm558_vm1, %v1666_v0  ;;  %v12483_v0 = vpop.f32.mrf.mxu0  ;;  %v1521_v39 = vadd.f32 %v10306_v48, %v1041_v44 }
 0x32d   :  { %10412 = vmatprep.mubr.msk.f32.mxu1 %vm558_vm1, %v1667_v4  ;;  %v908_v4 = vpop.permute.xlu1 %907 }
 0x32e   :  { %v1045_v48 = vadd.f32 %v12385_v6, %v908_v4 }
 0x330   :  { %10413 = vmatmul.mubr.msk.f32.gmra.mxu1 %vm558_vm1, %v1668_v5  ;;  %v903_v5 = vpop.permute.xlu0 %902 }
 0x331   :  { %10415 = vmatprep.mubr.msk.f32.mxu1 %vm558_vm1, %v1669_v7  ;;  %v12485_v7 = vpop.f32.mrf.mxu0  ;;  %v1044_v60 = vadd.f32 %v903_v5, %v12387_v3  ;;  %v2688_v3 = vld [vmem:[#allocation9 + $0x68] sm:$0xff] }
 0x333   :  { %v1524_v6 = vadd.f32 %v1381_v53, %v1044_v60  ;;  %v2687_v53 = vld [vmem:[#allocation9 + $0x60] sm:$0xff] }
 0x334   :  { %10416 = vmatmul.mubr.msk.f32.gmra.mxu1 %vm558_vm1, %v1670_v9  ;;  %v12487_v9 = vpop.f32.mrf.mxu0 }
 0x335   :  { %10418 = vmatprep.mubr.msk.f32.mxu1 %vm558_vm1, %v1671_v8  ;;  %v918_v8 = vpop.permute.xlu1 %917 }
 0x338   :  { %10419 = vmatmul.mubr.msk.f32.gmra.mxu1 %vm558_vm1, %v1672_v11  ;;  %v913_v11 = vpop.permute.xlu0 %912 }
 0x339   :  { %10421 = vmatprep.mubr.msk.f32.mxu1 %vm558_vm1, %v1673_v12  ;;  %v12489_v12 = vpop.f32.mrf.mxu0 }
 0x33c   :  { %10422 = vmatmul.mubr.msk.f32.gmra.mxu1 %vm558_vm1, %v1674_v13  ;;  %v12491_v13 = vpop.permute.xlu1 %927 }
 0x33d   :  { %10424 = vmatprep.mubr.msk.f32.mxu1 %vm558_vm1, %v1675_v15  ;;  %v12493_v15 = vpop.permute.xlu0 %922  ;;  %v1049_v46 = vadd.f32 %v12393_v16, %v12491_v13 }
 0x33f   :  { %v1529_v60 = vadd.f32 %v12479_v57, %v1049_v46 }
 0x340   :  { %10425 = vmatmul.mubr.msk.f32.gmra.mxu1 %vm558_vm1, %v1676_v40  ;;  %v12495_v40 = vpop.f32.mrf.mxu0 }
 0x341   :  { %10427 = vmatprep.mubr.msk.f32.mxu1 %vm558_vm1, %v1677_v41  ;;  %v12501_v43 = vpop.permute.xlu0 %932 }
 0x342   :  { %v12497_v41 = vpop.f32.mrf.mxu0 }
 0x344   :  { %10428 = vmatmul.mubr.msk.f32.gmra.mxu1 %vm558_vm1, %v1678_v42  ;;  %v12499_v42 = vpop.permute.xlu1 %937  ;;  %v12504_v45 = vpop.f32.mrf.mxu0 }
 0x345   :  { %v12509_v35 = vpop.permute.xlu0 %942 }
 0x346   :  { %v12512_v33 = vpop.f32.mrf.mxu0 }
 0x348   :  { %v12507_v36 = vpop.permute.xlu1 %947  ;;  %v12518_v49 = vpop.f32.mrf.mxu0 }
 0x3c8   :  { %v10384_v38 = vpop.f32.mrf.mxu1 }
 0x3c9   :  { %v2001_v32 = vadd.f32 %v10384_v38, %v1521_v39  ;;  %v12523_v38 = vpop.permute.xlu1 %957  ;;  %v12525_v39 = vpop.permute.xlu0 %952 }
 0x3ca   :  { %v1841_v31 = vpop.f32.mrf.mxu1 }
 0x3cb   :  { %v2000_v61 = vadd.f32 %v1841_v31, %v1520_v37  ;;  %v12520_v58 = vmax.f32 %v2001_v32, 0.0  ;;  %v1525_v31 = vadd.f32 %v10312_v52, %v1045_v48  ;;  %v12535_v37 = vpop.f32.mrf.mxu0  ;;  %v1046_v52 = vadd.f32 %v913_v11, %v12391_v14  ;;  %v2686_v11 = vld [vmem:[#allocation9 + $0x58] sm:$0xff] }
 0x3cc   :  { %v10387_v29 = vpop.f32.mrf.mxu1 }
 0x3cd   :  { %v12515_v62 = vmax.f32 %v2000_v61, 0.0  ;;  %v2003_v44 = vadd.f32 %v10387_v29, %v1523_v63  ;;  %v1047_v29 = vadd.f32 %v12389_v10, %v918_v8  ;;  %v1526_v10 = vadd.f32 %v12477_v55, %v1046_v52  ;;  %v12546_v5 = vpop.permute.xlu1 %967  ;;  %v12548_v8 = vpop.permute.xlu0 %962 }
 0x3ce   :  { %v1851_v1 = vpop.f32.mrf.mxu1  ;;  %v12554_v61 = vpop.f32.mrf.mxu0  ;;  %v1048_v55 = vadd.f32 %v12493_v15, %v12395_v17  ;;  %v1051_v17 = vadd.f32 %v12397_v18, %v12499_v42 }
 0x3cf   :  { %v2002_v2 = vadd.f32 %v1851_v1, %v1522_v28  ;;  %10446 = vmatprep.mubr.msk.f32.mxu0 %vm428_vm0, %v12515_v62  ;;  %v12537_v28 = vmax.f32 %v2003_v44, 0.0  ;;  %v2685_v1 = vld [vmem:[#allocation9 + $0x50] sm:$0xff] }
 0x3d0   :  { %v10390_v34 = vpop.f32.mrf.mxu1  ;;  %10447 = vmatmul.mubr.msk.f32.vlgmr.msra.gmra.mxu0 %vm428_vm0, %v12520_v58  ;;  %v1528_v16 = vadd.f32 %v12481_v59, %v1048_v55  ;;  %v12570_v15 = vpop.f32.mrf.mxu0  ;;  %v1531_v18 = vadd.f32 %v12483_v0, %v1051_v17 }
 0x3d1   :  { %v12531_v32 = vmax.f32 %v2002_v2, 0.0  ;;  %10495 = vmatpush3.msra.mxu0 %v12472_v47  ;;  %v2005_v50 = vadd.f32 %v10390_v34, %v1525_v31  ;;  %v1527_v47 = vadd.f32 %v12475_v54, %v1047_v29  ;;  %v12576_v29 = vpop.permute.xlu0 %972 }
 0x3d2   :  { %v1861_v51 = vpop.f32.mrf.mxu1  ;;  %10496 = vmatprep.subr.mxu0 %v2689_v30 }
 0x3d3   :  { %v2004_v56 = vadd.f32 %v1861_v51, %v1524_v6  ;;  %10449 = vmatprep.mubr.msk.f32.mxu0 %vm428_vm0, %v12531_v32  ;;  %10497 = vmatpush3.msra.mxu0 %v2689_v30  ;;  %v12556_v54 = vmax.f32 %v2005_v50, 0.0  ;;  %v2684_v30 = vld [vmem:[#allocation9 + $0x48] sm:$0xff]  ;;  %v1050_v6 = vadd.f32 %v12501_v43, %v12399_v19  ;;  %v2683_v50 = vld [vmem:[#allocation9 + $0x40] sm:$0xff]  ;;  %v12586_v19 = vld [vmem:[#allocation9 + $0xb8] sm:$0xff]  ;;  %v1053_v43 = vadd.f32 %v12401_v20, %v12507_v36 }
 0x3d4   :  { %v10393_v4 = vpop.f32.mrf.mxu1  ;;  %10450 = vmatmul.mubr.msk.f32.gmra.mxu0 %vm428_vm0, %v12537_v28  ;;  %10498 = vmatprep.subr.mxu0 %v2688_v3 }
 0x3d5   :  { %v12550_v14 = vmax.f32 %v2004_v56, 0.0  ;;  %10499 = vmatpush3.msra.mxu0 %v2688_v3  ;;  %v2007_v63 = vadd.f32 %v10393_v4, %v1527_v47  ;;  %v978_v3 = vpop.permute.xlu1 %977  ;;  %v1530_v51 = vadd.f32 %v12485_v7, %v1050_v6  ;;  %v12590_v56 = vpop.f32.mrf.mxu0  ;;  %v1052_v4 = vadd.f32 %v12509_v35, %v12403_v21 }
 0x3d6   :  { %v1871_v48 = vpop.f32.mrf.mxu1  ;;  %10500 = vmatprep.subr.mxu0 %v2687_v53  ;;  %v1533_v7 = vadd.f32 %v12487_v9, %v1053_v43  ;;  %v983_v36 = vpop.permute.xlu0 %982  ;;  %v1055_v21 = vadd.f32 %v12405_v22, %v12523_v38 }
 0x3d7   :  { %v2006_v44 = vadd.f32 %v1871_v48, %v1526_v10  ;;  %10452 = vmatprep.mubr.msk.f32.mxu0 %vm428_vm0, %v12550_v14  ;;  %10501 = vmatpush3.msra.mxu0 %v2687_v53  ;;  %v12572_v31 = vmax.f32 %v2007_v63, 0.0  ;;  %v1532_v46 = vadd.f32 %v12489_v12, %v1052_v4  ;;  %v12607_v35 = vpop.f32.mrf.mxu0 }
 0x3d8   :  { %v10396_v2 = vpop.f32.mrf.mxu1  ;;  %10453 = vmatmul.mubr.msk.f32.gmra.mxu0 %vm428_vm0, %v12556_v54  ;;  %10502 = vmatprep.subr.mxu0 %v2686_v11  ;;  %v1535_v12 = vadd.f32 %v12495_v40, %v1055_v21  ;;  %v1056_v40 = vadd.f32 %v12548_v8, %v12411_v25 }
 0x3d9   :  { %v12566_v13 = vmax.f32 %v2006_v44, 0.0  ;;  %10503 = vmatpush3.msra.mxu0 %v2686_v11  ;;  %v2009_v34 = vadd.f32 %v10396_v2, %v1529_v60  ;;  %v988_v20 = vpop.permute.xlu1 %987  ;;  %v1054_v44 = vadd.f32 %v12525_v39, %v12407_v23  ;;  %v1057_v2 = vadd.f32 %v12409_v24, %v12546_v5 }
 0x3da   :  { %v1881_v57 = vpop.f32.mrf.mxu1  ;;  %10504 = vmatprep.subr.mxu0 %v2685_v1  ;;  %v1536_v24 = vadd.f32 %v12512_v33, %v1056_v40 }
 0x3db   :  { %v2008_v59 = vadd.f32 %v1881_v57, %v1528_v16  ;;  %10455 = vmatprep.mubr.msk.f32.mxu0 %vm428_vm0, %v12566_v13  ;;  %10505 = vmatpush3.msra.mxu0 %v2685_v1  ;;  %v12592_v53 = vmax.f32 %v2009_v34, 0.0  ;;  %v1534_v22 = vadd.f32 %v12497_v41, %v1054_v44  ;;  %v12623_v16 = vpop.f32.mrf.mxu0  ;;  %v993_v34 = vpop.permute.xlu0 %992  ;;  %v1537_v41 = vadd.f32 %v12504_v45, %v1057_v2 }
 0x3dc   :  { %v10399_v42 = vpop.f32.mrf.mxu1  ;;  %10456 = vmatmul.mubr.msk.f32.gmra.mxu0 %vm428_vm0, %v12572_v31  ;;  %10506 = vmatprep.subr.mxu0 %v2684_v30 }
 0x3dd   :  { %v12584_v52 = vmax.f32 %v2008_v59, 0.0  ;;  %10507 = vmatpush3.msra.mxu0 %v2684_v30  ;;  %v2011_v0 = vadd.f32 %v10399_v42, %v1531_v18  ;;  %v998_v17 = vpop.permute.xlu1 %997  ;;  %v1059_v59 = vadd.f32 %v12413_v26, %v978_v3  ;;  %v1058_v42 = vadd.f32 %v12576_v29, %v12415_v27 }
 0x3de   :  { %v1891_v47 = vpop.f32.mrf.mxu1  ;;  %10508 = vmatprep.subr.mxu0 %v2683_v50 }
 0x3df   :  { %v2010_v10 = vadd.f32 %v1891_v47, %v1530_v51  ;;  %10458 = vmatprep.mubr.msk.f32.mxu0 %vm428_vm0, %v12584_v52  ;;  %10509 = vmatpush3.msra.mxu0 %v2683_v50  ;;  %v12609_v48 = vmax.f32 %v2011_v0, 0.0  ;;  %v1481_v50 = vpop.f32.mrf.mxu0  ;;  %v1539_v45 = vadd.f32 %v12518_v49, %v1059_v59  ;;  %v1003_v26 = vpop.permute.xlu0 %1002  ;;  %v1538_v3 = vadd.f32 %v12535_v37, %v1058_v42  ;;  %v13950_v47 = vld [vmem:[#allocation48_spill] sm:$0xff] }
 0x3e0   :  { %v10402_v11 = vpop.f32.mrf.mxu1  ;;  %10459 = vmatmul.mubr.msk.f32.gmra.mxu0 %vm428_vm0, %v12592_v53  ;;  %10558 = vmatprep.subr.mxu0 %v12586_v19  ;;  %v1061_v4 = vadd.f32 %v13950_v47, %v988_v20  ;;  %v13956_v47 = vld [vmem:[#allocation54_spill] sm:$0xff] }
 0x3e1   :  { %v12603_v63 = vmax.f32 %v2010_v10, 0.0  ;;  %v2013_v9 = vadd.f32 %v10402_v11, %v1533_v7  ;;  %v1008_v33 = vpop.permute.xlu1 %1007  ;;  %v10345_v10 = vpop.f32.mrf.mxu0  ;;  %v13951_v11 = vld [vmem:[#allocation49_spill] sm:$0xff] }
 0x3e2   :  { %v1901_v55 = vpop.f32.mrf.mxu1  ;;  %v1541_v21 = vadd.f32 %v12554_v61, %v1061_v4 }
 0x3e3   :  { %v2012_v1 = vadd.f32 %v1901_v55, %v1532_v46  ;;  %10461 = vmatprep.mubr.msk.f32.mxu0 %vm428_vm0, %v12603_v63  ;;  %v12625_v23 = vmax.f32 %v2013_v9, 0.0  ;;  %v1060_v46 = vadd.f32 %v983_v36, %v13951_v11  ;;  %v13952_v55 = vld [vmem:[#allocation50_spill] sm:$0xff] }
 0x3e4   :  { %v10405_v60 = vpop.f32.mrf.mxu1  ;;  %10462 = vmatmul.mubr.msk.f32.gmra.mxu0 %vm428_vm0, %v12609_v48  ;;  %v1063_v44 = vadd.f32 %v13952_v55, %v998_v17  ;;  %v13958_v55 = vld [vmem:[#allocation56_spill] sm:$0xff] }
 0x3e5   :  { %v12619_v38 = vmax.f32 %v2012_v1, 0.0  ;;  %v2015_v39 = vadd.f32 %v10405_v60, %v1535_v12  ;;  %v1540_v37 = vadd.f32 %v12570_v15, %v1060_v46  ;;  %v1491_v1 = vpop.f32.mrf.mxu0  ;;  %v13957_v46 = vld [vmem:[#allocation55_spill] sm:$0xff] }
 0x3e6   :  { %v1911_v30 = vpop.f32.mrf.mxu1  ;;  %v1543_v40 = vadd.f32 %v12590_v56, %v1063_v44 }
 0x3e7   :  { %v2014_v57 = vadd.f32 %v1911_v30, %v1534_v22  ;;  %10464 = vmatprep.mubr.msk.f32.mxu0 %vm428_vm0, %v12619_v38  ;;  %v12638_v25 = vmax.f32 %v2015_v39, 0.0  ;;  %v13953_v22 = vld [vmem:[#allocation51_spill] sm:$0xff]  ;;  %v1018_v39 = vpop.permute.xlu1 %1017  ;;  %v1013_v30 = vpop.permute.xlu0 %1012 }
 0x3e8   :  { %v10408_v6 = vpop.f32.mrf.mxu1  ;;  %10465 = vmatmul.mubr.msk.f32.gmra.mxu0 %vm428_vm0, %v12625_v23  ;;  %v1062_v2 = vadd.f32 %v993_v34, %v13953_v22  ;;  %v1067_v4 = vadd.f32 %v13956_v47, %v1018_v39  ;;  %v13959_v39 = vld [vmem:[#allocation57_spill] sm:$0xff] }
 0x3e9   :  { %v12635_v5 = vmax.f32 %v2014_v57, 0.0  ;;  %v2017_v8 = vadd.f32 %v10408_v6, %v1537_v41  ;;  %v13954_v41 = vld [vmem:[#allocation52_spill] sm:$0xff] }
 0x3ea   :  { %v1921_v18 = vpop.f32.mrf.mxu1  ;;  %v1542_v17 = vadd.f32 %v12607_v35, %v1062_v2  ;;  %v1065_v6 = vadd.f32 %v13954_v41, %v1008_v33 }
 0x3eb   :  { %v2016_v51 = vadd.f32 %v1921_v18, %v1536_v24  ;;  %10467 = vmatprep.mubr.msk.f32.mxu0 %vm428_vm0, %v12635_v5  ;;  %v12651_v27 = vmax.f32 %v2017_v8, 0.0  ;;  %v10348_v24 = vpop.f32.mrf.mxu0  ;;  %v13955_v18 = vld [vmem:[#allocation53_spill] sm:$0xff]  ;;  %v1028_v35 = vpop.permute.xlu1 %1027 }
 0x3ec   :  { %v10411_v43 = vpop.f32.mrf.mxu1  ;;  %10468 = vmatmul.mubr.msk.f32.gmra.mxu0 %vm428_vm0, %v12638_v25  ;;  %v1064_v42 = vadd.f32 %v1003_v26, %v13955_v18  ;;  %v1545_v56 = vadd.f32 %v12623_v16, %v1065_v6  ;;  %v1547_v16 = vadd.f32 %v10345_v10, %v1067_v4  ;;  %v1069_v44 = vadd.f32 %v13958_v55, %v1028_v35  ;;  %v13960_v6 = vld [vmem:[#allocation58_spill] sm:$0xff]  ;;  %v3113_v55 = vld [vmem:[#allocation9 + $0x90] sm:$0xff] }
 0x3ed   :  { %v12648_v0 = vmax.f32 %v2016_v51, 0.0  ;;  %v2019_v29 = vadd.f32 %v10411_v43, %v1539_v45  ;;  %v1023_v43 = vpop.permute.xlu0 %1022 }
 0x3ee   :  { %v1931_v7 = vpop.f32.mrf.mxu1  ;;  %v1544_v33 = vadd.f32 %v1481_v50, %v1064_v42 }
 0x3ef   :  { %v2018_v49 = vadd.f32 %v1931_v7, %v1538_v3  ;;  %10470 = vmatprep.mubr.msk.f32.mxu0 %vm428_vm0, %v12648_v0  ;;  %v12663_v12 = vmax.f32 %v2019_v29, 0.0  ;;  %v1501_v29 = vpop.f32.mrf.mxu0 }
 0x3f0   :  { %v10414_v9 = vpop.f32.mrf.mxu1  ;;  %10471 = vmatmul.mubr.msk.f32.gmra.mxu0 %vm428_vm0, %v12651_v27 }
 0x3f1   :  { %v12660_v20 = vmax.f32 %v2018_v49, 0.0  ;;  %v2021_v36 = vadd.f32 %v10414_v9, %v1541_v21  ;;  %v1066_v49 = vadd.f32 %v1013_v30, %v13957_v46  ;;  %v1068_v30 = vadd.f32 %v1023_v43, %v13959_v39  ;;  %v1033_v10 = vpop.permute.xlu0 %1032 }
 0x3f2   :  { %v1941_v60 = vpop.f32.mrf.mxu1 }
 0x3f3   :  { %v2020_v61 = vadd.f32 %v1941_v60, %v1540_v37  ;;  %10473 = vmatprep.mubr.msk.f32.mxu0 %vm428_vm0, %v12660_v20  ;;  %v12675_v34 = vmax.f32 %v2021_v36, 0.0  ;;  %v1546_v50 = vadd.f32 %v1491_v1, %v1066_v49  ;;  %v10351_v36 = vpop.f32.mrf.mxu0  ;;  %v1548_v1 = vadd.f32 %v1501_v29, %v1068_v30 }
 0x3f4   :  { %v10417_v15 = vpop.f32.mrf.mxu1  ;;  %10474 = vmatmul.mubr.msk.f32.gmra.mxu0 %vm428_vm0, %v12663_v12 }
 0x3f5   :  { %v12672_v57 = vmax.f32 %v2020_v61, 0.0  ;;  %v2023_v59 = vadd.f32 %v10417_v15, %v1543_v40  ;;  %v1038_v61 = vpop.permute.xlu1 %1037  ;;  %v1549_v15 = vadd.f32 %v10348_v24, %v1069_v44  ;;  %v3111_v44 = vld [vmem:[#allocation9 + $0x80] sm:$0xff] }
 0x3f6   :  { %v1951_v8 = vpop.f32.mrf.mxu1 }
 0x3f7   :  { %v2022_v51 = vadd.f32 %v1951_v8, %v1542_v17  ;;  %10476 = vmatprep.mubr.msk.f32.mxu0 %vm428_vm0, %v12672_v57  ;;  %v12686_v7 = vmax.f32 %v2023_v59, 0.0  ;;  %v1071_v59 = vadd.f32 %v13960_v6, %v1038_v61  ;;  %v1511_v8 = vpop.f32.mrf.mxu0 }
 0x3f8   :  { %v10420_v45 = vpop.f32.mrf.mxu1  ;;  %10477 = vmatmul.mubr.msk.f32.gmra.mxu0 %vm428_vm0, %v12675_v34 }
 0x3f9   :  { %v12683_v3 = vmax.f32 %v2022_v51, 0.0  ;;  %v2025_v26 = vadd.f32 %v10420_v45, %v1545_v56  ;;  %v13961_v56 = vld [vmem:[#allocation59_spill] sm:$0xff]  ;;  %v1551_v24 = vadd.f32 %v10351_v36, %v1071_v59 }
 0x3fa   :  { %v1961_v11 = vpop.f32.mrf.mxu1  ;;  %v1070_v45 = vadd.f32 %v1033_v10, %v13961_v56 }
 0x3fb   :  { %v2024_v21 = vadd.f32 %v1961_v11, %v1544_v33  ;;  %10479 = vmatprep.mubr.msk.f32.mxu0 %vm428_vm0, %v12683_v3  ;;  %v12696_v60 = vmax.f32 %v2025_v26, 0.0 }
 0x3fc   :  { %v10423_v9 = vpop.f32.mrf.mxu1  ;;  %10480 = vmatmul.mubr.msk.f32.gmra.mxu0 %vm428_vm0, %v12686_v7  ;;  %v1550_v33 = vadd.f32 %v1511_v8, %v1070_v45 }
 0x3fd   :  { %v12693_v37 = vmax.f32 %v2024_v21, 0.0  ;;  %v2027_v22 = vadd.f32 %v10423_v9, %v1547_v16  ;;  %v3117_v21 = vld [vmem:[#allocation9 + $0xb0] sm:$0xff]  ;;  %v3116_v16 = vld [vmem:[#allocation9 + $0xa8] sm:$0xff]  ;;  %v3115_v9 = vld [vmem:[#allocation9 + $0xa0] sm:$0xff] }
 0x3fe   :  { %v1971_v2 = vpop.f32.mrf.mxu1 }
 0x3ff   :  { %v2026_v40 = vadd.f32 %v1971_v2, %v1546_v50  ;;  %10482 = vmatprep.mubr.msk.f32.mxu0 %vm428_vm0, %v12693_v37  ;;  %v12706_v18 = vmax.f32 %v2027_v22, 0.0  ;;  %v3114_v50 = vld [vmem:[#allocation9 + $0x98] sm:$0xff] }
 0x400   :  { %v10426_v17 = vpop.f32.mrf.mxu1  ;;  %10483 = vmatmul.mubr.msk.f32.gmra.mxu0 %vm428_vm0, %v12696_v60 }
 0x401   :  { %v12703_v41 = vmax.f32 %v2026_v40, 0.0  ;;  %v2029_v42 = vadd.f32 %v10426_v17, %v1549_v15 }
 0x402   :  { %v1981_v51 = vpop.f32.mrf.mxu1 }
 0x403   :  { %v2028_v35 = vadd.f32 %v1981_v51, %v1548_v1  ;;  %10485 = vmatprep.mubr.msk.f32.mxu0 %vm428_vm0, %v12703_v41  ;;  %v12715_v4 = vmax.f32 %v2029_v42, 0.0 }
 0x404   :  { %v10429_v43 = vpop.f32.mrf.mxu1  ;;  %10486 = vmatmul.mubr.msk.f32.gmra.mxu0 %vm428_vm0, %v12706_v18 }
 0x405   :  { %v12713_v47 = vmax.f32 %v2028_v35, 0.0  ;;  %v2031_v29 = vadd.f32 %v10429_v43, %v1551_v24  ;;  %v2409_v24 = vld [vmem:[#allocation7] sm:$0xff]  ;;  %v2412_v43 = vld [vmem:[#allocation7 + $0x18] sm:$0xff] }
 0x406   :  { %v1991_v26 = vpop.f32.mrf.mxu1 }
 0x407   :  { %v2030_v11 = vadd.f32 %v1991_v26, %v1550_v33  ;;  %10488 = vmatprep.mubr.msk.f32.mxu0 %vm428_vm0, %v12713_v47  ;;  %v12723_v49 = vmax.f32 %v2031_v29, 0.0  ;;  %v2414_v29 = vld [vmem:[#allocation7 + $0x28] sm:$0xff] }
 0x408   :  { %10489 = vmatmul.mubr.msk.f32.gmra.mxu0 %vm428_vm0, %v12715_v4 }
 0x409   :  { %v12721_v46 = vmax.f32 %v2030_v11, 0.0 }
 0x40b   :  { %10491 = vmatprep.mubr.msk.f32.mxu0 %vm428_vm0, %v12721_v46 }
 0x40c   :  { %10492 = vmatmul.mubr.msk.f32.gmra.mxu0 %vm428_vm0, %v12723_v49 }
 0x40d   :  { %10510 = vmatprep.mubr.msk.f32.mxu0 %vm428_vm0, %v12515_v62 }
 0x410   :  { %10511 = vmatmul.mubr.msk.f32.vlgmr.msra.gmra.mxu0 %vm428_vm0, %v12520_v58 }
 0x411   :  { %10513 = vmatprep.mubr.msk.f32.mxu0 %vm428_vm0, %v12531_v32  ;;  %10559 = vmatpush3.msra.mxu0 %v12586_v19  ;;  %v3112_v19 = vld [vmem:[#allocation9 + $0x88] sm:$0xff] }
 0x412   :  { %10560 = vmatprep.subr.mxu0 %v3117_v21 }
 0x413   :  { %10561 = vmatpush3.msra.mxu0 %v3117_v21 }
 0x414   :  { %10514 = vmatmul.mubr.msk.f32.gmra.mxu0 %vm428_vm0, %v12537_v28  ;;  %10562 = vmatprep.subr.mxu0 %v3116_v16 }
 0x415   :  { %10516 = vmatprep.mubr.msk.f32.mxu0 %vm428_vm0, %v12550_v14  ;;  %10563 = vmatpush3.msra.mxu0 %v3116_v16 }
 0x416   :  { %10564 = vmatprep.subr.mxu0 %v3115_v9 }
 0x417   :  { %10565 = vmatpush3.msra.mxu0 %v3115_v9  ;;  %v2415_v9 = vld [vmem:[#allocation7 + $0x30] sm:$0xff] }
 0x418   :  { %10517 = vmatmul.mubr.msk.f32.gmra.mxu0 %vm428_vm0, %v12556_v54  ;;  %10566 = vmatprep.subr.mxu0 %v3114_v50 }
 0x419   :  { %10519 = vmatprep.mubr.msk.f32.mxu0 %vm428_vm0, %v12566_v13  ;;  %10567 = vmatpush3.msra.mxu0 %v3114_v50  ;;  %v2418_v50 = vld [vmem:[#allocation7 + $0x48] sm:$0xff] }
 0x41a   :  { %10568 = vmatprep.subr.mxu0 %v3113_v55 }
 0x41b   :  { %10569 = vmatpush3.msra.mxu0 %v3113_v55 }
 0x41c   :  { %10520 = vmatmul.mubr.msk.f32.gmra.mxu0 %vm428_vm0, %v12572_v31  ;;  %10570 = vmatprep.subr.mxu0 %v3112_v19 }
 0x41d   :  { %10522 = vmatprep.mubr.msk.f32.mxu0 %vm428_vm0, %v12584_v52  ;;  %10571 = vmatpush3.msra.mxu0 %v3112_v19 }
 0x41e   :  { %10572 = vmatprep.subr.mxu0 %v3111_v44 }
 0x41f   :  { %10573 = vmatpush3.msra.mxu0 %v3111_v44  ;;  %v2417_v44 = vld [vmem:[#allocation7 + $0x40] sm:$0xff] }
 0x420   :  { %10523 = vmatmul.mubr.msk.f32.gmra.mxu0 %vm428_vm0, %v12592_v53 }
 0x421   :  { %10525 = vmatprep.mubr.msk.f32.mxu0 %vm428_vm0, %v12603_v63 }
 0x424   :  { %10526 = vmatmul.mubr.msk.f32.gmra.mxu0 %vm428_vm0, %v12609_v48 }
 0x425   :  { %10528 = vmatprep.mubr.msk.f32.mxu0 %vm428_vm0, %v12619_v38 }
 0x428   :  { %10529 = vmatmul.mubr.msk.f32.gmra.mxu0 %vm428_vm0, %v12625_v23 }
 0x429   :  { %10531 = vmatprep.mubr.msk.f32.mxu0 %vm428_vm0, %v12635_v5 }
 0x42c   :  { %10532 = vmatmul.mubr.msk.f32.gmra.mxu0 %vm428_vm0, %v12638_v25 }
 0x42d   :  { %10534 = vmatprep.mubr.msk.f32.mxu0 %vm428_vm0, %v12648_v0 }
 0x430   :  { %10535 = vmatmul.mubr.msk.f32.gmra.mxu0 %vm428_vm0, %v12651_v27 }
 0x431   :  { %10537 = vmatprep.mubr.msk.f32.mxu0 %vm428_vm0, %v12660_v20 }
 0x434   :  { %10538 = vmatmul.mubr.msk.f32.gmra.mxu0 %vm428_vm0, %v12663_v12 }
 0x435   :  { %10540 = vmatprep.mubr.msk.f32.mxu0 %vm428_vm0, %v12672_v57 }
 0x438   :  { %10541 = vmatmul.mubr.msk.f32.gmra.mxu0 %vm428_vm0, %v12675_v34 }
 0x439   :  { %10543 = vmatprep.mubr.msk.f32.mxu0 %vm428_vm0, %v12683_v3 }
 0x43c   :  { %10544 = vmatmul.mubr.msk.f32.gmra.mxu0 %vm428_vm0, %v12686_v7 }
 0x43d   :  { %10546 = vmatprep.mubr.msk.f32.mxu0 %vm428_vm0, %v12693_v37 }
 0x440   :  { %10547 = vmatmul.mubr.msk.f32.gmra.mxu0 %vm428_vm0, %v12696_v60 }
 0x441   :  { %10549 = vmatprep.mubr.msk.f32.mxu0 %vm428_vm0, %v12703_v41 }
 0x444   :  { %10550 = vmatmul.mubr.msk.f32.gmra.mxu0 %vm428_vm0, %v12706_v18 }
 0x445   :  { %10552 = vmatprep.mubr.msk.f32.mxu0 %vm428_vm0, %v12713_v47 }
 0x448   :  { %10553 = vmatmul.mubr.msk.f32.gmra.mxu0 %vm428_vm0, %v12715_v4 }
 0x449   :  { %10555 = vmatprep.mubr.msk.f32.mxu0 %vm428_vm0, %v12721_v46 }
 0x44c   :  { %10556 = vmatmul.mubr.msk.f32.gmra.mxu0 %vm428_vm0, %v12723_v49 }
 0x44d   :  { %10574 = vmatprep.mubr.msk.f32.mxu0 %vm428_vm0, %v12515_v62  ;;  %v2410_v62 = vld [vmem:[#allocation7 + $0x8] sm:$0xff] }
 0x44e   :  { %2505 = vmatprep.mubr.f32.mxu1 %v2410_v62  ;;  %v2420_v62 = vld [vmem:[#allocation7 + $0x58] sm:$0xff] }
 0x450   :  { %10575 = vmatmul.mubr.msk.f32.vlgmr.msra.gmra.mxu0 %vm428_vm0, %v12520_v58 }
 0x451   :  { %10577 = vmatprep.mubr.msk.f32.mxu0 %vm428_vm0, %v12531_v32 }
 0x454   :  { %10578 = vmatmul.mubr.msk.f32.gmra.mxu0 %vm428_vm0, %v12537_v28 }
 0x455   :  { %10580 = vmatprep.mubr.msk.f32.mxu0 %vm428_vm0, %v12550_v14 }
 0x458   :  { %10581 = vmatmul.mubr.msk.f32.gmra.mxu0 %vm428_vm0, %v12556_v54 }
 0x459   :  { %10583 = vmatprep.mubr.msk.f32.mxu0 %vm428_vm0, %v12566_v13 }
 0x45c   :  { %10584 = vmatmul.mubr.msk.f32.gmra.mxu0 %vm428_vm0, %v12572_v31 }
 0x45d   :  { %10586 = vmatprep.mubr.msk.f32.mxu0 %vm428_vm0, %v12584_v52 }
 0x460   :  { %10587 = vmatmul.mubr.msk.f32.gmra.mxu0 %vm428_vm0, %v12592_v53 }
 0x461   :  { %10589 = vmatprep.mubr.msk.f32.mxu0 %vm428_vm0, %v12603_v63 }
 0x464   :  { %10590 = vmatmul.mubr.msk.f32.gmra.mxu0 %vm428_vm0, %v12609_v48 }
 0x465   :  { %10592 = vmatprep.mubr.msk.f32.mxu0 %vm428_vm0, %v12619_v38 }
 0x468   :  { %10593 = vmatmul.mubr.msk.f32.gmra.mxu0 %vm428_vm0, %v12625_v23 }
 0x469   :  { %10595 = vmatprep.mubr.msk.f32.mxu0 %vm428_vm0, %v12635_v5 }
 0x46c   :  { %10596 = vmatmul.mubr.msk.f32.gmra.mxu0 %vm428_vm0, %v12638_v25 }
 0x46d   :  { %10598 = vmatprep.mubr.msk.f32.mxu0 %vm428_vm0, %v12648_v0 }
 0x470   :  { %10599 = vmatmul.mubr.msk.f32.gmra.mxu0 %vm428_vm0, %v12651_v27 }
 0x471   :  { %10601 = vmatprep.mubr.msk.f32.mxu0 %vm428_vm0, %v12660_v20 }
 0x474   :  { %10602 = vmatmul.mubr.msk.f32.gmra.mxu0 %vm428_vm0, %v12663_v12 }
 0x475   :  { %10604 = vmatprep.mubr.msk.f32.mxu0 %vm428_vm0, %v12672_v57 }
 0x478   :  { %10605 = vmatmul.mubr.msk.f32.gmra.mxu0 %vm428_vm0, %v12675_v34 }
 0x479   :  { %10607 = vmatprep.mubr.msk.f32.mxu0 %vm428_vm0, %v12683_v3 }
 0x47c   :  { %10608 = vmatmul.mubr.msk.f32.gmra.mxu0 %vm428_vm0, %v12686_v7 }
 0x47d   :  { %10610 = vmatprep.mubr.msk.f32.mxu0 %vm428_vm0, %v12693_v37 }
 0x480   :  { %10611 = vmatmul.mubr.msk.f32.gmra.mxu0 %vm428_vm0, %v12696_v60 }
 0x481   :  { %10613 = vmatprep.mubr.msk.f32.mxu0 %vm428_vm0, %v12703_v41 }
 0x484   :  { %10614 = vmatmul.mubr.msk.f32.gmra.mxu0 %vm428_vm0, %v12706_v18 }
 0x485   :  { %10616 = vmatprep.mubr.msk.f32.mxu0 %vm428_vm0, %v12713_v47 }
 0x488   :  { %10617 = vmatmul.mubr.msk.f32.gmra.mxu0 %vm428_vm0, %v12715_v4  ;;  %v2411_v4 = vld [vmem:[#allocation7 + $0x10] sm:$0xff] }
 0x489   :  { %10619 = vmatprep.mubr.msk.f32.mxu0 %vm428_vm0, %v12721_v46  ;;  %v2413_v46 = vld [vmem:[#allocation7 + $0x20] sm:$0xff] }
 0x48c   :  { %10620 = vmatmul.mubr.msk.f32.gmra.mxu0 %vm428_vm0, %v12723_v49  ;;  %v2416_v49 = vld [vmem:[#allocation7 + $0x38] sm:$0xff] }
 0x490   :  { %v12858_v58 = vpop.f32.mrf.mxu0 }
 0x492   :  { %v12860_v32 = vpop.f32.mrf.mxu0 }
 0x494   :  { %v12862_v28 = vpop.f32.mrf.mxu0 }
 0x496   :  { %v12864_v14 = vpop.f32.mrf.mxu0 }
 0x498   :  { %v10454_v54 = vpop.f32.mrf.mxu0 }
 0x49a   :  { %v2270_v13 = vpop.f32.mrf.mxu0 }
 0x49c   :  { %v10457_v31 = vpop.f32.mrf.mxu0 }
 0x49e   :  { %v2280_v52 = vpop.f32.mrf.mxu0 }
 0x4a0   :  { %v10460_v53 = vpop.f32.mrf.mxu0 }
 0x4a2   :  { %v2290_v63 = vpop.f32.mrf.mxu0 }
 0x4a4   :  { %v10463_v48 = vpop.f32.mrf.mxu0 }
 0x4a6   :  { %v2300_v38 = vpop.f32.mrf.mxu0 }
 0x4a8   :  { %v10466_v23 = vpop.f32.mrf.mxu0 }
 0x4aa   :  { %v2310_v5 = vpop.f32.mrf.mxu0 }
 0x4ac   :  { %v10469_v25 = vpop.f32.mrf.mxu0 }
 0x4ae   :  { %v2320_v0 = vpop.f32.mrf.mxu0 }
 0x4b0   :  { %v10472_v27 = vpop.f32.mrf.mxu0 }
 0x4b2   :  { %v2330_v20 = vpop.f32.mrf.mxu0 }
 0x4b4   :  { %v10475_v12 = vpop.f32.mrf.mxu0 }
 0x4b6   :  { %v2340_v57 = vpop.f32.mrf.mxu0 }
 0x4b8   :  { %v10478_v34 = vpop.f32.mrf.mxu0 }
 0x4ba   :  { %v2350_v3 = vpop.f32.mrf.mxu0 }
 0x4bc   :  { %v10481_v7 = vpop.f32.mrf.mxu0 }
 0x4be   :  { %v2360_v37 = vpop.f32.mrf.mxu0 }
 0x4c0   :  { %v10484_v36 = vpop.f32.mrf.mxu0 }
 0x4c2   :  { %v2370_v60 = vpop.f32.mrf.mxu0 }
 0x4c4   :  { %v10487_v22 = vpop.f32.mrf.mxu0 }
 0x4c6   :  { %v2380_v2 = vpop.f32.mrf.mxu0 }
 0x4c8   :  { %v10490_v39 = vpop.f32.mrf.mxu0 }
 0x4ca   :  { %v2390_v30 = vpop.f32.mrf.mxu0 }
 0x4cc   :  { %v10493_v61 = vpop.f32.mrf.mxu0 }
 0x4cd   :  { %9376 = vmatprep.subr.mxu1 %v10493_v61  ;;  %v2433_v61 = vld [vmem:[#allocation7 + $0xc0] sm:$0xff] }
 0x4ce   :  { %v2400_v40 = vpop.f32.mrf.mxu0  ;;  %9377 = vmatpush3.msra.mxu1 %v10469_v25  ;;  %v2425_v25 = vld [vmem:[#allocation7 + $0x80] sm:$0xff] }
 0x4cf   :  { %9378 = vmatprep.subr.mxu1 %v2400_v40  ;;  %v2436_v40 = vld [vmem:[#allocation7 + $0xd8] sm:$0xff] }
 0x4d0   :  { %9379 = vmatpush3.msra.mxu1 %v2320_v0  ;;  %v12866_v10 = vpop.f32.mrf.mxu0  ;;  %v2428_v0 = vld [vmem:[#allocation7 + $0x98] sm:$0xff] }
 0x4d1   :  { %9380 = vmatprep.subr.mxu1 %v10490_v39 }
 0x4d2   :  { %9381 = vmatpush3.msra.mxu1 %v10466_v23  ;;  %v12868_v15 = vpop.f32.mrf.mxu0 }
 0x4d3   :  { %9382 = vmatprep.subr.mxu1 %v2390_v30 }
 0x4d4   :  { %9383 = vmatpush3.msra.mxu1 %v2310_v5  ;;  %v12870_v17 = vpop.f32.mrf.mxu0 }
 0x4d5   :  { %9384 = vmatprep.subr.mxu1 %v10487_v22  ;;  %v2431_v22 = vld [vmem:[#allocation7 + $0xb0] sm:$0xff] }
 0x4d6   :  { %9385 = vmatpush3.msra.mxu1 %v10463_v48  ;;  %v12872_v1 = vpop.f32.mrf.mxu0  ;;  %v2423_v48 = vld [vmem:[#allocation7 + $0x70] sm:$0xff] }
 0x4d7   :  { %9386 = vmatprep.subr.mxu1 %v2380_v2  ;;  %v2434_v2 = vld [vmem:[#allocation7 + $0xc8] sm:$0xff] }
 0x4d8   :  { %9387 = vmatpush3.msra.mxu1 %v2300_v38  ;;  %v12874_v41 = vpop.f32.mrf.mxu0  ;;  %v2426_v38 = vld [vmem:[#allocation7 + $0x88] sm:$0xff] }
 0x4d9   :  { %9388 = vmatprep.subr.mxu1 %v10484_v36 }
 0x4da   :  { %9389 = vmatpush3.msra.mxu1 %v10460_v53  ;;  %v12876_v6 = vpop.f32.mrf.mxu0 }
 0x4db   :  { %9390 = vmatprep.subr.mxu1 %v2370_v60 }
 0x4dc   :  { %9391 = vmatpush3.msra.mxu1 %v2290_v63  ;;  %v12878_v59 = vpop.f32.mrf.mxu0 }
 0x4dd   :  { %9392 = vmatprep.subr.mxu1 %v10481_v7  ;;  %v2429_v7 = vld [vmem:[#allocation7 + $0xa0] sm:$0xff] }
 0x4de   :  { %9393 = vmatpush3.msra.mxu1 %v10457_v31  ;;  %v12880_v8 = vpop.f32.mrf.mxu0  ;;  %v2421_v31 = vld [vmem:[#allocation7 + $0x60] sm:$0xff] }
 0x4df   :  { %9394 = vmatprep.subr.mxu1 %v2360_v37  ;;  %v2432_v37 = vld [vmem:[#allocation7 + $0xb8] sm:$0xff] }
 0x4e0   :  { %9395 = vmatpush3.msra.mxu1 %v2280_v52  ;;  %v12882_v18 = vpop.f32.mrf.mxu0  ;;  %v2424_v52 = vld [vmem:[#allocation7 + $0x78] sm:$0xff] }
 0x4e1   :  { %9396 = vmatprep.subr.mxu1 %v10478_v34 }
 0x4e2   :  { %9397 = vmatpush3.msra.mxu1 %v10454_v54  ;;  %v12884_v42 = vpop.f32.mrf.mxu0 }
 0x4e3   :  { %9398 = vmatprep.subr.mxu1 %v2350_v3 }
 0x4e4   :  { %9399 = vmatpush3.msra.mxu1 %v2270_v13  ;;  %v12886_v51 = vpop.f32.mrf.mxu0 }
 0x4e5   :  { %9400 = vmatprep.subr.mxu1 %v10475_v12  ;;  %v2427_v12 = vld [vmem:[#allocation7 + $0x90] sm:$0xff] }
 0x4e6   :  { %9401 = vmatpush3.msra.mxu1 %v12862_v28  ;;  %v12889_v56 = vpop.f32.mrf.mxu0  ;;  %v2419_v28 = vld [vmem:[#allocation7 + $0x50] sm:$0xff] }
 0x4e7   :  { %9402 = vmatprep.subr.mxu1 %v2340_v57  ;;  %v2430_v57 = vld [vmem:[#allocation7 + $0xa8] sm:$0xff] }
 0x4e8   :  { %9403 = vmatpush3.msra.mxu1 %v12864_v14  ;;  %v12892_v45 = vpop.f32.mrf.mxu0  ;;  %v2422_v14 = vld [vmem:[#allocation7 + $0x68] sm:$0xff] }
 0x4e9   :  { %9404 = vmatprep.subr.mxu1 %v10472_v27 }
 0x4ea   :  { %9405 = vmatpush3.msra.mxu1 %v12858_v58  ;;  %v12895_v35 = vpop.f32.mrf.mxu0 }
 0x4eb   :  { %9406 = vmatprep.subr.mxu1 %v2330_v20 }
 0x4ec   :  { %9407 = vmatpush3.msra.mxu1 %v12860_v32  ;;  %v10533_v33 = vpop.f32.mrf.mxu0 }
 0x4ed   :  { %2506 = vmatmul.mubr.f32.vlgmr.msra.gmra.mxu1 %v2409_v24  ;;  %v2440_v24 = vld [vmem:[#allocation7 + $0xf8] sm:$0xff] }
 0x4ee   :  { %v2827_v47 = vpop.f32.mrf.mxu0  ;;  %2510 = vmatprep.mubr.f32.mxu1 %v2412_v43 }
 0x4f0   :  { %v12898_v26 = vpop.f32.mrf.mxu0 }
 0x4f1   :  { %2511 = vmatmul.mubr.f32.gmra.mxu1 %v2411_v4  ;;  %v2920_v4 = vld [vmem:[#allocation7 + $0x118] sm:$0xff] }
 0x4f2   :  { %v12900_v11 = vpop.f32.mrf.mxu0  ;;  %2515 = vmatprep.mubr.f32.mxu1 %v2414_v29 }
 0x4f4   :  { %v12902_v21 = vpop.f32.mrf.mxu0 }
 0x4f5   :  { %2516 = vmatmul.mubr.f32.gmra.mxu1 %v2413_v46 }
 0x4f6   :  { %v12904_v16 = vpop.f32.mrf.mxu0  ;;  %2520 = vmatprep.mubr.f32.mxu1 %v2416_v49  ;;  %v2922_v49 = vld [vmem:[#allocation7 + $0x128] sm:$0xff] }
 0x4f8   :  { %v12906_v55 = vpop.f32.mrf.mxu0 }
 0x4f9   :  { %2521 = vmatmul.mubr.f32.gmra.mxu1 %v2415_v9 }
 0x4fa   :  { %v12908_v19 = vpop.f32.mrf.mxu0  ;;  %2525 = vmatprep.mubr.f32.mxu1 %v2418_v50  ;;  %v2926_v50 = vld [vmem:[#allocation7 + $0x148] sm:$0xff] }
 0x4fc   :  { %v12910_v58 = vpop.f32.mrf.mxu0 }
 0x4fd   :  { %2526 = vmatmul.mubr.f32.gmra.mxu1 %v2417_v44  ;;  %v2925_v44 = vld [vmem:[#allocation7 + $0x140] sm:$0xff] }
 0x4fe   :  { %v12912_v32 = vpop.f32.mrf.mxu0  ;;  %2530 = vmatprep.mubr.f32.mxu1 %v2420_v62  ;;  %v2928_v62 = vld [vmem:[#allocation7 + $0x158] sm:$0xff] }
 0x500   :  { %v10548_v54 = vpop.f32.mrf.mxu0 }
 0x501   :  { %2531 = vmatmul.mubr.f32.gmra.mxu1 %v2419_v28  ;;  %v2927_v28 = vld [vmem:[#allocation7 + $0x150] sm:$0xff] }
 0x502   :  { %v2877_v13 = vpop.f32.mrf.mxu0  ;;  %2535 = vmatprep.mubr.f32.mxu1 %v2422_v14  ;;  %v2930_v14 = vld [vmem:[#allocation7 + $0x168] sm:$0xff] }
 0x504   :  { %v10551_v53 = vpop.f32.mrf.mxu0 }
 0x505   :  { %2536 = vmatmul.mubr.f32.gmra.mxu1 %v2421_v31  ;;  %v2929_v31 = vld [vmem:[#allocation7 + $0x160] sm:$0xff] }
 0x506   :  { %v2887_v63 = vpop.f32.mrf.mxu0  ;;  %2540 = vmatprep.mubr.f32.mxu1 %v2424_v52  ;;  %v2932_v52 = vld [vmem:[#allocation7 + $0x178] sm:$0xff] }
 0x508   :  { %v10554_v23 = vpop.f32.mrf.mxu0 }
 0x509   :  { %2541 = vmatmul.mubr.f32.gmra.mxu1 %v2423_v48  ;;  %v2931_v48 = vld [vmem:[#allocation7 + $0x170] sm:$0xff] }
 0x50a   :  { %v2897_v5 = vpop.f32.mrf.mxu0  ;;  %2545 = vmatprep.mubr.f32.mxu1 %v2426_v38  ;;  %v2934_v38 = vld [vmem:[#allocation7 + $0x188] sm:$0xff] }
 0x50c   :  { %v10557_v27 = vpop.f32.mrf.mxu0 }
 0x50d   :  { %2546 = vmatmul.mubr.f32.gmra.mxu1 %v2425_v25  ;;  %9496 = vmatprep.subr.mxu1 %v10557_v27  ;;  %v2933_v25 = vld [vmem:[#allocation7 + $0x180] sm:$0xff] }
 0x50e   :  { %v2907_v20 = vpop.f32.mrf.mxu0  ;;  %9497 = vmatpush3.msra.mxu1 %v10533_v33  ;;  %2550 = vmatprep.mubr.f32.mxu1 %v2428_v0  ;;  %v2918_v33 = vld [vmem:[#allocation7 + $0x108] sm:$0xff]  ;;  %v2936_v0 = vld [vmem:[#allocation7 + $0x198] sm:$0xff] }
 0x50f   :  { %9498 = vmatprep.subr.mxu1 %v2907_v20 }
 0x510   :  { %9499 = vmatpush3.msra.mxu1 %v2827_v47  ;;  %v12914_v34 = vpop.f32.mrf.mxu0 }
 0x511   :  { %2551 = vmatmul.mubr.f32.gmra.mxu1 %v2427_v12  ;;  %9500 = vmatprep.subr.mxu1 %v10554_v23  ;;  %v2935_v12 = vld [vmem:[#allocation7 + $0x190] sm:$0xff] }
 0x512   :  { %9501 = vmatpush3.msra.mxu1 %v12892_v45  ;;  %v12917_v3 = vpop.f32.mrf.mxu0  ;;  %2555 = vmatprep.mubr.f32.mxu1 %v2430_v57  ;;  %v2435_v45 = vld [vmem:[#allocation7 + $0xd0] sm:$0xff]  ;;  %v2938_v57 = vld [vmem:[#allocation7 + $0x1a8] sm:$0xff] }
 0x513   :  { %9502 = vmatprep.subr.mxu1 %v2897_v5 }
 0x514   :  { %9503 = vmatpush3.msra.mxu1 %v12895_v35  ;;  %v12920_v36 = vpop.f32.mrf.mxu0 }
 0x515   :  { %2556 = vmatmul.mubr.f32.gmra.mxu1 %v2429_v7  ;;  %9504 = vmatprep.subr.mxu1 %v10551_v53  ;;  %v2937_v7 = vld [vmem:[#allocation7 + $0x1a0] sm:$0xff] }
 0x516   :  { %9505 = vmatpush3.msra.mxu1 %v12886_v51  ;;  %v12923_v60 = vpop.f32.mrf.mxu0  ;;  %2560 = vmatprep.mubr.f32.mxu1 %v2432_v37  ;;  %v2940_v37 = vld [vmem:[#allocation7 + $0x1b8] sm:$0xff] }
 0x517   :  { %9506 = vmatprep.subr.mxu1 %v2887_v63 }
 0x518   :  { %9507 = vmatpush3.msra.mxu1 %v12889_v56  ;;  %v12926_v39 = vpop.f32.mrf.mxu0 }
 0x519   :  { %2561 = vmatmul.mubr.f32.gmra.mxu1 %v2431_v22  ;;  %9508 = vmatprep.subr.mxu1 %v10548_v54  ;;  %v2939_v22 = vld [vmem:[#allocation7 + $0x1b0] sm:$0xff] }
 0x51a   :  { %9509 = vmatpush3.msra.mxu1 %v12882_v18  ;;  %v12929_v30 = vpop.f32.mrf.mxu0  ;;  %2565 = vmatprep.mubr.f32.mxu1 %v2434_v2  ;;  %v2438_v18 = vld [vmem:[#allocation7 + $0xe8] sm:$0xff] }
 0x51b   :  { %9510 = vmatprep.subr.mxu1 %v2877_v13  ;;  %v2942_v2 = vld [vmem:[#allocation7 + $0x1c8] sm:$0xff] }
 0x51c   :  { %9511 = vmatpush3.msra.mxu1 %v12884_v42  ;;  %v12932_v51 = vpop.f32.mrf.mxu0 }
 0x51d   :  { %2566 = vmatmul.mubr.f32.gmra.mxu1 %v2433_v61  ;;  %9512 = vmatprep.subr.mxu1 %v12910_v58  ;;  %v2941_v61 = vld [vmem:[#allocation7 + $0x1c0] sm:$0xff] }
 0x51e   :  { %9513 = vmatpush3.msra.mxu1 %v12878_v59  ;;  %v12936_v56 = vpop.f32.mrf.mxu0  ;;  %2570 = vmatprep.mubr.f32.mxu1 %v2436_v40  ;;  %v2437_v59 = vld [vmem:[#allocation7 + $0xe0] sm:$0xff]  ;;  %v2944_v40 = vld [vmem:[#allocation7 + $0x1d8] sm:$0xff] }
 0x51f   :  { %9514 = vmatprep.subr.mxu1 %v12912_v32 }
 0x520   :  { %9515 = vmatpush3.msra.mxu1 %v12880_v8  ;;  %v12940_v35 = vpop.f32.mrf.mxu0 }
 0x521   :  { %2571 = vmatmul.mubr.f32.gmra.mxu1 %v2435_v45  ;;  %9516 = vmatprep.subr.mxu1 %v12906_v55  ;;  %v2943_v45 = vld [vmem:[#allocation7 + $0x1d0] sm:$0xff] }
 0x522   :  { %9517 = vmatpush3.msra.mxu1 %v12874_v41  ;;  %v12944_v42 = vpop.f32.mrf.mxu0  ;;  %2575 = vmatprep.mubr.f32.mxu1 %v2438_v18  ;;  %v2439_v41 = vld [vmem:[#allocation7 + $0xf0] sm:$0xff]  ;;  %v2946_v18 = vld [vmem:[#allocation7 + $0x1e8] sm:$0xff] }
 0x523   :  { %9518 = vmatprep.subr.mxu1 %v12908_v19 }
 0x524   :  { %9519 = vmatpush3.msra.mxu1 %v12876_v6  ;;  %v12948_v43 = vpop.f32.mrf.mxu0 }
 0x525   :  { %2576 = vmatmul.mubr.f32.gmra.mxu1 %v2437_v59  ;;  %9520 = vmatprep.subr.mxu1 %v12902_v21  ;;  %v3350_v59 = vld [vmem:[#allocation7 + $0x228] sm:$0xff] }
 0x526   :  { %9521 = vmatpush3.msra.mxu1 %v12870_v17  ;;  %v12952_v8 = vpop.f32.mrf.mxu0  ;;  %2580 = vmatprep.mubr.f32.mxu1 %v2440_v24  ;;  %v2917_v17 = vld [vmem:[#allocation7 + $0x100] sm:$0xff] }
 0x527   :  { %9522 = vmatprep.subr.mxu1 %v12904_v16  ;;  %v2924_v16 = vld [vmem:[#allocation7 + $0x138] sm:$0xff]  ;;  %v3349_v24 = vld [vmem:[#allocation7 + $0x220] sm:$0xff] }
 0x528   :  { %9523 = vmatpush3.msra.mxu1 %v12872_v1  ;;  %v12956_v47 = vpop.f32.mrf.mxu0  ;;  %v2919_v1 = vld [vmem:[#allocation7 + $0x110] sm:$0xff] }
 0x529   :  { %2581 = vmatmul.mubr.f32.gmra.mxu1 %v2439_v41  ;;  %9524 = vmatprep.subr.mxu1 %v12898_v26  ;;  %v3356_v41 = vld [vmem:[#allocation7 + $0x258] sm:$0xff] }
 0x52a   :  { %9525 = vmatpush3.msra.mxu1 %v12866_v10  ;;  %v12960_v6 = vpop.f32.mrf.mxu0  ;;  %3013 = vmatprep.mubr.f32.mxu1 %v2918_v33  ;;  %v2921_v10 = vld [vmem:[#allocation7 + $0x120] sm:$0xff]  ;;  %v3355_v33 = vld [vmem:[#allocation7 + $0x250] sm:$0xff] }
 0x52b   :  { %9526 = vmatprep.subr.mxu1 %v12900_v11 }
 0x52c   :  { %9527 = vmatpush3.msra.mxu1 %v12868_v15  ;;  %v10597_v29 = vpop.f32.mrf.mxu0  ;;  %v2923_v15 = vld [vmem:[#allocation7 + $0x130] sm:$0xff] }
 0x52d   :  { %3014 = vmatmul.mubr.f32.vlgmr.msra.gmra.mxu1 %v2917_v17  ;;  %v3359_v17 = vld [vmem:[#allocation7 + $0x270] sm:$0xff] }
 0x52e   :  { %v3255_v46 = vpop.f32.mrf.mxu0  ;;  %3018 = vmatprep.mubr.f32.mxu1 %v2920_v4  ;;  %v3362_v4 = vld [vmem:[#allocation7 + $0x288] sm:$0xff] }
 0x530   :  { %v12964_v21 = vpop.f32.mrf.mxu0 }
 0x531   :  { %3019 = vmatmul.mubr.f32.gmra.mxu1 %v2919_v1  ;;  %v3363_v1 = vld [vmem:[#allocation7 + $0x290] sm:$0xff] }
 0x532   :  { %v12966_v26 = vpop.f32.mrf.mxu0  ;;  %3023 = vmatprep.mubr.f32.mxu1 %v2922_v49  ;;  %v3366_v49 = vld [vmem:[#allocation7 + $0x2a8] sm:$0xff] }
 0x534   :  { %v12968_v9 = vpop.f32.mrf.mxu0 }
 0x535   :  { %3024 = vmatmul.mubr.f32.gmra.mxu1 %v2921_v10  ;;  %v3367_v10 = vld [vmem:[#allocation7 + $0x2b0] sm:$0xff] }
 0x536   :  { %v12970_v11 = vpop.f32.mrf.mxu0  ;;  %3028 = vmatprep.mubr.f32.mxu1 %v2924_v16  ;;  %v3370_v16 = vld [vmem:[#allocation7 + $0x2c8] sm:$0xff] }
 0x538   :  { %v12972_v55 = vpop.f32.mrf.mxu0 }
 0x539   :  { %3029 = vmatmul.mubr.f32.gmra.mxu1 %v2923_v15  ;;  %v3371_v15 = vld [vmem:[#allocation7 + $0x2d0] sm:$0xff] }
 0x53a   :  { %v12974_v19 = vpop.f32.mrf.mxu0  ;;  %3033 = vmatprep.mubr.f32.mxu1 %v2926_v50  ;;  %v3374_v50 = vld [vmem:[#allocation7 + $0x2e8] sm:$0xff] }
 0x53c   :  { %v10609_v58 = vpop.f32.mrf.mxu0 }
 0x53d   :  { %3034 = vmatmul.mubr.f32.gmra.mxu1 %v2925_v44  ;;  %v3375_v44 = vld [vmem:[#allocation7 + $0x2f0] sm:$0xff] }
 0x53e   :  { %v3295_v32 = vpop.f32.mrf.mxu0  ;;  %3038 = vmatprep.mubr.f32.mxu1 %v2928_v62 }
 0x540   :  { %v10612_v54 = vpop.f32.mrf.mxu0 }
 0x541   :  { %3039 = vmatmul.mubr.f32.gmra.mxu1 %v2927_v28 }
 0x542   :  { %v3305_v13 = vpop.f32.mrf.mxu0  ;;  %3043 = vmatprep.mubr.f32.mxu1 %v2930_v14 }
 0x544   :  { %v10615_v53 = vpop.f32.mrf.mxu0 }
 0x545   :  { %3044 = vmatmul.mubr.f32.gmra.mxu1 %v2929_v31 }
 0x546   :  { %v3315_v63 = vpop.f32.mrf.mxu0  ;;  %3048 = vmatprep.mubr.f32.mxu1 %v2932_v52 }
 0x548   :  { %v10618_v23 = vpop.f32.mrf.mxu0 }
 0x549   :  { %3049 = vmatmul.mubr.f32.gmra.mxu1 %v2931_v48 }
 0x54a   :  { %v3325_v5 = vpop.f32.mrf.mxu0  ;;  %3053 = vmatprep.mubr.f32.mxu1 %v2934_v38  ;;  %v13000_v38 = vpop.permute.xlu1 %2658 }
 0x54c   :  { %v10621_v27 = vpop.f32.mrf.mxu0 }
 0x54d   :  { %3054 = vmatmul.mubr.f32.gmra.mxu1 %v2933_v25  ;;  %9616 = vmatprep.subr.mxu1 %v10621_v27  ;;  %v13006_v25 = vpop.permute.xlu0 %2663 }
 0x54e   :  { %v3335_v20 = vpop.f32.mrf.mxu0  ;;  %9617 = vmatpush3.msra.mxu1 %v10597_v29  ;;  %3058 = vmatprep.mubr.f32.mxu1 %v2936_v0  ;;  %v3361_v29 = vld [vmem:[#allocation7 + $0x280] sm:$0xff]  ;;  %13962 = vst [vmem:[#allocation48_spill] sm:$0xff] %v13006_v25  ;;  %v13010_v27 = vpop.permute.xlu1 %2648 }
 0x54f   :  { %9618 = vmatprep.subr.mxu1 %v3335_v20 }
 0x550   :  { %9619 = vmatpush3.msra.mxu1 %v3255_v46  ;;  %v3364_v46 = vld [vmem:[#allocation7 + $0x298] sm:$0xff] }
 0x551   :  { %3059 = vmatmul.mubr.f32.gmra.mxu1 %v2935_v12  ;;  %9620 = vmatprep.subr.mxu1 %v10618_v23 }
 0x552   :  { %9621 = vmatpush3.msra.mxu1 %v12956_v47  ;;  %3063 = vmatprep.mubr.f32.mxu1 %v2938_v57  ;;  %v3357_v47 = vld [vmem:[#allocation7 + $0x260] sm:$0xff]  ;;  %v13016_v57 = vpop.permute.xlu0 %2653 }
 0x553   :  { %9622 = vmatprep.subr.mxu1 %v3325_v5 }
 0x554   :  { %9623 = vmatpush3.msra.mxu1 %v12960_v6  ;;  %v3360_v6 = vld [vmem:[#allocation7 + $0x278] sm:$0xff] }
 0x555   :  { %3064 = vmatmul.mubr.f32.gmra.mxu1 %v2937_v7  ;;  %9624 = vmatprep.subr.mxu1 %v10615_v53 }
 0x556   :  { %9625 = vmatpush3.msra.mxu1 %v12948_v43  ;;  %3068 = vmatprep.mubr.f32.mxu1 %v2940_v37  ;;  %v3351_v43 = vld [vmem:[#allocation7 + $0x230] sm:$0xff]  ;;  %v13020_v37 = vpop.permute.xlu1 %2638 }
 0x557   :  { %9626 = vmatprep.subr.mxu1 %v3315_v63 }
 0x558   :  { %9627 = vmatpush3.msra.mxu1 %v12952_v8  ;;  %v3354_v8 = vld [vmem:[#allocation7 + $0x248] sm:$0xff] }
 0x559   :  { %3069 = vmatmul.mubr.f32.gmra.mxu1 %v2939_v22  ;;  %9628 = vmatprep.subr.mxu1 %v10612_v54 }
 0x55a   :  { %9629 = vmatpush3.msra.mxu1 %v12940_v35  ;;  %3073 = vmatprep.mubr.f32.mxu1 %v2942_v2  ;;  %v2945_v35 = vld [vmem:[#allocation7 + $0x1e0] sm:$0xff] }
 0x55b   :  { %9630 = vmatprep.subr.mxu1 %v3305_v13 }
 0x55c   :  { %9631 = vmatpush3.msra.mxu1 %v12944_v42  ;;  %v2948_v42 = vld [vmem:[#allocation7 + $0x1f8] sm:$0xff] }
 0x55d   :  { %3074 = vmatmul.mubr.f32.gmra.mxu1 %v2941_v61  ;;  %9632 = vmatprep.subr.mxu1 %v10609_v58  ;;  %v13026_v61 = vpop.permute.xlu0 %2643 }
 0x55e   :  { %9633 = vmatpush3.msra.mxu1 %v12932_v51  ;;  %3078 = vmatprep.mubr.f32.mxu1 %v2944_v40  ;;  %v2947_v51 = vld [vmem:[#allocation7 + $0x1f0] sm:$0xff] }
 0x55f   :  { %9634 = vmatprep.subr.mxu1 %v3295_v32 }
 0x560   :  { %9635 = vmatpush3.msra.mxu1 %v12936_v56  ;;  %v3346_v56 = vld [vmem:[#allocation7 + $0x208] sm:$0xff] }
 0x561   :  { %3079 = vmatmul.mubr.f32.gmra.mxu1 %v2943_v45  ;;  %9636 = vmatprep.subr.mxu1 %v12972_v55  ;;  %v3373_v55 = vld [vmem:[#allocation7 + $0x2e0] sm:$0xff]  ;;  %v13030_v45 = vpop.permute.xlu1 %2628 }
 0x562   :  { %9637 = vmatpush3.msra.mxu1 %v12926_v39  ;;  %3083 = vmatprep.mubr.f32.mxu1 %v2946_v18  ;;  %v3345_v39 = vld [vmem:[#allocation7 + $0x200] sm:$0xff] }
 0x563   :  { %9638 = vmatprep.subr.mxu1 %v12974_v19  ;;  %v3376_v19 = vld [vmem:[#allocation7 + $0x2f8] sm:$0xff] }
 0x564   :  { %9639 = vmatpush3.msra.mxu1 %v12929_v30  ;;  %v3348_v30 = vld [vmem:[#allocation7 + $0x218] sm:$0xff] }
 0x565   :  { %3084 = vmatmul.mubr.f32.gmra.mxu1 %v2945_v35  ;;  %9640 = vmatprep.subr.mxu1 %v12968_v9  ;;  %v3369_v9 = vld [vmem:[#allocation7 + $0x2c0] sm:$0xff] }
 0x566   :  { %9641 = vmatpush3.msra.mxu1 %v12920_v36  ;;  %3088 = vmatprep.mubr.f32.mxu1 %v2948_v42  ;;  %v3347_v36 = vld [vmem:[#allocation7 + $0x210] sm:$0xff]  ;;  %v13036_v42 = vpop.permute.xlu0 %2633 }
 0x567   :  { %9642 = vmatprep.subr.mxu1 %v12970_v11  ;;  %v3372_v11 = vld [vmem:[#allocation7 + $0x2d8] sm:$0xff] }
 0x568   :  { %9643 = vmatpush3.msra.mxu1 %v12923_v60  ;;  %v3352_v60 = vld [vmem:[#allocation7 + $0x238] sm:$0xff] }
 0x569   :  { %3089 = vmatmul.mubr.f32.gmra.mxu1 %v2947_v51  ;;  %9644 = vmatprep.subr.mxu1 %v12964_v21  ;;  %v3365_v21 = vld [vmem:[#allocation7 + $0x2a0] sm:$0xff] }
 0x56a   :  { %9645 = vmatpush3.msra.mxu1 %v12914_v34  ;;  %3441 = vmatprep.mubr.f32.mxu1 %v3346_v56  ;;  %v3353_v34 = vld [vmem:[#allocation7 + $0x240] sm:$0xff]  ;;  %v2619_v56 = vpop.permute.xlu1 %2618 }
 0x56b   :  { %9646 = vmatprep.subr.mxu1 %v12966_v26  ;;  %v3368_v26 = vld [vmem:[#allocation7 + $0x2b8] sm:$0xff] }
 0x56c   :  { %9647 = vmatpush3.msra.mxu1 %v12917_v3  ;;  %v3358_v3 = vld [vmem:[#allocation7 + $0x268] sm:$0xff] }
 0x56d   :  { %3442 = vmatmul.mubr.f32.vlgmr.msra.gmra.mxu1 %v3345_v39 }
 0x56e   :  { %3446 = vmatprep.mubr.f32.mxu1 %v3348_v30 }
 0x571   :  { %3447 = vmatmul.mubr.f32.gmra.mxu1 %v3347_v36  ;;  %v2624_v36 = vpop.permute.xlu0 %2623 }
 0x572   :  { %3451 = vmatprep.mubr.f32.mxu1 %v3350_v59 }
 0x575   :  { %3452 = vmatmul.mubr.f32.gmra.mxu1 %v3349_v24  ;;  %v2609_v24 = vpop.permute.xlu1 %2608 }
 0x576   :  { %3456 = vmatprep.mubr.f32.mxu1 %v3352_v60 }
 0x579   :  { %3457 = vmatmul.mubr.f32.gmra.mxu1 %v3351_v43 }
 0x57a   :  { %3461 = vmatprep.mubr.f32.mxu1 %v3354_v8  ;;  %v2614_v8 = vpop.permute.xlu0 %2613 }
 0x57d   :  { %3462 = vmatmul.mubr.f32.gmra.mxu1 %v3353_v34 }
 0x57e   :  { %3466 = vmatprep.mubr.f32.mxu1 %v3356_v41  ;;  %v2599_v41 = vpop.permute.xlu1 %2598 }
 0x581   :  { %3467 = vmatmul.mubr.f32.gmra.mxu1 %v3355_v33 }
 0x582   :  { %3471 = vmatprep.mubr.f32.mxu1 %v3358_v3 }
 0x585   :  { %3472 = vmatmul.mubr.f32.gmra.mxu1 %v3357_v47 }
 0x586   :  { %3476 = vmatprep.mubr.f32.mxu1 %v3360_v6  ;;  %v2604_v6 = vpop.permute.xlu0 %2603 }
 0x589   :  { %3477 = vmatmul.mubr.f32.gmra.mxu1 %v3359_v17 }
 0x58a   :  { %3481 = vmatprep.mubr.f32.mxu1 %v3362_v4  ;;  %v2589_v4 = vpop.permute.xlu1 %2588 }
 0x58d   :  { %3482 = vmatmul.mubr.f32.gmra.mxu1 %v3361_v29 }
 0x58e   :  { %3486 = vmatprep.mubr.f32.mxu1 %v3364_v46 }
 0x591   :  { %3487 = vmatmul.mubr.f32.gmra.mxu1 %v3363_v1 }
 0x592   :  { %3491 = vmatprep.mubr.f32.mxu1 %v3366_v49 }
 0x595   :  { %3492 = vmatmul.mubr.f32.gmra.mxu1 %v3365_v21 }
 0x596   :  { %3496 = vmatprep.mubr.f32.mxu1 %v3368_v26 }
 0x599   :  { %3497 = vmatmul.mubr.f32.gmra.mxu1 %v3367_v10  ;;  %v2594_v10 = vpop.permute.xlu0 %2593 }
 0x59a   :  { %3501 = vmatprep.mubr.f32.mxu1 %v3370_v16 }
 0x59d   :  { %3502 = vmatmul.mubr.f32.gmra.mxu1 %v3369_v9 }
 0x59e   :  { %3506 = vmatprep.mubr.f32.mxu1 %v3372_v11 }
 0x5a1   :  { %3507 = vmatmul.mubr.f32.gmra.mxu1 %v3371_v15 }
 0x5a2   :  { %3511 = vmatprep.mubr.f32.mxu1 %v3374_v50 }
 0x5a5   :  { %3512 = vmatmul.mubr.f32.gmra.mxu1 %v3373_v55 }
 0x5a6   :  { %3516 = vmatprep.mubr.f32.mxu1 %v3376_v19 }
 0x5a9   :  { %3517 = vmatmul.mubr.f32.gmra.mxu1 %v3375_v44 }
 0x5ad   :  { %v9408_v62 = vpop.f32.mrf.mxu1 }
 0x5af   :  { %v9409_v58 = vpop.f32.mrf.mxu1 }
 0x5b0   :  { %v9410_v47 = vadd.f32 %v9409_v58, %v9408_v62 }
 0x5b1   :  { %v9411_v32 = vpop.f32.mrf.mxu1 }
 0x5b2   :  { %v2666_v46 = vadd.f32 %v9410_v47, %v2589_v4 }
 0x5b3   :  { %v9412_v28 = vpop.f32.mrf.mxu1 }
 0x5b4   :  { %v9413_v1 = vadd.f32 %v9412_v28, %v9411_v32 }
 0x5b5   :  { %v9414_v14 = vpop.f32.mrf.mxu1 }
 0x5b6   :  { %v2667_v9 = vadd.f32 %v9413_v1, %v2594_v10 }
 0x5b7   :  { %v9415_v54 = vpop.f32.mrf.mxu1 }
 0x5b8   :  { %v9416_v11 = vadd.f32 %v9415_v54, %v9414_v14 }
 0x5b9   :  { %v9417_v13 = vpop.f32.mrf.mxu1 }
 0x5ba   :  { %v2668_v44 = vadd.f32 %v9416_v11, %v2599_v41 }
 0x5bb   :  { %v9418_v31 = vpop.f32.mrf.mxu1 }
 0x5bc   :  { %v9419_v62 = vadd.f32 %v9418_v31, %v9417_v13 }
 0x5bd   :  { %v9420_v52 = vpop.f32.mrf.mxu1 }
 0x5be   :  { %v2669_v28 = vadd.f32 %v9419_v62, %v2604_v6 }
 0x5bf   :  { %v9421_v53 = vpop.f32.mrf.mxu1 }
 0x5c0   :  { %v9422_v47 = vadd.f32 %v9421_v53, %v9420_v52 }
 0x5c1   :  { %v12996_v63 = vpop.f32.mrf.mxu1 }
 0x5c2   :  { %v2670_v14 = vadd.f32 %v9422_v47, %v2609_v24 }
 0x5c3   :  { %v12998_v48 = vpop.f32.mrf.mxu1 }
 0x5c4   :  { %v9425_v54 = vadd.f32 %v12998_v48, %v12996_v63 }
 0x5c5   :  { %v13002_v23 = vpop.f32.mrf.mxu1 }
 0x5c6   :  { %v2671_v31 = vadd.f32 %v9425_v54, %v2614_v8 }
 0x5c7   :  { %v13004_v5 = vpop.f32.mrf.mxu1 }
 0x5c9   :  { %v13008_v0 = vpop.f32.mrf.mxu1 }
 0x5cb   :  { %v13012_v20 = vpop.f32.mrf.mxu1 }
 0x5cc   :  { %v9431_v24 = vadd.f32 %v13012_v20, %v13008_v0  ;;  %v3554_v20 = vld [vmem:[#allocation12] sm:$0xff] }
 0x5cd   :  { %v13014_v12 = vpop.f32.mrf.mxu1  ;;  %10654 = vmatprep.mubr.f32.mxu0 %v3554_v20 }
 0x5ce   :  { %v2673_v11 = vadd.f32 %v9431_v24, %v2624_v36 }
 0x5cf   :  { %v13018_v7 = vpop.f32.mrf.mxu1 }
 0x5d0   :  { %v9434_v8 = vadd.f32 %v13018_v7, %v13014_v12 }
 0x5d1   :  { %v13022_v22 = vpop.f32.mrf.mxu1 }
 0x5d3   :  { %v13024_v2 = vpop.f32.mrf.mxu1 }
 0x5d5   :  { %v13028_v40 = vpop.f32.mrf.mxu1 }
 0x5d7   :  { %v13032_v18 = vpop.f32.mrf.mxu1 }
 0x5d8   :  { %v9440_v12 = vadd.f32 %v13032_v18, %v13028_v40 }
 0x5d9   :  { %v13034_v35 = vpop.f32.mrf.mxu1 }
 0x5da   :  { %v2676_v47 = vadd.f32 %v9440_v12, %v13020_v37 }
 0x5db   :  { %v13038_v51 = vpop.f32.mrf.mxu1 }
 0x5dd   :  { %v13040_v39 = vpop.f32.mrf.mxu1 }
 0x5df   :  { %v13042_v30 = vpop.f32.mrf.mxu1 }
 0x5e0   :  { %v9446_v40 = vadd.f32 %v13042_v30, %v13040_v39 }
 0x5e1   :  { %v13044_v59 = vpop.f32.mrf.mxu1 }
 0x5e2   :  { %v2678_v37 = vadd.f32 %v9446_v40, %v13010_v27 }
 0x5e3   :  { %v13046_v60 = vpop.f32.mrf.mxu1 }
 0x5e5   :  { %v13048_v43 = vpop.f32.mrf.mxu1 }
 0x5e7   :  { %v13050_v34 = vpop.f32.mrf.mxu1 }
 0x5e8   :  { %v9452_v39 = vadd.f32 %v13050_v34, %v13048_v43 }
 0x5e9   :  { %v13052_v33 = vpop.f32.mrf.mxu1 }
 0x5ea   :  { %v2680_v27 = vadd.f32 %v9452_v39, %v13000_v38 }
 0x5eb   :  { %v13054_v3 = vpop.f32.mrf.mxu1 }
 0x5ec   :  { %13963 = vst [vmem:[#allocation49_spill] sm:$0xff] %v13054_v3 }
 0x5ed   :  { %v9528_v17 = vpop.f32.mrf.mxu1 }
 0x5ef   :  { %v9529_v29 = vpop.f32.mrf.mxu1 }
 0x5f0   :  { %v9530_v49 = vadd.f32 %v9529_v29, %v9528_v17 }
 0x5f1   :  { %v9531_v21 = vpop.f32.mrf.mxu1 }
 0x5f2   :  { %v13056_v26 = vadd.f32 %v9530_v49, %v2666_v46 }
 0x5f3   :  { %v9532_v16 = vpop.f32.mrf.mxu1 }
 0x5f4   :  { %v9533_v15 = vadd.f32 %v9532_v16, %v9531_v21  ;;  %v9428_v21 = vadd.f32 %v13004_v5, %v13002_v23 }
 0x5f5   :  { %v9534_v50 = vpop.f32.mrf.mxu1 }
 0x5f6   :  { %v13058_v55 = vadd.f32 %v9533_v15, %v2667_v9  ;;  %v2672_v10 = vadd.f32 %v9428_v21, %v2619_v56  ;;  %v9437_v56 = vadd.f32 %v13024_v2, %v13022_v22  ;;  %v9443_v22 = vadd.f32 %v13038_v51, %v13034_v35 }
 0x5f7   :  { %v9535_v19 = vpop.f32.mrf.mxu1  ;;  %v9449_v35 = vadd.f32 %v13046_v60, %v13044_v59 }
 0x5f8   :  { %v9536_v58 = vadd.f32 %v9535_v19, %v9534_v50  ;;  %v2674_v19 = vadd.f32 %v9434_v8, %v13030_v45 }
 0x5f9   :  { %v9537_v25 = vpop.f32.mrf.mxu1 }
 0x5fa   :  { %v13060_v3 = vadd.f32 %v9536_v58, %v2668_v44  ;;  %v2675_v58 = vadd.f32 %v9437_v56, %v13036_v42  ;;  %v2677_v42 = vadd.f32 %v9443_v22, %v13026_v61  ;;  %v2679_v61 = vadd.f32 %v9449_v35, %v13016_v57 }
 0x5fb   :  { %v9538_v32 = vpop.f32.mrf.mxu1 }
 0x5fc   :  { %v9539_v17 = vadd.f32 %v9538_v32, %v9537_v25 }
 0x5fd   :  { %v9540_v4 = vpop.f32.mrf.mxu1 }
 0x5fe   :  { %v13062_v29 = vadd.f32 %v9539_v17, %v2669_v28 }
 0x5ff   :  { %v9541_v46 = vpop.f32.mrf.mxu1 }
 0x600   :  { %v9542_v1 = vadd.f32 %v9541_v46, %v9540_v4 }
 0x601   :  { %v9543_v49 = vpop.f32.mrf.mxu1 }
 0x602   :  { %v13066_v41 = vadd.f32 %v9542_v1, %v2670_v14 }
 0x603   :  { %v9544_v13 = vpop.f32.mrf.mxu1 }
 0x604   :  { %v9545_v6 = vadd.f32 %v9544_v13, %v9543_v49 }
 0x605   :  { %v9546_v52 = vpop.f32.mrf.mxu1 }
 0x606   :  { %v13070_v53 = vadd.f32 %v9545_v6, %v2671_v31 }
 0x607   :  { %v9547_v25 = vpop.f32.mrf.mxu1 }
 0x608   :  { %v9548_v16 = vadd.f32 %v9547_v25, %v9546_v52  ;;  %v13964_v25 = vld [vmem:[#allocation49_spill] sm:$0xff] }
 0x609   :  { %v9549_v63 = vpop.f32.mrf.mxu1  ;;  %v9455_v59 = vadd.f32 %v13964_v25, %v13052_v33 }
 0x60a   :  { %v13074_v48 = vadd.f32 %v9548_v16, %v2672_v10 }
 0x60b   :  { %v9550_v9 = vpop.f32.mrf.mxu1 }
 0x60c   :  { %v9551_v15 = vadd.f32 %v9550_v9, %v9549_v63  ;;  %v13965_v63 = vld [vmem:[#allocation48_spill] sm:$0xff] }
 0x60d   :  { %v9552_v23 = vpop.f32.mrf.mxu1  ;;  %v2681_v9 = vadd.f32 %v9455_v59, %v13965_v63 }
 0x60e   :  { %v13078_v5 = vadd.f32 %v9551_v15, %v2673_v11 }
 0x60f   :  { %v9553_v50 = vpop.f32.mrf.mxu1 }
 0x610   :  { %v9554_v0 = vadd.f32 %v9553_v50, %v9552_v23 }
 0x611   :  { %v9555_v44 = vpop.f32.mrf.mxu1 }
 0x612   :  { %v13083_v62 = vadd.f32 %v9554_v0, %v2674_v19 }
 0x613   :  { %v9556_v36 = vpop.f32.mrf.mxu1 }
 0x614   :  { %v9557_v7 = vadd.f32 %v9556_v36, %v9555_v44 }
 0x615   :  { %v9558_v32 = vpop.f32.mrf.mxu1 }
 0x616   :  { %v13088_v28 = vadd.f32 %v9557_v7, %v2675_v58 }
 0x617   :  { %v9559_v45 = vpop.f32.mrf.mxu1 }
 0x618   :  { %v9560_v2 = vadd.f32 %v9559_v45, %v9558_v32 }
 0x619   :  { %v9561_v17 = vpop.f32.mrf.mxu1 }
 0x61a   :  { %v13093_v4 = vadd.f32 %v9560_v2, %v2676_v47 }
 0x61b   :  { %v9562_v46 = vpop.f32.mrf.mxu1 }
 0x61c   :  { %v9563_v18 = vadd.f32 %v9562_v46, %v9561_v17 }
 0x61d   :  { %v9564_v14 = vpop.f32.mrf.mxu1 }
 0x61e   :  { %v13098_v54 = vadd.f32 %v9563_v18, %v2677_v42 }
 0x61f   :  { %v9565_v1 = vpop.f32.mrf.mxu1 }
 0x620   :  { %v9566_v51 = vadd.f32 %v9565_v1, %v9564_v14 }
 0x621   :  { %v9567_v49 = vpop.f32.mrf.mxu1 }
 0x622   :  { %v13103_v13 = vadd.f32 %v9566_v51, %v2678_v37 }
 0x623   :  { %v9568_v31 = vpop.f32.mrf.mxu1 }
 0x624   :  { %v9569_v30 = vadd.f32 %v9568_v31, %v9567_v49 }
 0x625   :  { %v9570_v21 = vpop.f32.mrf.mxu1 }
 0x626   :  { %v13108_v6 = vadd.f32 %v9569_v30, %v2679_v61 }
 0x627   :  { %v9571_v52 = vpop.f32.mrf.mxu1 }
 0x628   :  { %v9572_v60 = vadd.f32 %v9571_v52, %v9570_v21 }
 0x629   :  { %v9573_v10 = vpop.f32.mrf.mxu1 }
 0x62a   :  { %v3108_v24 = vadd.f32 %v9572_v60, %v2680_v27 }
 0x62b   :  { %v9574_v16 = vpop.f32.mrf.mxu1 }
 0x62c   :  { %v9575_v57 = vadd.f32 %v9574_v16, %v9573_v10 }
 0x62d   :  { %v9648_v11 = vpop.f32.mrf.mxu1 }
 0x62e   :  { %v3109_v8 = vadd.f32 %v9575_v57, %v2681_v9 }
 0x62f   :  { %v9649_v43 = vpop.f32.mrf.mxu1 }
 0x630   :  { %v9650_v34 = vadd.f32 %v9649_v43, %v9648_v11 }
 0x631   :  { %v9651_v15 = vpop.f32.mrf.mxu1 }
 0x632   :  { %v13115_v23 = vadd.f32 %v9650_v34, %v13056_v26  ;;  %v3792_v26 = vld [vmem:[#allocation13 + $0x18] sm:$0xff] }
 0x633   :  { %v9652_v50 = vpop.f32.mrf.mxu1  ;;  %10710 = vmatprep.subr.mxu1 %v3792_v26 }
 0x634   :  { %v9653_v38 = vadd.f32 %v9652_v50, %v9651_v15  ;;  %10711 = vmatpush3.msra.mxu1 %v3792_v26 }
 0x635   :  { %v9654_v19 = vpop.f32.mrf.mxu1 }
 0x636   :  { %v13118_v33 = vadd.f32 %v9653_v38, %v13058_v55 }
 0x637   :  { %v9655_v56 = vpop.f32.mrf.mxu1 }
 0x638   :  { %v9656_v0 = vadd.f32 %v9655_v56, %v9654_v19 }
 0x639   :  { %v9657_v20 = vpop.f32.mrf.mxu1 }
 0x63a   :  { %v13121_v44 = vadd.f32 %v9656_v0, %v13060_v3 }
 0x63b   :  { %v9658_v36 = vpop.f32.mrf.mxu1 }
 0x63c   :  { %v9659_v58 = vadd.f32 %v9658_v36, %v9657_v20 }
 0x63d   :  { %v9660_v12 = vpop.f32.mrf.mxu1 }
 0x63e   :  { %v13124_v7 = vadd.f32 %v9659_v58, %v13062_v29 }
 0x63f   :  { %v9661_v32 = vpop.f32.mrf.mxu1 }
 0x640   :  { %v9662_v45 = vadd.f32 %v9661_v32, %v9660_v12 }
 0x641   :  { %v9663_v47 = vpop.f32.mrf.mxu1 }
 0x642   :  { %v13127_v55 = vadd.f32 %v9662_v45, %v13066_v41  ;;  %v3540_v45 = vmax.f32 %v13121_v44, 0.0  ;;  %v3557_v44 = vld [vmem:[#allocation12 + $0x18] sm:$0xff] }
 0x643   :  { %v9664_v22 = vpop.f32.mrf.mxu1 }
 0x645   :  { %v9666_v2 = vpop.f32.mrf.mxu1 }
 0x647   :  { %v9667_v17 = vpop.f32.mrf.mxu1 }
 0x649   :  { %v9669_v3 = vpop.f32.mrf.mxu1 }
 0x64b   :  { %v9670_v46 = vpop.f32.mrf.mxu1 }
 0x64d   :  { %v9672_v42 = vpop.f32.mrf.mxu1 }
 0x64f   :  { %v9673_v40 = vpop.f32.mrf.mxu1 }
 0x651   :  { %v9675_v18 = vpop.f32.mrf.mxu1 }
 0x653   :  { %v9676_v14 = vpop.f32.mrf.mxu1 }
 0x654   :  { %v9677_v34 = vadd.f32 %v9676_v14, %v9675_v18  ;;  %v3673_v18 = vld [vmem:[#allocation12 + $0x68] sm:$0xff]  ;;  %v3674_v14 = vld [vmem:[#allocation12 + $0x70] sm:$0xff] }
 0x655   :  { %v9678_v29 = vpop.f32.mrf.mxu1 }
 0x656   :  { %v3531_v38 = vadd.f32 %v9677_v34, %v13088_v28 }
 0x657   :  { %v9679_v1 = vpop.f32.mrf.mxu1 }
 0x658   :  { %v9680_v57 = vadd.f32 %v9679_v1, %v9678_v29  ;;  %v3547_v36 = vmax.f32 %v3531_v38, 0.0  ;;  %v3675_v29 = vld [vmem:[#allocation12 + $0x78] sm:$0xff]  ;;  %v3791_v1 = vld [vmem:[#allocation13 + $0x10] sm:$0xff] }
 0x659   :  { %v9681_v37 = vpop.f32.mrf.mxu1  ;;  %10712 = vmatprep.subr.mxu1 %v3791_v1 }
 0x65a   :  { %10713 = vmatpush3.msra.mxu1 %v3791_v1 }
 0x65b   :  { %v9682_v35 = vpop.f32.mrf.mxu1 }
 0x65c   :  { %v9683_v16 = vadd.f32 %v9682_v35, %v9681_v37  ;;  %v3926_v37 = vld [vmem:[#allocation13 + $0x38] sm:$0xff]  ;;  %v3925_v35 = vld [vmem:[#allocation13 + $0x30] sm:$0xff] }
 0x65d   :  { %v9684_v51 = vpop.f32.mrf.mxu1 }
 0x65e   :  { %v3533_v15 = vadd.f32 %v9683_v16, %v13098_v54  ;;  %v9668_v54 = vadd.f32 %v9667_v17, %v9666_v2  ;;  %v3561_v2 = vld [vmem:[#allocation12 + $0x38] sm:$0xff]  ;;  %v3668_v17 = vld [vmem:[#allocation12 + $0x40] sm:$0xff] }
 0x65f   :  { %v9685_v49 = vpop.f32.mrf.mxu1 }
 0x660   :  { %v9686_v59 = vadd.f32 %v9685_v49, %v9684_v51  ;;  %v13148_v19 = vmax.f32 %v3533_v15, 0.0  ;;  %v3528_v28 = vadd.f32 %v9668_v54, %v13074_v48  ;;  %v3541_v48 = vmax.f32 %v13124_v7, 0.0  ;;  %v3560_v7 = vld [vmem:[#allocation12 + $0x30] sm:$0xff]  ;;  %v3790_v51 = vld [vmem:[#allocation13 + $0x8] sm:$0xff]  ;;  %v4056_v54 = vld [vmem:[#allocation16] sm:$0xff] }
 0x661   :  { %v9687_v31 = vpop.f32.mrf.mxu1  ;;  %v3924_v49 = vld [vmem:[#allocation13 + $0x28] sm:$0xff]  ;;  %10714 = vmatprep.subr.mxu1 %v3790_v51 }
 0x662   :  { %v3534_v11 = vadd.f32 %v9686_v59, %v13103_v13  ;;  %v9671_v13 = vadd.f32 %v9670_v46, %v9669_v3  ;;  %v3544_v26 = vmax.f32 %v3528_v28, 0.0  ;;  %v3669_v3 = vld [vmem:[#allocation12 + $0x48] sm:$0xff]  ;;  %v3670_v46 = vld [vmem:[#allocation12 + $0x50] sm:$0xff]  ;;  %10715 = vmatpush3.msra.mxu1 %v3790_v51 }
 0x663   :  { %v9688_v61 = vpop.f32.mrf.mxu1 }
 0x664   :  { %v9689_v27 = vadd.f32 %v9688_v61, %v9687_v31  ;;  %v3529_v20 = vadd.f32 %v9671_v13, %v13078_v5  ;;  %v3542_v5 = vmax.f32 %v13127_v55, 0.0  ;;  %v3556_v55 = vld [vmem:[#allocation12 + $0x10] sm:$0xff]  ;;  %v3789_v31 = vld [vmem:[#allocation13] sm:$0xff] }
 0x665   :  { %v9690_v39 = vpop.f32.mrf.mxu1  ;;  %v3923_v61 = vld [vmem:[#allocation13 + $0x20] sm:$0xff]  ;;  %10716 = vmatprep.subr.mxu1 %v3789_v31 }
 0x666   :  { %v3535_v63 = vadd.f32 %v9689_v27, %v13108_v6  ;;  %v9674_v6 = vadd.f32 %v9673_v40, %v9672_v42  ;;  %v3545_v12 = vmax.f32 %v3529_v20, 0.0  ;;  %v3671_v42 = vld [vmem:[#allocation12 + $0x58] sm:$0xff]  ;;  %v3672_v40 = vld [vmem:[#allocation12 + $0x60] sm:$0xff]  ;;  %10717 = vmatpush3.msra.mxu1 %v3789_v31 }
 0x667   :  { %v9691_v41 = vpop.f32.mrf.mxu1 }
 0x668   :  { %v9692_v21 = vadd.f32 %v9691_v41, %v9690_v39  ;;  %v13138_v50 = vmax.f32 %v3535_v63, 0.0  ;;  %v3530_v56 = vadd.f32 %v9674_v6, %v13083_v62 }
 0x669   :  { %v9693_v30 = vpop.f32.mrf.mxu1 }
 0x66a   :  { %v3536_v60 = vadd.f32 %v9692_v21, %v3108_v24  ;;  %v3532_v24 = vadd.f32 %v9680_v57, %v13093_v4  ;;  %v9665_v4 = vadd.f32 %v9664_v22, %v9663_v47  ;;  %v3546_v58 = vmax.f32 %v3530_v56, 0.0  ;;  %v3555_v22 = vld [vmem:[#allocation12 + $0x8] sm:$0xff]  ;;  %v4495_v56 = vld [vmem:[#allocation16 + $0x18] sm:$0xff] }
 0x66b   :  { %v9694_v52 = vpop.f32.mrf.mxu1  ;;  %v3538_v47 = vmax.f32 %v13115_v23, 0.0  ;;  %v3559_v23 = vld [vmem:[#allocation12 + $0x28] sm:$0xff] }
 0x66c   :  { %v9695_v25 = vadd.f32 %v9694_v52, %v9693_v30  ;;  %v13133_v43 = vmax.f32 %v3536_v60, 0.0  ;;  %v13153_v0 = vmax.f32 %v3532_v24, 0.0  ;;  %v3527_v62 = vadd.f32 %v9665_v4, %v13070_v53 }
 0x66d   :  { %v3539_v53 = vmax.f32 %v13118_v33, 0.0  ;;  %v3558_v33 = vld [vmem:[#allocation12 + $0x20] sm:$0xff] }
 0x66e   :  { %v3537_v10 = vadd.f32 %v9695_v25, %v3109_v8  ;;  %v13143_v8 = vmax.f32 %v3534_v11, 0.0  ;;  %v3543_v32 = vmax.f32 %v3527_v62, 0.0 }
 0x670   :  { %v13130_v9 = vmax.f32 %v3537_v10, 0.0 }
 0x672   :  { %10622 = vmatprep.subr.mxu0 %v13130_v9 }
 0x673   :  { %10623 = vmatpush3.msra.mxu0 %v13130_v9 }
 0x674   :  { %10624 = vmatprep.subr.mxu0 %v13133_v43 }
 0x675   :  { %10625 = vmatpush3.msra.mxu0 %v13133_v43 }
 0x676   :  { %10626 = vmatprep.subr.mxu0 %v13138_v50 }
 0x677   :  { %10627 = vmatpush3.msra.mxu0 %v13138_v50 }
 0x678   :  { %10628 = vmatprep.subr.mxu0 %v13143_v8 }
 0x679   :  { %10629 = vmatpush3.msra.mxu0 %v13143_v8 }
 0x67a   :  { %10630 = vmatprep.subr.mxu0 %v13148_v19 }
 0x67b   :  { %10631 = vmatpush3.msra.mxu0 %v13148_v19 }
 0x67c   :  { %10632 = vmatprep.subr.mxu0 %v13153_v0 }
 0x67d   :  { %10633 = vmatpush3.msra.mxu0 %v13153_v0 }
 0x67e   :  { %10634 = vmatprep.subr.mxu0 %v3547_v36 }
 0x67f   :  { %10635 = vmatpush3.msra.mxu0 %v3547_v36 }
 0x680   :  { %10636 = vmatprep.subr.mxu0 %v3546_v58 }
 0x681   :  { %10637 = vmatpush3.msra.mxu0 %v3546_v58 }
 0x682   :  { %10638 = vmatprep.subr.mxu0 %v3545_v12 }
 0x683   :  { %10639 = vmatpush3.msra.mxu0 %v3545_v12 }
 0x684   :  { %10640 = vmatprep.subr.mxu0 %v3544_v26 }
 0x685   :  { %10641 = vmatpush3.msra.mxu0 %v3544_v26 }
 0x686   :  { %10642 = vmatprep.subr.mxu0 %v3543_v32 }
 0x687   :  { %10643 = vmatpush3.msra.mxu0 %v3543_v32 }
 0x688   :  { %10644 = vmatprep.subr.mxu0 %v3542_v5 }
 0x689   :  { %10645 = vmatpush3.msra.mxu0 %v3542_v5 }
 0x68a   :  { %10646 = vmatprep.subr.mxu0 %v3541_v48 }
 0x68b   :  { %10647 = vmatpush3.msra.mxu0 %v3541_v48 }
 0x68c   :  { %10648 = vmatprep.subr.mxu0 %v3540_v45 }
 0x68d   :  { %10649 = vmatpush3.msra.mxu0 %v3540_v45 }
 0x68e   :  { %10650 = vmatprep.subr.mxu0 %v3539_v53 }
 0x68f   :  { %10651 = vmatpush3.msra.mxu0 %v3539_v53 }
 0x690   :  { %10652 = vmatprep.subr.mxu0 %v3538_v47 }
 0x691   :  { %10653 = vmatpush3.msra.mxu0 %v3538_v47 }
 0x692   :  { %10666 = vmatprep.subr.mxu0 %v13130_v9  ;;  %10655 = vmatmul.mubr.f32.vlgmr.msra.gmra.mxu0 %v3555_v22 }
 0x693   :  { %10667 = vmatpush3.msra.mxu0 %v13130_v9  ;;  %10657 = vmatprep.mubr.f32.mxu0 %v3556_v55 }
 0x694   :  { %10668 = vmatprep.subr.mxu0 %v13133_v43 }
 0x695   :  { %10669 = vmatpush3.msra.mxu0 %v13133_v43 }
 0x696   :  { %10670 = vmatprep.subr.mxu0 %v13138_v50  ;;  %10658 = vmatmul.mubr.f32.gmra.mxu0 %v3557_v44 }
 0x697   :  { %10671 = vmatpush3.msra.mxu0 %v13138_v50  ;;  %10660 = vmatprep.mubr.f32.mxu0 %v3558_v33 }
 0x698   :  { %10672 = vmatprep.subr.mxu0 %v13143_v8 }
 0x699   :  { %10673 = vmatpush3.msra.mxu0 %v13143_v8 }
 0x69a   :  { %10674 = vmatprep.subr.mxu0 %v13148_v19  ;;  %10661 = vmatmul.mubr.f32.gmra.mxu0 %v3559_v23 }
 0x69b   :  { %10675 = vmatpush3.msra.mxu0 %v13148_v19  ;;  %10663 = vmatprep.mubr.f32.mxu0 %v3560_v7  ;;  %v4057_v19 = vld [vmem:[#allocation16 + $0x8] sm:$0xff] }
 0x69c   :  { %10676 = vmatprep.subr.mxu0 %v13153_v0  ;;  %10750 = vmatprep.subr.mxu1 %v4057_v19 }
 0x69d   :  { %10677 = vmatpush3.msra.mxu0 %v13153_v0 }
 0x69e   :  { %10678 = vmatprep.subr.mxu0 %v3547_v36  ;;  %10664 = vmatmul.mubr.f32.gmra.mxu0 %v3561_v2 }
 0x69f   :  { %10679 = vmatpush3.msra.mxu0 %v3547_v36  ;;  %10698 = vmatprep.mubr.f32.mxu0 %v3668_v17 }
 0x6a0   :  { %10680 = vmatprep.subr.mxu0 %v3546_v58 }
 0x6a1   :  { %10681 = vmatpush3.msra.mxu0 %v3546_v58 }
 0x6a2   :  { %10682 = vmatprep.subr.mxu0 %v3545_v12 }
 0x6a3   :  { %10683 = vmatpush3.msra.mxu0 %v3545_v12 }
 0x6a4   :  { %10684 = vmatprep.subr.mxu0 %v3544_v26 }
 0x6a5   :  { %10685 = vmatpush3.msra.mxu0 %v3544_v26  ;;  %v4494_v26 = vld [vmem:[#allocation16 + $0x10] sm:$0xff] }
 0x6a6   :  { %10686 = vmatprep.subr.mxu0 %v3543_v32 }
 0x6a7   :  { %10687 = vmatpush3.msra.mxu0 %v3543_v32 }
 0x6a8   :  { %10688 = vmatprep.subr.mxu0 %v3542_v5 }
 0x6a9   :  { %10689 = vmatpush3.msra.mxu0 %v3542_v5 }
 0x6aa   :  { %10690 = vmatprep.subr.mxu0 %v3541_v48 }
 0x6ab   :  { %10691 = vmatpush3.msra.mxu0 %v3541_v48 }
 0x6ac   :  { %10692 = vmatprep.subr.mxu0 %v3540_v45 }
 0x6ad   :  { %10693 = vmatpush3.msra.mxu0 %v3540_v45 }
 0x6ae   :  { %10694 = vmatprep.subr.mxu0 %v3539_v53 }
 0x6af   :  { %10695 = vmatpush3.msra.mxu0 %v3539_v53 }
 0x6b0   :  { %10696 = vmatprep.subr.mxu0 %v3538_v47 }
 0x6b1   :  { %10697 = vmatpush3.msra.mxu0 %v3538_v47 }
 0x6b2   :  { %10699 = vmatmul.mubr.f32.vlgmr.msra.gmra.mxu0 %v3669_v3  ;;  %10730 = vmatprep.subr.mxu0 %v3926_v37 }
 0x6b3   :  { %10701 = vmatprep.mubr.f32.mxu0 %v3670_v46  ;;  %10731 = vmatpush3.msra.mxu0 %v3926_v37 }
 0x6b4   :  { %10732 = vmatprep.subr.mxu0 %v3925_v35 }
 0x6b5   :  { %10733 = vmatpush3.msra.mxu0 %v3925_v35 }
 0x6b6   :  { %10702 = vmatmul.mubr.f32.gmra.mxu0 %v3671_v42  ;;  %10734 = vmatprep.subr.mxu0 %v3924_v49  ;;  %v4188_v42 = vld [vmem:[#allocation15] sm:$0xff] }
 0x6b7   :  { %10704 = vmatprep.mubr.f32.mxu0 %v3672_v40  ;;  %10735 = vmatpush3.msra.mxu0 %v3924_v49  ;;  %v4602_v40 = vld [vmem:[#allocation15 + $0x80] sm:$0xff] }
 0x6b8   :  { %10736 = vmatprep.subr.mxu0 %v3923_v61 }
 0x6b9   :  { %10737 = vmatpush3.msra.mxu0 %v3923_v61 }
 0x6ba   :  { %10705 = vmatmul.mubr.f32.gmra.mxu0 %v3673_v18 }
 0x6bb   :  { %10707 = vmatprep.mubr.f32.mxu0 %v3674_v14 }
 0x6be   :  { %10708 = vmatmul.mubr.f32.gmra.mxu0 %v3675_v29 }
 0x752   :  { %v10656_v39 = vpop.f32.mrf.mxu0 }
 0x754   :  { %v3628_v41 = vpop.f32.mrf.mxu0 }
 0x756   :  { %v10659_v30 = vpop.f32.mrf.mxu0 }
 0x758   :  { %v3638_v21 = vpop.f32.mrf.mxu0 }
 0x75a   :  { %v10662_v52 = vpop.f32.mrf.mxu0 }
 0x75c   :  { %v3648_v27 = vpop.f32.mrf.mxu0 }
 0x75e   :  { %v10665_v25 = vpop.f32.mrf.mxu0 }
 0x760   :  { %v3658_v59 = vpop.f32.mrf.mxu0 }
 0x772   :  { %v10700_v60 = vpop.f32.mrf.mxu0 }
 0x773   :  { %v3782_v63 = vmax.f32 %v10656_v39, %v10700_v60 }
 0x774   :  { %v3742_v10 = vpop.f32.mrf.mxu0 }
 0x775   :  { %v3781_v16 = vmax.f32 %v3628_v41, %v3742_v10  ;;  %v4191_v10 = vld [vmem:[#allocation15 + $0x18] sm:$0xff] }
 0x776   :  { %v10703_v9 = vpop.f32.mrf.mxu0 }
 0x777   :  { %10718 = vmatprep.mubr.msk.f32.mxu1 %vm558_vm1, %v3781_v16  ;;  %10738 = vmatprep.mubr.msk.f32.mxu0 %vm558_vm1, %v3781_v16  ;;  %v3784_v43 = vmax.f32 %v10659_v30, %v10703_v9  ;;  %v4192_v16 = vld [vmem:[#allocation15 + $0x20] sm:$0xff]  ;;  %v4193_v9 = vld [vmem:[#allocation15 + $0x28] sm:$0xff] }
 0x778   :  { %v3752_v57 = vpop.f32.mrf.mxu0  ;;  %10719 = vmatmul.mubr.msk.f32.vlgmr.msra.gmra.mxu1 %vm558_vm1, %v3782_v63  ;;  %10739 = vmatmul.mubr.msk.f32.vlgmr.msra.gmra.mxu0 %vm558_vm1, %v3782_v63  ;;  %v4828_v63 = vld [vmem:[#allocation16 + $0x20] sm:$0xff] }
 0x779   :  { %v3783_v11 = vmax.f32 %v3638_v21, %v3752_v57  ;;  %10751 = vmatpush3.msra.mxu1 %v4057_v19  ;;  %v4194_v57 = vld [vmem:[#allocation15 + $0x30] sm:$0xff]  ;;  %v4201_v19 = vld [vmem:[#allocation15 + $0x68] sm:$0xff] }
 0x77a   :  { %v10706_v34 = vpop.f32.mrf.mxu0  ;;  %10752 = vmatprep.subr.mxu1 %v4056_v54 }
 0x77b   :  { %10721 = vmatprep.mubr.msk.f32.mxu1 %vm558_vm1, %v3783_v11  ;;  %10741 = vmatprep.mubr.msk.f32.mxu0 %vm558_vm1, %v3783_v11  ;;  %v3786_v6 = vmax.f32 %v10662_v52, %v10706_v34  ;;  %v4189_v52 = vld [vmem:[#allocation15 + $0x8] sm:$0xff]  ;;  %v4195_v11 = vld [vmem:[#allocation15 + $0x38] sm:$0xff] }
 0x77c   :  { %v3762_v15 = vpop.f32.mrf.mxu0  ;;  %10722 = vmatmul.mubr.msk.f32.gmra.mxu1 %vm558_vm1, %v3784_v43  ;;  %10742 = vmatmul.mubr.msk.f32.gmra.mxu0 %vm558_vm1, %v3784_v43  ;;  %v4196_v43 = vld [vmem:[#allocation15 + $0x40] sm:$0xff]  ;;  %v4197_v34 = vld [vmem:[#allocation15 + $0x48] sm:$0xff] }
 0x77d   :  { %v3785_v50 = vmax.f32 %v3648_v27, %v3762_v15  ;;  %10753 = vmatpush3.msra.mxu1 %v4056_v54  ;;  %v4190_v27 = vld [vmem:[#allocation15 + $0x10] sm:$0xff]  ;;  %v4603_v15 = vld [vmem:[#allocation15 + $0x88] sm:$0xff] }
 0x77e   :  { %v10709_v24 = vpop.f32.mrf.mxu0  ;;  %10806 = vmatprep.subr.mxu1 %v4495_v56  ;;  %v4607_v54 = vld [vmem:[#allocation15 + $0xa8] sm:$0xff] }
 0x77f   :  { %10724 = vmatprep.mubr.msk.f32.mxu1 %vm558_vm1, %v3785_v50  ;;  %10744 = vmatprep.mubr.msk.f32.mxu0 %vm558_vm1, %v3785_v50  ;;  %v3788_v38 = vmax.f32 %v10665_v25, %v10709_v24  ;;  %v4198_v50 = vld [vmem:[#allocation15 + $0x50] sm:$0xff]  ;;  %v4199_v24 = vld [vmem:[#allocation15 + $0x58] sm:$0xff] }
 0x780   :  { %v3772_v8 = vpop.f32.mrf.mxu0  ;;  %10725 = vmatmul.mubr.msk.f32.gmra.mxu1 %vm558_vm1, %v3786_v6  ;;  %10745 = vmatmul.mubr.msk.f32.gmra.mxu0 %vm558_vm1, %v3786_v6  ;;  %v4604_v6 = vld [vmem:[#allocation15 + $0x90] sm:$0xff] }
 0x781   :  { %v3787_v13 = vmax.f32 %v3658_v59, %v3772_v8  ;;  %v4829_v59 = vld [vmem:[#allocation16 + $0x28] sm:$0xff]  ;;  %v4605_v8 = vld [vmem:[#allocation15 + $0x98] sm:$0xff] }
 0x783   :  { %10727 = vmatprep.mubr.msk.f32.mxu1 %vm558_vm1, %v3787_v13  ;;  %10747 = vmatprep.mubr.msk.f32.mxu0 %vm558_vm1, %v3787_v13  ;;  %v4200_v13 = vld [vmem:[#allocation15 + $0x60] sm:$0xff] }
 0x784   :  { %10728 = vmatmul.mubr.msk.f32.gmra.mxu1 %vm558_vm1, %v3788_v38  ;;  %10748 = vmatmul.mubr.msk.f32.gmra.mxu0 %vm558_vm1, %v3788_v38  ;;  %v4606_v38 = vld [vmem:[#allocation15 + $0xa0] sm:$0xff] }
 0x785   :  { %10782 = vmatprep.mubr.msk.f32.mxu0 %vm428_vm0, %v4188_v42 }
 0x838   :  { %v10720_v0 = vpop.f32.mrf.mxu1  ;;  %v10740_v4 = vpop.f32.mrf.mxu0 }
 0x839   :  { %v13197_v58 = vmax.f32 %v10720_v0, %v10740_v4  ;;  %v4608_v0 = vld [vmem:[#allocation15 + $0xb0] sm:$0xff]  ;;  %v4203_v4 = vld [vmem:[#allocation15 + $0x78] sm:$0xff] }
 0x83a   :  { %v3883_v20 = vpop.f32.mrf.mxu1  ;;  %v3993_v36 = vpop.f32.mrf.mxu0 }
 0x83b   :  { %v13195_v28 = vmax.f32 %v3883_v20, %v3993_v36  ;;  %v4609_v20 = vld [vmem:[#allocation15 + $0xb8] sm:$0xff]  ;;  %v4610_v36 = vld [vmem:[#allocation15 + $0xc0] sm:$0xff] }
 0x83c   :  { %v10723_v62 = vpop.f32.mrf.mxu1  ;;  %v10743_v12 = vpop.f32.mrf.mxu0 }
 0x83d   :  { %10754 = vmatprep.mubr.msk.f32.mxu1 %vm4058_vm2, %v13195_v28  ;;  %v13205_v45 = vmax.f32 %v10723_v62, %v10743_v12  ;;  %v4611_v62 = vld [vmem:[#allocation15 + $0xc8] sm:$0xff]  ;;  %v4612_v12 = vld [vmem:[#allocation15 + $0xd0] sm:$0xff] }
 0x83e   :  { %v3893_v32 = vpop.f32.mrf.mxu1  ;;  %v4003_v5 = vpop.f32.mrf.mxu0  ;;  %10755 = vmatmul.mubr.msk.f32.vlgmr.msra.gmra.mxu1 %vm4058_vm2, %v13197_v58 }
 0x83f   :  { %v13203_v48 = vmax.f32 %v3893_v32, %v4003_v5  ;;  %10807 = vmatpush3.msra.mxu1 %v4495_v56  ;;  %v4202_v56 = vld [vmem:[#allocation15 + $0x70] sm:$0xff]  ;;  %v4614_v32 = vld [vmem:[#allocation15 + $0xe0] sm:$0xff] }
 0x840   :  { %v10726_v53 = vpop.f32.mrf.mxu1  ;;  %v10746_v47 = vpop.f32.mrf.mxu0  ;;  %10808 = vmatprep.subr.mxu1 %v4494_v26  ;;  %v4616_v5 = vld [vmem:[#allocation15 + $0xf0] sm:$0xff] }
 0x841   :  { %10757 = vmatprep.mubr.msk.f32.mxu1 %vm4058_vm2, %v13203_v48  ;;  %10809 = vmatpush3.msra.mxu1 %v4494_v26  ;;  %v13213_v33 = vmax.f32 %v10726_v53, %v10746_v47  ;;  %v4613_v26 = vld [vmem:[#allocation15 + $0xd8] sm:$0xff] }
 0x842   :  { %v3903_v22 = vpop.f32.mrf.mxu1  ;;  %v4013_v55 = vpop.f32.mrf.mxu0  ;;  %10758 = vmatmul.mubr.msk.f32.gmra.mxu1 %vm4058_vm2, %v13205_v45 }
 0x843   :  { %v13211_v44 = vmax.f32 %v3903_v22, %v4013_v55 }
 0x844   :  { %v10729_v23 = vpop.f32.mrf.mxu1  ;;  %v10749_v7 = vpop.f32.mrf.mxu0 }
 0x845   :  { %10760 = vmatprep.mubr.msk.f32.mxu1 %vm4058_vm2, %v13211_v44  ;;  %v13221_v46 = vmax.f32 %v10729_v23, %v10749_v7 }
 0x846   :  { %v3913_v2 = vpop.f32.mrf.mxu1  ;;  %v4023_v17 = vpop.f32.mrf.mxu0  ;;  %10761 = vmatmul.mubr.msk.f32.gmra.mxu1 %vm4058_vm2, %v13213_v33 }
 0x847   :  { %v13219_v3 = vmax.f32 %v3913_v2, %v4023_v17 }
 0x849   :  { %10763 = vmatprep.mubr.msk.f32.mxu1 %vm4058_vm2, %v13219_v3 }
 0x84a   :  { %10764 = vmatmul.mubr.msk.f32.gmra.mxu1 %vm4058_vm2, %v13221_v46 }
 0x84b   :  { %10810 = vmatprep.mubr.msk.f32.mxu1 %vm4058_vm2, %v13195_v28 }
 0x84e   :  { %10811 = vmatmul.mubr.msk.f32.vlgmr.msra.gmra.mxu1 %vm4058_vm2, %v13197_v58 }
 0x84f   :  { %10813 = vmatprep.mubr.msk.f32.mxu1 %vm4058_vm2, %v13203_v48 }
 0x852   :  { %10814 = vmatmul.mubr.msk.f32.gmra.mxu1 %vm4058_vm2, %v13205_v45 }
 0x853   :  { %10816 = vmatprep.mubr.msk.f32.mxu1 %vm4058_vm2, %v13211_v44 }
 0x856   :  { %10817 = vmatmul.mubr.msk.f32.gmra.mxu1 %vm4058_vm2, %v13213_v33 }
 0x857   :  { %10819 = vmatprep.mubr.msk.f32.mxu1 %vm4058_vm2, %v13219_v3 }
 0x85a   :  { %10820 = vmatmul.mubr.msk.f32.gmra.mxu1 %vm4058_vm2, %v13221_v46 }
 0x85b   :  { %10838 = vmatprep.mubr.msk.f32.mxu1 %vm428_vm0, %v4602_v40 }
 0x8fe   :  { %v10756_v18 = vpop.f32.mrf.mxu1 }
 0x900   :  { %v4149_v14 = vpop.f32.mrf.mxu1 }
 0x902   :  { %v10759_v29 = vpop.f32.mrf.mxu1 }
 0x904   :  { %v4159_v1 = vpop.f32.mrf.mxu1 }
 0x906   :  { %v10762_v37 = vpop.f32.mrf.mxu1 }
 0x908   :  { %v4169_v35 = vpop.f32.mrf.mxu1 }
 0x90a   :  { %v10765_v51 = vpop.f32.mrf.mxu1 }
 0x90b   :  { %10766 = vmatprep.subr.mxu0 %v10765_v51 }
 0x90c   :  { %v4179_v49 = vpop.f32.mrf.mxu1  ;;  %10767 = vmatpush3.msra.mxu0 %v10765_v51 }
 0x90d   :  { %10768 = vmatprep.subr.mxu0 %v4179_v49 }
 0x90e   :  { %10769 = vmatpush3.msra.mxu0 %v4179_v49  ;;  %v10812_v31 = vpop.f32.mrf.mxu1 }
 0x90f   :  { %10770 = vmatprep.subr.mxu0 %v10762_v37 }
 0x910   :  { %10771 = vmatpush3.msra.mxu0 %v10762_v37  ;;  %v4562_v61 = vpop.f32.mrf.mxu1 }
 0x911   :  { %10772 = vmatprep.subr.mxu0 %v4169_v35 }
 0x912   :  { %10773 = vmatpush3.msra.mxu0 %v4169_v35  ;;  %v10815_v39 = vpop.f32.mrf.mxu1 }
 0x913   :  { %10774 = vmatprep.subr.mxu0 %v10759_v29 }
 0x914   :  { %10775 = vmatpush3.msra.mxu0 %v10759_v29  ;;  %v4572_v41 = vpop.f32.mrf.mxu1 }
 0x915   :  { %10776 = vmatprep.subr.mxu0 %v4159_v1 }
 0x916   :  { %10777 = vmatpush3.msra.mxu0 %v4159_v1  ;;  %v10818_v30 = vpop.f32.mrf.mxu1 }
 0x917   :  { %10778 = vmatprep.subr.mxu0 %v10756_v18 }
 0x918   :  { %10779 = vmatpush3.msra.mxu0 %v10756_v18  ;;  %v4582_v21 = vpop.f32.mrf.mxu1 }
 0x919   :  { %10780 = vmatprep.subr.mxu0 %v4149_v14 }
 0x91a   :  { %10781 = vmatpush3.msra.mxu0 %v4149_v14  ;;  %v10821_v25 = vpop.f32.mrf.mxu1 }
 0x91b   :  { %10783 = vmatmul.mubr.msk.f32.vlgmr.msra.gmra.mxu0 %vm428_vm0, %v4189_v52  ;;  %10822 = vmatprep.subr.mxu1 %v10821_v25  ;;  %v4942_v52 = vld [vmem:[#allocation15 + $0x130] sm:$0xff] }
 0x91c   :  { %v4592_v60 = vpop.f32.mrf.mxu1  ;;  %10823 = vmatpush3.msra.mxu1 %v10821_v25  ;;  %10785 = vmatprep.mubr.msk.f32.mxu0 %vm428_vm0, %v4190_v27  ;;  %v4943_v27 = vld [vmem:[#allocation15 + $0x138] sm:$0xff]  ;;  %v4944_v25 = vld [vmem:[#allocation15 + $0x140] sm:$0xff] }
 0x91d   :  { %10824 = vmatprep.subr.mxu1 %v4592_v60  ;;  %10862 = vmatprep.subr.mxu0 %v4829_v59 }
 0x91e   :  { %10825 = vmatpush3.msra.mxu1 %v4592_v60  ;;  %10863 = vmatpush3.msra.mxu0 %v4829_v59  ;;  %v4945_v59 = vld [vmem:[#allocation15 + $0x148] sm:$0xff]  ;;  %v4946_v60 = vld [vmem:[#allocation15 + $0x150] sm:$0xff] }
 0x91f   :  { %10786 = vmatmul.mubr.msk.f32.gmra.mxu0 %vm428_vm0, %v4191_v10  ;;  %10826 = vmatprep.subr.mxu1 %v10818_v30  ;;  %v4947_v10 = vld [vmem:[#allocation15 + $0x158] sm:$0xff] }
 0x920   :  { %10827 = vmatpush3.msra.mxu1 %v10818_v30  ;;  %10788 = vmatprep.mubr.msk.f32.mxu0 %vm428_vm0, %v4192_v16  ;;  %v4940_v30 = vld [vmem:[#allocation15 + $0x120] sm:$0xff] }
 0x921   :  { %10828 = vmatprep.subr.mxu1 %v4582_v21  ;;  %10864 = vmatprep.subr.mxu0 %v4828_v63  ;;  %v4948_v16 = vld [vmem:[#allocation15 + $0x160] sm:$0xff] }
 0x922   :  { %10829 = vmatpush3.msra.mxu1 %v4582_v21  ;;  %10865 = vmatpush3.msra.mxu0 %v4828_v63  ;;  %v4941_v21 = vld [vmem:[#allocation15 + $0x128] sm:$0xff] }
 0x923   :  { %10789 = vmatmul.mubr.msk.f32.gmra.mxu0 %vm428_vm0, %v4193_v9  ;;  %10830 = vmatprep.subr.mxu1 %v10815_v39  ;;  %v4949_v63 = vld [vmem:[#allocation15 + $0x168] sm:$0xff]  ;;  %v4950_v9 = vld [vmem:[#allocation15 + $0x170] sm:$0xff] }
 0x924   :  { %10831 = vmatpush3.msra.mxu1 %v10815_v39  ;;  %10791 = vmatprep.mubr.msk.f32.mxu0 %vm428_vm0, %v4194_v57  ;;  %v4938_v39 = vld [vmem:[#allocation15 + $0x110] sm:$0xff]  ;;  %v4951_v57 = vld [vmem:[#allocation15 + $0x178] sm:$0xff] }
 0x925   :  { %10832 = vmatprep.subr.mxu1 %v4572_v41 }
 0x926   :  { %10833 = vmatpush3.msra.mxu1 %v4572_v41  ;;  %v4939_v41 = vld [vmem:[#allocation15 + $0x118] sm:$0xff] }
 0x927   :  { %10792 = vmatmul.mubr.msk.f32.gmra.mxu0 %vm428_vm0, %v4195_v11  ;;  %10834 = vmatprep.subr.mxu1 %v10812_v31  ;;  %v5186_v11 = vld [vmem:[#allocation21 + $0x8] sm:$0xff] }
 0x928   :  { %10835 = vmatpush3.msra.mxu1 %v10812_v31  ;;  %10794 = vmatprep.mubr.msk.f32.mxu0 %vm428_vm0, %v4196_v43  ;;  %v5185_v43 = vld [vmem:[#allocation21] sm:$0xff] }
 0x929   :  { %10836 = vmatprep.subr.mxu1 %v4562_v61 }
 0x92a   :  { %10837 = vmatpush3.msra.mxu1 %v4562_v61  ;;  %v4937_v61 = vld [vmem:[#allocation15 + $0x108] sm:$0xff] }
 0x92b   :  { %10795 = vmatmul.mubr.msk.f32.gmra.mxu0 %vm428_vm0, %v4197_v34  ;;  %10839 = vmatmul.mubr.msk.f32.vlgmr.msra.gmra.mxu1 %vm428_vm0, %v4603_v15  ;;  %v5543_v34 = vld [vmem:[#allocation21 + $0x18] sm:$0xff] }
 0x92c   :  { %10797 = vmatprep.mubr.msk.f32.mxu0 %vm428_vm0, %v4198_v50  ;;  %10841 = vmatprep.mubr.msk.f32.mxu1 %vm428_vm0, %v4604_v6 }
 0x92d   :  { %10918 = vmatprep.subr.mxu1 %v5186_v11 }
 0x92e   :  { %10919 = vmatpush3.msra.mxu1 %v5186_v11 }
 0x92f   :  { %10798 = vmatmul.mubr.msk.f32.gmra.mxu0 %vm428_vm0, %v4199_v24  ;;  %10842 = vmatmul.mubr.msk.f32.gmra.mxu1 %vm428_vm0, %v4605_v8 }
 0x930   :  { %10800 = vmatprep.mubr.msk.f32.mxu0 %vm428_vm0, %v4200_v13  ;;  %10844 = vmatprep.mubr.msk.f32.mxu1 %vm428_vm0, %v4606_v38  ;;  %v4400_v13 = vpop.permute.xlu0 %4399  ;;  %v4405_v38 = vpop.permute.xlu1 %4404 }
 0x931   :  { %10920 = vmatprep.subr.mxu1 %v5185_v43 }
 0x932   :  { %10921 = vmatpush3.msra.mxu1 %v5185_v43 }
 0x933   :  { %10801 = vmatmul.mubr.msk.f32.gmra.mxu0 %vm428_vm0, %v4201_v19  ;;  %10845 = vmatmul.mubr.msk.f32.gmra.mxu1 %vm428_vm0, %v4607_v54 }
 0x934   :  { %10803 = vmatprep.mubr.msk.f32.mxu0 %vm428_vm0, %v4202_v56  ;;  %10847 = vmatprep.mubr.msk.f32.mxu1 %vm428_vm0, %v4608_v0  ;;  %v4410_v54 = vpop.permute.xlu0 %4409  ;;  %v4415_v56 = vpop.permute.xlu1 %4414 }
 0x935   :  { %10990 = vmatprep.subr.mxu1 %v5543_v34 }
 0x937   :  { %10804 = vmatmul.mubr.msk.f32.gmra.mxu0 %vm428_vm0, %v4203_v4  ;;  %10848 = vmatmul.mubr.msk.f32.gmra.mxu1 %vm428_vm0, %v4609_v20 }
 0x938   :  { %10866 = vmatprep.mubr.msk.f32.mxu0 %vm4058_vm2, %v13195_v28  ;;  %10850 = vmatprep.mubr.msk.f32.mxu1 %vm428_vm0, %v4610_v36  ;;  %v4615_v28 = vld [vmem:[#allocation15 + $0xe8] sm:$0xff]  ;;  %v4420_v20 = vpop.permute.xlu0 %4419  ;;  %v4425_v36 = vpop.permute.xlu1 %4424 }
 0x93b   :  { %10851 = vmatmul.mubr.msk.f32.gmra.mxu1 %vm428_vm0, %v4611_v62  ;;  %10867 = vmatmul.mubr.msk.f32.vlgmr.msra.gmra.mxu0 %vm4058_vm2, %v13197_v58  ;;  %v4617_v58 = vld [vmem:[#allocation15 + $0xf8] sm:$0xff] }
 0x93c   :  { %10869 = vmatprep.mubr.msk.f32.mxu0 %vm4058_vm2, %v13203_v48  ;;  %10853 = vmatprep.mubr.msk.f32.mxu1 %vm428_vm0, %v4612_v12  ;;  %v4936_v48 = vld [vmem:[#allocation15 + $0x100] sm:$0xff] }
 0x93f   :  { %10854 = vmatmul.mubr.msk.f32.gmra.mxu1 %vm428_vm0, %v4613_v26  ;;  %10870 = vmatmul.mubr.msk.f32.gmra.mxu0 %vm4058_vm2, %v13205_v45 }
 0x940   :  { %10872 = vmatprep.mubr.msk.f32.mxu0 %vm4058_vm2, %v13211_v44  ;;  %10856 = vmatprep.mubr.msk.f32.mxu1 %vm428_vm0, %v4614_v32 }
 0x943   :  { %10857 = vmatmul.mubr.msk.f32.gmra.mxu1 %vm428_vm0, %v4615_v28  ;;  %10873 = vmatmul.mubr.msk.f32.gmra.mxu0 %vm4058_vm2, %v13213_v33 }
 0x944   :  { %10875 = vmatprep.mubr.msk.f32.mxu0 %vm4058_vm2, %v13219_v3  ;;  %10859 = vmatprep.mubr.msk.f32.mxu1 %vm428_vm0, %v4616_v5  ;;  %v4430_v5 = vpop.permute.xlu0 %4429 }
 0x947   :  { %10860 = vmatmul.mubr.msk.f32.gmra.mxu1 %vm428_vm0, %v4617_v58  ;;  %10876 = vmatmul.mubr.msk.f32.gmra.mxu0 %vm4058_vm2, %v13221_v46  ;;  %v4435_v58 = vpop.permute.xlu1 %4434 }
 0x948   :  { %10894 = vmatprep.mubr.msk.f32.mxu0 %vm428_vm0, %v4936_v48 }
 0x9db   :  { %v13292_v45 = vpop.f32.mrf.mxu0 }
 0x9dc   :  { %v4478_v62 = vadd.f32 %v13292_v45, %v4405_v38 }
 0x9dd   :  { %v13294_v53 = vpop.f32.mrf.mxu0 }
 0x9de   :  { %v4477_v26 = vadd.f32 %v4400_v13, %v13294_v53 }
 0x9df   :  { %v13296_v47 = vpop.f32.mrf.mxu0 }
 0x9e1   :  { %v13298_v22 = vpop.f32.mrf.mxu0 }
 0x9e3   :  { %v13300_v55 = vpop.f32.mrf.mxu0 }
 0x9e4   :  { %v4482_v53 = vadd.f32 %v13300_v55, %v4425_v36 }
 0x9e5   :  { %v13302_v44 = vpop.f32.mrf.mxu0 }
 0x9e7   :  { %v13304_v33 = vpop.f32.mrf.mxu0 }
 0x9e9   :  { %v13306_v23 = vpop.f32.mrf.mxu0 }
 0x9ea   :  { %v4483_v43 = vadd.f32 %v4430_v5, %v13306_v23 }
 0x9eb   :  { %v13308_v7 = vpop.f32.mrf.mxu0  ;;  %v10840_v15 = vpop.f32.mrf.mxu1 }
 0x9ec   :  { %v4812_v32 = vadd.f32 %v10840_v15, %v4478_v62 }
 0x9ed   :  { %v13310_v2 = vpop.f32.mrf.mxu0  ;;  %v4732_v50 = vpop.f32.mrf.mxu1 }
 0x9ee   :  { %v4811_v48 = vadd.f32 %v4732_v50, %v4477_v26 }
 0x9ef   :  { %v13312_v17 = vpop.f32.mrf.mxu0  ;;  %v10843_v6 = vpop.f32.mrf.mxu1 }
 0x9f1   :  { %v13314_v3 = vpop.f32.mrf.mxu0  ;;  %v4742_v24 = vpop.f32.mrf.mxu1 }
 0x9f3   :  { %v13316_v46 = vpop.f32.mrf.mxu0  ;;  %v10846_v8 = vpop.f32.mrf.mxu1 }
 0x9f5   :  { %v13318_v42 = vpop.f32.mrf.mxu0  ;;  %v4752_v19 = vpop.f32.mrf.mxu1 }
 0x9f7   :  { %v13320_v40 = vpop.f32.mrf.mxu0  ;;  %v10849_v0 = vpop.f32.mrf.mxu1 }
 0x9f9   :  { %v13322_v18 = vpop.f32.mrf.mxu0  ;;  %v4762_v4 = vpop.f32.mrf.mxu1 }
 0x9fb   :  { %v10868_v14 = vpop.f32.mrf.mxu0  ;;  %v10852_v12 = vpop.f32.mrf.mxu1 }
 0x9fd   :  { %v4896_v29 = vpop.f32.mrf.mxu0 }
 0x9ff   :  { %v10871_v1 = vpop.f32.mrf.mxu0 }
 0xa01   :  { %v4906_v37 = vpop.f32.mrf.mxu0 }
 0xa03   :  { %v10874_v35 = vpop.f32.mrf.mxu0 }
 0xa05   :  { %v4916_v51 = vpop.f32.mrf.mxu0 }
 0xa07   :  { %v10877_v49 = vpop.f32.mrf.mxu0 }
 0xa08   :  { %10878 = vmatprep.subr.mxu0 %v10877_v49 }
 0xa09   :  { %v4926_v31 = vpop.f32.mrf.mxu0  ;;  %10879 = vmatpush3.msra.mxu0 %v10877_v49 }
 0xa0a   :  { %10880 = vmatprep.subr.mxu0 %v4926_v31 }
 0xa0b   :  { %10881 = vmatpush3.msra.mxu0 %v4926_v31 }
 0xa0c   :  { %10882 = vmatprep.subr.mxu0 %v10874_v35 }
 0xa0d   :  { %10883 = vmatpush3.msra.mxu0 %v10874_v35  ;;  %v4479_v35 = vadd.f32 %v4410_v54, %v13298_v22  ;;  %v5542_v22 = vld [vmem:[#allocation21 + $0x10] sm:$0xff] }
 0xa0e   :  { %10884 = vmatprep.subr.mxu0 %v4916_v51 }
 0xa0f   :  { %10885 = vmatpush3.msra.mxu0 %v4916_v51 }
 0xa10   :  { %10886 = vmatprep.subr.mxu0 %v10871_v1 }
 0xa11   :  { %10887 = vmatpush3.msra.mxu0 %v10871_v1 }
 0xa12   :  { %10888 = vmatprep.subr.mxu0 %v4906_v37 }
 0xa13   :  { %10889 = vmatpush3.msra.mxu0 %v4906_v37 }
 0xa14   :  { %10890 = vmatprep.subr.mxu0 %v10868_v14 }
 0xa15   :  { %10891 = vmatpush3.msra.mxu0 %v10868_v14  ;;  %v4480_v14 = vadd.f32 %v13296_v47, %v4415_v56  ;;  %v4445_v47 = vpop.permute.xlu1 %4444 }
 0xa16   :  { %10892 = vmatprep.subr.mxu0 %v4896_v29  ;;  %v4486_v13 = vadd.f32 %v13308_v7, %v4445_v47 }
 0xa17   :  { %10893 = vmatpush3.msra.mxu0 %v4896_v29  ;;  %v4772_v29 = vpop.f32.mrf.mxu1  ;;  %v4814_v49 = vadd.f32 %v10843_v6, %v4480_v14 }
 0xa18   :  { %10895 = vmatmul.mubr.msk.f32.vlgmr.msra.gmra.mxu0 %vm428_vm0, %v4937_v61  ;;  %v4813_v61 = vadd.f32 %v4742_v24, %v4479_v35  ;;  %v4817_v24 = vadd.f32 %v4762_v4, %v4483_v43 }
 0xa19   :  { %10897 = vmatprep.mubr.msk.f32.mxu0 %vm428_vm0, %v4938_v39  ;;  %v10855_v39 = vpop.f32.mrf.mxu1 }
 0xa1c   :  { %10898 = vmatmul.mubr.msk.f32.gmra.mxu0 %vm428_vm0, %v4939_v41 }
 0xa1d   :  { %10900 = vmatprep.mubr.msk.f32.mxu0 %vm428_vm0, %v4940_v30 }
 0xa20   :  { %10901 = vmatmul.mubr.msk.f32.gmra.mxu0 %vm428_vm0, %v4941_v21 }
 0xa21   :  { %10903 = vmatprep.mubr.msk.f32.mxu0 %vm428_vm0, %v4942_v52  ;;  %v4440_v52 = vpop.permute.xlu0 %4439 }
 0xa22   :  { %v4485_v56 = vadd.f32 %v4440_v52, %v13310_v2 }
 0xa24   :  { %10904 = vmatmul.mubr.msk.f32.gmra.mxu0 %vm428_vm0, %v4943_v27  ;;  %v4481_v27 = vadd.f32 %v4420_v20, %v13302_v44  ;;  %v4820_v20 = vadd.f32 %v10852_v12, %v4486_v13  ;;  %v4819_v4 = vadd.f32 %v4772_v29, %v4485_v56 }
 0xa25   :  { %10906 = vmatprep.mubr.msk.f32.mxu0 %vm428_vm0, %v4944_v25 }
 0xa26   :  { %v4815_v55 = vadd.f32 %v4752_v19, %v4481_v27 }
 0xa28   :  { %10907 = vmatmul.mubr.msk.f32.gmra.mxu0 %vm428_vm0, %v4945_v59  ;;  %v4816_v59 = vadd.f32 %v10846_v8, %v4482_v53 }
 0xa29   :  { %10909 = vmatprep.mubr.msk.f32.mxu0 %vm428_vm0, %v4946_v60 }
 0xa2c   :  { %10910 = vmatmul.mubr.msk.f32.gmra.mxu0 %vm428_vm0, %v4947_v10 }
 0xa2d   :  { %10912 = vmatprep.mubr.msk.f32.mxu0 %vm428_vm0, %v4948_v16  ;;  %v13355_v16 = vld [vmem:[#allocation21 + $0x28] sm:$0xff] }
 0xa30   :  { %10913 = vmatmul.mubr.msk.f32.gmra.mxu0 %vm428_vm0, %v4949_v63  ;;  %v4484_v63 = vadd.f32 %v13304_v33, %v4435_v58  ;;  %v4450_v33 = vpop.permute.xlu0 %4449 }
 0xa31   :  { %10915 = vmatprep.mubr.msk.f32.mxu0 %vm428_vm0, %v4950_v9  ;;  %v4782_v9 = vpop.f32.mrf.mxu1 }
 0xa32   :  { %v4818_v50 = vadd.f32 %v10849_v0, %v4484_v63 }
 0xa33   :  { %v10858_v23 = vpop.f32.mrf.mxu1 }
 0xa34   :  { %10916 = vmatmul.mubr.msk.f32.gmra.mxu0 %vm428_vm0, %v4951_v57  ;;  %v4460_v2 = vpop.permute.xlu0 %4459 }
 0xa35   :  { %v4792_v26 = vpop.f32.mrf.mxu1 }
 0xa37   :  { %v10861_v35 = vpop.f32.mrf.mxu1 }
 0xa39   :  { %v4802_v27 = vpop.f32.mrf.mxu1 }
 0xad8   :  { %v10896_v28 = vpop.f32.mrf.mxu0 }
 0xad9   :  { %v5146_v1 = vadd.f32 %v10896_v28, %v4812_v32 }
 0xada   :  { %v5066_v37 = vpop.f32.mrf.mxu0 }
 0xadb   :  { %v5145_v51 = vadd.f32 %v5066_v37, %v4811_v48  ;;  %v13346_v41 = vmax.f32 %v5146_v1, 0.0  ;;  %v4487_v48 = vadd.f32 %v4450_v33, %v13314_v3  ;;  %v4489_v3 = vadd.f32 %v4460_v2, %v13318_v42 }
 0xadc   :  { %v10899_v31 = vpop.f32.mrf.mxu0 }
 0xadd   :  { %v13343_v45 = vmax.f32 %v5145_v51, 0.0  ;;  %v5148_v30 = vadd.f32 %v10899_v31, %v4814_v49  ;;  %v4821_v29 = vadd.f32 %v4782_v9, %v4487_v48  ;;  %v4823_v52 = vadd.f32 %v4792_v26, %v4489_v3 }
 0xade   :  { %v5076_v21 = vpop.f32.mrf.mxu0 }
 0xadf   :  { %v5147_v25 = vadd.f32 %v5076_v21, %v4813_v61  ;;  %10922 = vmatprep.mubr.msk.f32.mxu1 %vm4058_vm2, %v13343_v45  ;;  %v13358_v44 = vmax.f32 %v5148_v30, 0.0  ;;  %v4470_v30 = vpop.permute.xlu0 %4469 }
 0xae0   :  { %v10902_v60 = vpop.f32.mrf.mxu0  ;;  %10923 = vmatmul.mubr.msk.f32.vlgmr.msra.gmra.mxu1 %vm4058_vm2, %v13346_v41  ;;  %v4491_v42 = vadd.f32 %v4470_v30, %v13322_v18  ;;  %v5812_v18 = vld [vmem:[#allocation21 + $0x20] sm:$0xff] }
 0xae1   :  { %v13353_v10 = vmax.f32 %v5147_v25, 0.0  ;;  %10991 = vmatpush3.msra.mxu1 %v5543_v34  ;;  %v5150_v57 = vadd.f32 %v10902_v60, %v4816_v59  ;;  %v4455_v34 = vpop.permute.xlu1 %4454 }
 0xae2   :  { %v5086_v11 = vpop.f32.mrf.mxu0  ;;  %10992 = vmatprep.subr.mxu1 %v5542_v22  ;;  %v4488_v7 = vadd.f32 %v13312_v17, %v4455_v34  ;;  %v4825_v9 = vadd.f32 %v4802_v27, %v4491_v42 }
 0xae3   :  { %v5149_v15 = vadd.f32 %v5086_v11, %v4815_v55  ;;  %10925 = vmatprep.mubr.msk.f32.mxu1 %vm4058_vm2, %v13353_v10  ;;  %10993 = vmatpush3.msra.mxu1 %v5542_v22  ;;  %v13369_v38 = vmax.f32 %v5150_v57, 0.0 }
 0xae4   :  { %v10905_v6 = vpop.f32.mrf.mxu0  ;;  %10926 = vmatmul.mubr.msk.f32.gmra.mxu1 %vm4058_vm2, %v13358_v44  ;;  %11062 = vmatprep.subr.mxu1 %v13355_v16  ;;  %v4822_v12 = vadd.f32 %v10855_v39, %v4488_v7 }
 0xae5   :  { %v13366_v8 = vmax.f32 %v5149_v15, 0.0  ;;  %v5152_v19 = vadd.f32 %v10905_v6, %v4818_v50  ;;  %v4465_v58 = vpop.permute.xlu1 %4464 }
 0xae6   :  { %v5096_v54 = vpop.f32.mrf.mxu0  ;;  %v4490_v37 = vadd.f32 %v13316_v46, %v4465_v58 }
 0xae7   :  { %v5151_v0 = vadd.f32 %v5096_v54, %v4817_v24  ;;  %10928 = vmatprep.mubr.msk.f32.mxu1 %vm4058_vm2, %v13366_v8  ;;  %v13379_v32 = vmax.f32 %v5152_v19, 0.0 }
 0xae8   :  { %v10908_v36 = vpop.f32.mrf.mxu0  ;;  %10929 = vmatmul.mubr.msk.f32.gmra.mxu1 %vm4058_vm2, %v13369_v38  ;;  %v4824_v53 = vadd.f32 %v10858_v23, %v4490_v37 }
 0xae9   :  { %v13376_v62 = vmax.f32 %v5151_v0, 0.0  ;;  %v5154_v28 = vadd.f32 %v10908_v36, %v4820_v20  ;;  %v4475_v21 = vpop.permute.xlu1 %4474 }
 0xaea   :  { %v5106_v5 = vpop.f32.mrf.mxu0  ;;  %v4492_v47 = vadd.f32 %v13320_v40, %v4475_v21  ;;  %v5387_v21 = vld [vmem:[#allocation19 + $0x38] sm:$0xff] }
 0xaeb   :  { %v5153_v14 = vadd.f32 %v5106_v5, %v4819_v4  ;;  %10931 = vmatprep.mubr.msk.f32.mxu1 %vm4058_vm2, %v13376_v62  ;;  %v13389_v51 = vmax.f32 %v5154_v28, 0.0 }
 0xaec   :  { %v10911_v1 = vpop.f32.mrf.mxu0  ;;  %10932 = vmatmul.mubr.msk.f32.gmra.mxu1 %vm4058_vm2, %v13379_v32  ;;  %v4826_v55 = vadd.f32 %v10861_v35, %v4492_v47 }
 0xaed   :  { %v13386_v17 = vmax.f32 %v5153_v14, 0.0  ;;  %v5156_v49 = vadd.f32 %v10911_v1, %v4822_v12 }
 0xaee   :  { %v5116_v31 = vpop.f32.mrf.mxu0 }
 0xaef   :  { %v5155_v61 = vadd.f32 %v5116_v31, %v4821_v29  ;;  %10934 = vmatprep.mubr.msk.f32.mxu1 %vm4058_vm2, %v13386_v17  ;;  %v5172_v25 = vmax.f32 %v5156_v49, 0.0  ;;  %v5381_v29 = vld [vmem:[#allocation19 + $0x8] sm:$0xff]  ;;  %v5384_v49 = vld [vmem:[#allocation19 + $0x20] sm:$0xff] }
 0xaf0   :  { %v10914_v39 = vpop.f32.mrf.mxu0  ;;  %10935 = vmatmul.mubr.msk.f32.gmra.mxu1 %vm4058_vm2, %v13389_v51 }
 0xaf1   :  { %v5171_v46 = vmax.f32 %v5155_v61, 0.0  ;;  %v5158_v22 = vadd.f32 %v10914_v39, %v4824_v53  ;;  %v5385_v61 = vld [vmem:[#allocation19 + $0x28] sm:$0xff]  ;;  %v5386_v53 = vld [vmem:[#allocation19 + $0x30] sm:$0xff] }
 0xaf2   :  { %v5126_v59 = vpop.f32.mrf.mxu0 }
 0xaf3   :  { %v5157_v60 = vadd.f32 %v5126_v59, %v4823_v52  ;;  %10937 = vmatprep.mubr.msk.f32.mxu1 %vm4058_vm2, %v5171_v46  ;;  %v5174_v11 = vmax.f32 %v5158_v22, 0.0  ;;  %v5690_v52 = vld [vmem:[#allocation19 + $0x40] sm:$0xff] }
 0xaf4   :  { %v10917_v63 = vpop.f32.mrf.mxu0  ;;  %10938 = vmatmul.mubr.msk.f32.gmra.mxu1 %vm4058_vm2, %v5172_v25 }
 0xaf5   :  { %v5173_v57 = vmax.f32 %v5157_v60, 0.0  ;;  %v5160_v43 = vadd.f32 %v10917_v63, %v4826_v55 }
 0xaf6   :  { %v5136_v15 = vpop.f32.mrf.mxu0 }
 0xaf7   :  { %v5159_v50 = vadd.f32 %v5136_v15, %v4825_v9  ;;  %10940 = vmatprep.mubr.msk.f32.mxu1 %vm4058_vm2, %v5173_v57  ;;  %v5176_v6 = vmax.f32 %v5160_v43, 0.0  ;;  %v5691_v9 = vld [vmem:[#allocation19 + $0x48] sm:$0xff]  ;;  %v5693_v15 = vld [vmem:[#allocation19 + $0x58] sm:$0xff] }
 0xaf8   :  { %10941 = vmatmul.mubr.msk.f32.gmra.mxu1 %vm4058_vm2, %v5174_v11 }
 0xaf9   :  { %v5175_v40 = vmax.f32 %v5159_v50, 0.0  ;;  %v5694_v50 = vld [vmem:[#allocation19 + $0x60] sm:$0xff] }
 0xafb   :  { %10943 = vmatprep.mubr.msk.f32.mxu1 %vm4058_vm2, %v5175_v40 }
 0xafc   :  { %10944 = vmatmul.mubr.msk.f32.gmra.mxu1 %vm4058_vm2, %v5176_v6 }
 0xafd   :  { %10994 = vmatprep.mubr.msk.f32.mxu1 %vm4058_vm2, %v13343_v45 }
 0xb00   :  { %10995 = vmatmul.mubr.msk.f32.vlgmr.msra.gmra.mxu1 %vm4058_vm2, %v13346_v41 }
 0xb01   :  { %10997 = vmatprep.mubr.msk.f32.mxu1 %vm4058_vm2, %v13353_v10  ;;  %11063 = vmatpush3.msra.mxu1 %v13355_v16 }
 0xb02   :  { %11064 = vmatprep.subr.mxu1 %v5812_v18 }
 0xb03   :  { %11065 = vmatpush3.msra.mxu1 %v5812_v18  ;;  %v5697_v18 = vld [vmem:[#allocation19 + $0x78] sm:$0xff] }
 0xb04   :  { %10998 = vmatmul.mubr.msk.f32.gmra.mxu1 %vm4058_vm2, %v13358_v44 }
 0xb05   :  { %11000 = vmatprep.mubr.msk.f32.mxu1 %vm4058_vm2, %v13366_v8 }
 0xb08   :  { %11001 = vmatmul.mubr.msk.f32.gmra.mxu1 %vm4058_vm2, %v13369_v38 }
 0xb09   :  { %11003 = vmatprep.mubr.msk.f32.mxu1 %vm4058_vm2, %v13376_v62 }
 0xb0c   :  { %11004 = vmatmul.mubr.msk.f32.gmra.mxu1 %vm4058_vm2, %v13379_v32 }
 0xb0d   :  { %11006 = vmatprep.mubr.msk.f32.mxu1 %vm4058_vm2, %v13386_v17 }
 0xb10   :  { %11007 = vmatmul.mubr.msk.f32.gmra.mxu1 %vm4058_vm2, %v13389_v51 }
 0xb11   :  { %11009 = vmatprep.mubr.msk.f32.mxu1 %vm4058_vm2, %v5171_v46 }
 0xb14   :  { %11010 = vmatmul.mubr.msk.f32.gmra.mxu1 %vm4058_vm2, %v5172_v25 }
 0xb15   :  { %11012 = vmatprep.mubr.msk.f32.mxu1 %vm4058_vm2, %v5173_v57 }
 0xb18   :  { %11013 = vmatmul.mubr.msk.f32.gmra.mxu1 %vm4058_vm2, %v5174_v11 }
 0xb19   :  { %11015 = vmatprep.mubr.msk.f32.mxu1 %vm4058_vm2, %v5175_v40 }
 0xb1c   :  { %11016 = vmatmul.mubr.msk.f32.gmra.mxu1 %vm4058_vm2, %v5176_v6 }
 0xb1d   :  { %11066 = vmatprep.mubr.msk.f32.mxu1 %vm4058_vm2, %v13343_v45  ;;  %v5380_v45 = vld [vmem:[#allocation19] sm:$0xff] }
 0xb1e   :  { %10978 = vmatprep.mubr.f32.mxu0 %v5380_v45  ;;  %v5960_v45 = vld [vmem:[#allocation19 + $0x80] sm:$0xff] }
 0xb20   :  { %11067 = vmatmul.mubr.msk.f32.vlgmr.msra.gmra.mxu1 %vm4058_vm2, %v13346_v41 }
 0xb21   :  { %11069 = vmatprep.mubr.msk.f32.mxu1 %vm4058_vm2, %v13353_v10 }
 0xb24   :  { %11070 = vmatmul.mubr.msk.f32.gmra.mxu1 %vm4058_vm2, %v13358_v44 }
 0xb25   :  { %11072 = vmatprep.mubr.msk.f32.mxu1 %vm4058_vm2, %v13366_v8 }
 0xb28   :  { %11073 = vmatmul.mubr.msk.f32.gmra.mxu1 %vm4058_vm2, %v13369_v38 }
 0xb29   :  { %11075 = vmatprep.mubr.msk.f32.mxu1 %vm4058_vm2, %v13376_v62 }
 0xb2c   :  { %11076 = vmatmul.mubr.msk.f32.gmra.mxu1 %vm4058_vm2, %v13379_v32 }
 0xb2d   :  { %11078 = vmatprep.mubr.msk.f32.mxu1 %vm4058_vm2, %v13386_v17  ;;  %v5382_v17 = vld [vmem:[#allocation19 + $0x10] sm:$0xff] }
 0xb30   :  { %11079 = vmatmul.mubr.msk.f32.gmra.mxu1 %vm4058_vm2, %v13389_v51  ;;  %v5383_v51 = vld [vmem:[#allocation19 + $0x18] sm:$0xff] }
 0xb31   :  { %11081 = vmatprep.mubr.msk.f32.mxu1 %vm4058_vm2, %v5171_v46 }
 0xb34   :  { %11082 = vmatmul.mubr.msk.f32.gmra.mxu1 %vm4058_vm2, %v5172_v25 }
 0xb35   :  { %11084 = vmatprep.mubr.msk.f32.mxu1 %vm4058_vm2, %v5173_v57  ;;  %v5692_v57 = vld [vmem:[#allocation19 + $0x50] sm:$0xff] }
 0xb38   :  { %11085 = vmatmul.mubr.msk.f32.gmra.mxu1 %vm4058_vm2, %v5174_v11 }
 0xb39   :  { %11087 = vmatprep.mubr.msk.f32.mxu1 %vm4058_vm2, %v5175_v40  ;;  %v5695_v40 = vld [vmem:[#allocation19 + $0x68] sm:$0xff] }
 0xb3c   :  { %11088 = vmatmul.mubr.msk.f32.gmra.mxu1 %vm4058_vm2, %v5176_v6  ;;  %v5696_v6 = vld [vmem:[#allocation19 + $0x70] sm:$0xff] }
 0xba0   :  { %v10924_v41 = vpop.f32.mrf.mxu1 }
 0xba2   :  { %v5301_v10 = vpop.f32.mrf.mxu1 }
 0xba4   :  { %v10927_v16 = vpop.f32.mrf.mxu1 }
 0xba6   :  { %v5311_v44 = vpop.f32.mrf.mxu1 }
 0xba8   :  { %v10930_v33 = vpop.f32.mrf.mxu1 }
 0xbaa   :  { %v5321_v34 = vpop.f32.mrf.mxu1 }
 0xbac   :  { %v10933_v24 = vpop.f32.mrf.mxu1 }
 0xbae   :  { %v5331_v8 = vpop.f32.mrf.mxu1 }
 0xbb0   :  { %v10936_v13 = vpop.f32.mrf.mxu1 }
 0xbb2   :  { %v5341_v23 = vpop.f32.mrf.mxu1 }
 0xbb4   :  { %v10939_v38 = vpop.f32.mrf.mxu1 }
 0xbb6   :  { %v5351_v19 = vpop.f32.mrf.mxu1 }
 0xbb8   :  { %v10942_v54 = vpop.f32.mrf.mxu1 }
 0xbba   :  { %v5361_v56 = vpop.f32.mrf.mxu1 }
 0xbbc   :  { %v10945_v0 = vpop.f32.mrf.mxu1 }
 0xbbd   :  { %10946 = vmatprep.subr.mxu0 %v10945_v0 }
 0xbbe   :  { %v5371_v20 = vpop.f32.mrf.mxu1  ;;  %10947 = vmatpush3.msra.mxu0 %v10945_v0 }
 0xbbf   :  { %10948 = vmatprep.subr.mxu0 %v5371_v20 }
 0xbc0   :  { %10949 = vmatpush3.msra.mxu0 %v5371_v20  ;;  %v13457_v36 = vpop.f32.mrf.mxu1 }
 0xbc1   :  { %10950 = vmatprep.subr.mxu0 %v10942_v54 }
 0xbc2   :  { %10951 = vmatpush3.msra.mxu0 %v10942_v54  ;;  %v13459_v4 = vpop.f32.mrf.mxu1 }
 0xbc3   :  { %10952 = vmatprep.subr.mxu0 %v5361_v56 }
 0xbc4   :  { %10953 = vmatpush3.msra.mxu0 %v5361_v56  ;;  %v13461_v62 = vpop.f32.mrf.mxu1 }
 0xbc5   :  { %10954 = vmatprep.subr.mxu0 %v10939_v38 }
 0xbc6   :  { %10955 = vmatpush3.msra.mxu0 %v10939_v38  ;;  %v13463_v7 = vpop.f32.mrf.mxu1 }
 0xbc7   :  { %10956 = vmatprep.subr.mxu0 %v5351_v19 }
 0xbc8   :  { %10957 = vmatpush3.msra.mxu0 %v5351_v19  ;;  %v13465_v26 = vpop.f32.mrf.mxu1 }
 0xbc9   :  { %10958 = vmatprep.subr.mxu0 %v10936_v13 }
 0xbca   :  { %10959 = vmatpush3.msra.mxu0 %v10936_v13  ;;  %v13467_v32 = vpop.f32.mrf.mxu1  ;;  %v9045_v13 = vld [vmem:[%s13896_s15 + $0x20] sm:$0xff] }
 0xbcb   :  { %10960 = vmatprep.subr.mxu0 %v5341_v23 }
 0xbcc   :  { %10961 = vmatpush3.msra.mxu0 %v5341_v23  ;;  %v13469_v28 = vpop.f32.mrf.mxu1 }
 0xbcd   :  { %10962 = vmatprep.subr.mxu0 %v10933_v24 }
 0xbce   :  { %10963 = vmatpush3.msra.mxu0 %v10933_v24  ;;  %v13471_v5 = vpop.f32.mrf.mxu1  ;;  %v5967_v24 = vld [vmem:[#allocation19 + $0xb8] sm:$0xff] }
 0xbcf   :  { %10964 = vmatprep.subr.mxu0 %v5331_v8 }
 0xbd0   :  { %10965 = vmatpush3.msra.mxu0 %v5331_v8  ;;  %v11008_v2 = vpop.f32.mrf.mxu1  ;;  %v6089_v8 = vld [vmem:[%s13896_s15] sm:$0xff] }
 0xbd1   :  { %10966 = vmatprep.subr.mxu0 %v10930_v33  ;;  %11150 = vmatprep.mubr.msk.f32.mxu1 %vm428_vm0, %v6089_v8 }
 0xbd2   :  { %10967 = vmatpush3.msra.mxu0 %v10930_v33  ;;  %v5650_v58 = vpop.f32.mrf.mxu1  ;;  %v5965_v33 = vld [vmem:[#allocation19 + $0xa8] sm:$0xff] }
 0xbd3   :  { %10968 = vmatprep.subr.mxu0 %v5321_v34 }
 0xbd4   :  { %10969 = vmatpush3.msra.mxu0 %v5321_v34  ;;  %v11011_v48 = vpop.f32.mrf.mxu1  ;;  %v5966_v34 = vld [vmem:[#allocation19 + $0xb0] sm:$0xff] }
 0xbd5   :  { %10970 = vmatprep.subr.mxu0 %v10927_v16 }
 0xbd6   :  { %10971 = vmatpush3.msra.mxu0 %v10927_v16  ;;  %v5660_v14 = vpop.f32.mrf.mxu1  ;;  %v5963_v16 = vld [vmem:[#allocation19 + $0x98] sm:$0xff] }
 0xbd7   :  { %10972 = vmatprep.subr.mxu0 %v5311_v44 }
 0xbd8   :  { %10973 = vmatpush3.msra.mxu0 %v5311_v44  ;;  %v11014_v12 = vpop.f32.mrf.mxu1  ;;  %v5964_v44 = vld [vmem:[#allocation19 + $0xa0] sm:$0xff] }
 0xbd9   :  { %10974 = vmatprep.subr.mxu0 %v10924_v41 }
 0xbda   :  { %10975 = vmatpush3.msra.mxu0 %v10924_v41  ;;  %v5670_v1 = vpop.f32.mrf.mxu1  ;;  %v5961_v41 = vld [vmem:[#allocation19 + $0x88] sm:$0xff] }
 0xbdb   :  { %10976 = vmatprep.subr.mxu0 %v5301_v10 }
 0xbdc   :  { %10977 = vmatpush3.msra.mxu0 %v5301_v10  ;;  %v11017_v37 = vpop.f32.mrf.mxu1  ;;  %v5962_v10 = vld [vmem:[#allocation19 + $0x90] sm:$0xff] }
 0xbdd   :  { %10979 = vmatmul.mubr.f32.vlgmr.msra.gmra.mxu0 %v5381_v29  ;;  %11018 = vmatprep.subr.mxu0 %v11017_v37 }
 0xbde   :  { %v5680_v35 = vpop.f32.mrf.mxu1  ;;  %11019 = vmatpush3.msra.mxu0 %v11017_v37  ;;  %10981 = vmatprep.mubr.f32.mxu0 %v5382_v17 }
 0xbdf   :  { %11020 = vmatprep.subr.mxu0 %v5680_v35 }
 0xbe0   :  { %11021 = vmatpush3.msra.mxu0 %v5680_v35  ;;  %v13473_v31 = vpop.f32.mrf.mxu1 }
 0xbe1   :  { %10982 = vmatmul.mubr.f32.gmra.mxu0 %v5383_v51  ;;  %11022 = vmatprep.subr.mxu0 %v11014_v12 }
 0xbe2   :  { %11023 = vmatpush3.msra.mxu0 %v11014_v12  ;;  %v13475_v3 = vpop.f32.mrf.mxu1  ;;  %10984 = vmatprep.mubr.f32.mxu0 %v5384_v49 }
 0xbe3   :  { %11024 = vmatprep.subr.mxu0 %v5670_v1 }
 0xbe4   :  { %11025 = vmatpush3.msra.mxu0 %v5670_v1  ;;  %v13477_v39 = vpop.f32.mrf.mxu1 }
 0xbe5   :  { %10985 = vmatmul.mubr.f32.gmra.mxu0 %v5385_v61  ;;  %11026 = vmatprep.subr.mxu0 %v11011_v48 }
 0xbe6   :  { %11027 = vmatpush3.msra.mxu0 %v11011_v48  ;;  %v13479_v30 = vpop.f32.mrf.mxu1  ;;  %10987 = vmatprep.mubr.f32.mxu0 %v5386_v53 }
 0xbe7   :  { %11028 = vmatprep.subr.mxu0 %v5660_v14 }
 0xbe8   :  { %11029 = vmatpush3.msra.mxu0 %v5660_v14  ;;  %v13481_v46 = vpop.f32.mrf.mxu1  ;;  %v5526_v14 = vpop.permute.xlu1 %5525 }
 0xbe9   :  { %10988 = vmatmul.mubr.f32.gmra.mxu0 %v5387_v21  ;;  %11030 = vmatprep.subr.mxu0 %v11008_v2 }
 0xbea   :  { %11031 = vmatpush3.msra.mxu0 %v11008_v2  ;;  %v13483_v47 = vpop.f32.mrf.mxu1  ;;  %11050 = vmatprep.mubr.f32.mxu0 %v5690_v52 }
 0xbeb   :  { %11032 = vmatprep.subr.mxu0 %v5650_v58 }
 0xbec   :  { %11033 = vmatpush3.msra.mxu0 %v5650_v58  ;;  %v11077_v27 = vpop.f32.mrf.mxu1  ;;  %v5531_v58 = vpop.permute.xlu0 %5530 }
 0xbed   :  { %11034 = vmatprep.subr.mxu0 %v13469_v28  ;;  %v5516_v37 = vpop.permute.xlu1 %5515 }
 0xbee   :  { %11035 = vmatpush3.msra.mxu0 %v13469_v28  ;;  %v5910_v25 = vpop.f32.mrf.mxu1 }
 0xbef   :  { %11036 = vmatprep.subr.mxu0 %v13471_v5 }
 0xbf0   :  { %11037 = vmatpush3.msra.mxu0 %v13471_v5  ;;  %v11080_v22 = vpop.f32.mrf.mxu1  ;;  %v5521_v29 = vpop.permute.xlu0 %5520 }
 0xbf1   :  { %11038 = vmatprep.subr.mxu0 %v13465_v26 }
 0xbf2   :  { %11039 = vmatpush3.msra.mxu0 %v13465_v26  ;;  %v5920_v59 = vpop.f32.mrf.mxu1 }
 0xbf3   :  { %11040 = vmatprep.subr.mxu0 %v13467_v32 }
 0xbf4   :  { %11041 = vmatpush3.msra.mxu0 %v13467_v32  ;;  %v11083_v42 = vpop.f32.mrf.mxu1  ;;  %v5511_v53 = vpop.permute.xlu0 %5510 }
 0xbf5   :  { %11042 = vmatprep.subr.mxu0 %v13461_v62 }
 0xbf6   :  { %11043 = vmatpush3.msra.mxu0 %v13461_v62  ;;  %v5930_v60 = vpop.f32.mrf.mxu1 }
 0xbf7   :  { %11044 = vmatprep.subr.mxu0 %v13463_v7 }
 0xbf8   :  { %11045 = vmatpush3.msra.mxu0 %v13463_v7  ;;  %v11086_v55 = vpop.f32.mrf.mxu1 }
 0xbf9   :  { %11046 = vmatprep.subr.mxu0 %v13457_v36 }
 0xbfa   :  { %11047 = vmatpush3.msra.mxu0 %v13457_v36  ;;  %v5940_v63 = vpop.f32.mrf.mxu1 }
 0xbfb   :  { %11048 = vmatprep.subr.mxu0 %v13459_v4 }
 0xbfc   :  { %11049 = vmatpush3.msra.mxu0 %v13459_v4  ;;  %v11089_v11 = vpop.f32.mrf.mxu1 }
 0xbfd   :  { %11051 = vmatmul.mubr.f32.vlgmr.msra.gmra.mxu0 %v5691_v9  ;;  %11090 = vmatprep.subr.mxu0 %v11089_v11 }
 0xbfe   :  { %v5950_v43 = vpop.f32.mrf.mxu1  ;;  %11091 = vmatpush3.msra.mxu0 %v11089_v11  ;;  %11053 = vmatprep.mubr.f32.mxu0 %v5692_v57  ;;  %v5501_v11 = vpop.permute.xlu0 %5500 }
 0xbff   :  { %11092 = vmatprep.subr.mxu0 %v5950_v43 }
 0xc00   :  { %11093 = vmatpush3.msra.mxu0 %v5950_v43 }
 0xc01   :  { %11054 = vmatmul.mubr.f32.gmra.mxu0 %v5693_v15  ;;  %11094 = vmatprep.subr.mxu0 %v11086_v55 }
 0xc02   :  { %11095 = vmatpush3.msra.mxu0 %v11086_v55  ;;  %11056 = vmatprep.mubr.f32.mxu0 %v5694_v50 }
 0xc03   :  { %11096 = vmatprep.subr.mxu0 %v5940_v63 }
 0xc04   :  { %11097 = vmatpush3.msra.mxu0 %v5940_v63 }
 0xc05   :  { %11057 = vmatmul.mubr.f32.gmra.mxu0 %v5695_v40  ;;  %11098 = vmatprep.subr.mxu0 %v11083_v42 }
 0xc06   :  { %11099 = vmatpush3.msra.mxu0 %v11083_v42  ;;  %11059 = vmatprep.mubr.f32.mxu0 %v5696_v6 }
 0xc07   :  { %11100 = vmatprep.subr.mxu0 %v5930_v60 }
 0xc08   :  { %11101 = vmatpush3.msra.mxu0 %v5930_v60 }
 0xc09   :  { %11060 = vmatmul.mubr.f32.gmra.mxu0 %v5697_v18  ;;  %11102 = vmatprep.subr.mxu0 %v11080_v22 }
 0xc0a   :  { %11103 = vmatpush3.msra.mxu0 %v11080_v22  ;;  %11122 = vmatprep.mubr.f32.mxu0 %v5960_v45 }
 0xc0b   :  { %11104 = vmatprep.subr.mxu0 %v5920_v59 }
 0xc0c   :  { %11105 = vmatpush3.msra.mxu0 %v5920_v59 }
 0xc0d   :  { %11106 = vmatprep.subr.mxu0 %v11077_v27 }
 0xc0e   :  { %11107 = vmatpush3.msra.mxu0 %v11077_v27 }
 0xc0f   :  { %11108 = vmatprep.subr.mxu0 %v5910_v25 }
 0xc10   :  { %11109 = vmatpush3.msra.mxu0 %v5910_v25 }
 0xc11   :  { %11110 = vmatprep.subr.mxu0 %v13481_v46 }
 0xc12   :  { %11111 = vmatpush3.msra.mxu0 %v13481_v46 }
 0xc13   :  { %11112 = vmatprep.subr.mxu0 %v13483_v47 }
 0xc14   :  { %11113 = vmatpush3.msra.mxu0 %v13483_v47  ;;  %v5506_v47 = vpop.permute.xlu1 %5505 }
 0xc15   :  { %11114 = vmatprep.subr.mxu0 %v13477_v39 }
 0xc16   :  { %11115 = vmatpush3.msra.mxu0 %v13477_v39 }
 0xc17   :  { %11116 = vmatprep.subr.mxu0 %v13479_v30 }
 0xc18   :  { %11117 = vmatpush3.msra.mxu0 %v13479_v30  ;;  %v5496_v6 = vpop.permute.xlu1 %5495 }
 0xc19   :  { %11118 = vmatprep.subr.mxu0 %v13473_v31 }
 0xc1a   :  { %11119 = vmatpush3.msra.mxu0 %v13473_v31 }
 0xc1b   :  { %11120 = vmatprep.subr.mxu0 %v13475_v3 }
 0xc1c   :  { %11121 = vmatpush3.msra.mxu0 %v13475_v3 }
 0xc1d   :  { %11123 = vmatmul.mubr.f32.vlgmr.msra.gmra.mxu0 %v5961_v41 }
 0xc1e   :  { %11125 = vmatprep.mubr.f32.mxu0 %v5962_v10 }
 0xc21   :  { %11126 = vmatmul.mubr.f32.gmra.mxu0 %v5963_v16 }
 0xc22   :  { %11128 = vmatprep.mubr.f32.mxu0 %v5964_v44 }
 0xc25   :  { %11129 = vmatmul.mubr.f32.gmra.mxu0 %v5965_v33 }
 0xc26   :  { %11131 = vmatprep.mubr.f32.mxu0 %v5966_v34 }
 0xc29   :  { %11132 = vmatmul.mubr.f32.gmra.mxu0 %v5967_v24 }
 0xc2a   :  { %11172 = vmatprep.mubr.msk.f32.mxu0 %vm428_vm0, %v9045_v13 }
 0xc9d   :  { %v10980_v23 = vpop.f32.mrf.mxu0 }
 0xc9e   :  { %v5534_v43 = vadd.f32 %v10980_v23, %v5501_v11  ;;  %v6090_v23 = vld [vmem:[%s13896_s15 + $0x8] sm:$0xff] }
 0xc9f   :  { %v5454_v38 = vpop.f32.mrf.mxu0  ;;  %v6600_v11 = vld [vmem:[#allocation25 + $0x18] sm:$0xff] }
 0xca0   :  { %v5533_v18 = vadd.f32 %v5496_v6, %v5454_v38  ;;  %v9046_v38 = vld [vmem:[%s13896_s15 + $0x28] sm:$0xff]  ;;  %v6875_v6 = vld [vmem:[#allocation25 + $0x50] sm:$0xff] }
 0xca1   :  { %v10983_v19 = vpop.f32.mrf.mxu0 }
 0xca2   :  { %v5536_v27 = vadd.f32 %v10983_v19, %v5511_v53  ;;  %v6091_v19 = vld [vmem:[%s13896_s15 + $0x10] sm:$0xff] }
 0xca3   :  { %v5464_v54 = vpop.f32.mrf.mxu0 }
 0xca4   :  { %v5535_v55 = vadd.f32 %v5506_v47, %v5464_v54  ;;  %v9047_v54 = vld [vmem:[%s13896_s15 + $0x30] sm:$0xff] }
 0xca5   :  { %v10986_v56 = vpop.f32.mrf.mxu0 }
 0xca6   :  { %v5538_v31 = vadd.f32 %v10986_v56, %v5521_v29  ;;  %v6092_v56 = vld [vmem:[%s13896_s15 + $0x18] sm:$0xff]  ;;  %v6783_v29 = vld [vmem:[#allocation27 + $0x4] sm:$0xf] }
 0xca7   :  { %v5474_v0 = vpop.f32.mrf.mxu0 }
 0xca8   :  { %v5537_v30 = vadd.f32 %v5516_v37, %v5474_v0  ;;  %v9048_v0 = vld [vmem:[%s13896_s15 + $0x38] sm:$0xff] }
 0xca9   :  { %v10989_v20 = vpop.f32.mrf.mxu0 }
 0xcaa   :  { %v5540_v51 = vadd.f32 %v10989_v20, %v5531_v58  ;;  %v6296_v20 = vld [vmem:[#allocation24] sm:$0xff] }
 0xcab   :  { %v5484_v36 = vpop.f32.mrf.mxu0 }
 0xcac   :  { %v5539_v3 = vadd.f32 %v5526_v14, %v5484_v36  ;;  %v6396_v36 = vld [vmem:[#allocation24 + $0x8] sm:$0xff] }
 0xcbd   :  { %v11052_v4 = vpop.f32.mrf.mxu0 }
 0xcbe   :  { %v5804_v45 = vadd.f32 %v11052_v4, %v5534_v43  ;;  %v6601_v43 = vld [vmem:[#allocation25 + $0x20] sm:$0xff] }
 0xcbf   :  { %v5764_v62 = vpop.f32.mrf.mxu0 }
 0xcc0   :  { %v5803_v16 = vadd.f32 %v5764_v62, %v5533_v18  ;;  %v6604_v18 = vld [vmem:[#allocation25 + $0x38] sm:$0xff] }
 0xcc1   :  { %v11055_v7 = vpop.f32.mrf.mxu0 }
 0xcc2   :  { %v5806_v63 = vadd.f32 %v11055_v7, %v5536_v27 }
 0xcc3   :  { %v5774_v26 = vpop.f32.mrf.mxu0 }
 0xcc4   :  { %v5805_v15 = vadd.f32 %v5774_v26, %v5535_v55  ;;  %v6599_v55 = vld [vmem:[#allocation25 + $0x10] sm:$0xff] }
 0xcc5   :  { %v11058_v32 = vpop.f32.mrf.mxu0 }
 0xcc6   :  { %v5808_v21 = vadd.f32 %v11058_v32, %v5538_v31 }
 0xcc7   :  { %v5784_v28 = vpop.f32.mrf.mxu0 }
 0xcc8   :  { %v5807_v22 = vadd.f32 %v5784_v28, %v5537_v30 }
 0xcc9   :  { %v11061_v5 = vpop.f32.mrf.mxu0 }
 0xcca   :  { %v5810_v61 = vadd.f32 %v11061_v5, %v5540_v51 }
 0xccb   :  { %v5794_v2 = vpop.f32.mrf.mxu0 }
 0xccc   :  { %v5809_v52 = vadd.f32 %v5794_v2, %v5539_v3 }
 0xcdd   :  { %v11124_v48 = vpop.f32.mrf.mxu0 }
 0xcde   :  { %v6074_v44 = vadd.f32 %v11124_v48, %v5804_v45  ;;  %v6876_v45 = vld [vmem:[#allocation25 + $0x58] sm:$0xff] }
 0xcdf   :  { %v6034_v12 = vpop.f32.mrf.mxu0 }
 0xce0   :  { %v6073_v34 = vadd.f32 %v6034_v12, %v5803_v16  ;;  %v6082_v8 = vmax.f32 %v6074_v44, 0.0  ;;  %v6879_v16 = vld [vmem:[#allocation25 + $0x70] sm:$0xff]  ;;  %v6880_v44 = vld [vmem:[#allocation25 + $0x78] sm:$0xff] }
 0xce1   :  { %v11127_v1 = vpop.f32.mrf.mxu0 }
 0xce2   :  { %v6076_v50 = vadd.f32 %v11127_v1, %v5806_v63  ;;  %v6081_v13 = vmax.f32 %v6073_v34, 0.0  ;;  %v6494_v1 = vld [vmem:[#allocation27] sm:$0xf] }
 0xce3   :  { %v6044_v17 = vpop.f32.mrf.mxu0 }
 0xce4   :  { %v6075_v41 = vadd.f32 %v6044_v17, %v5805_v15  ;;  %v6084_v33 = vmax.f32 %v6076_v50, 0.0  ;;  %v6602_v15 = vld [vmem:[#allocation25 + $0x28] sm:$0xff] }
 0xce5   :  { %v11130_v35 = vpop.f32.mrf.mxu0  ;;  %v6874_v50 = vld [vmem:[#allocation25 + $0x48] sm:$0xff] }
 0xce6   :  { %v6078_v59 = vadd.f32 %v11130_v35, %v5808_v21  ;;  %v6083_v24 = vmax.f32 %v6075_v41, 0.0  ;;  %v6877_v41 = vld [vmem:[#allocation25 + $0x60] sm:$0xff] }
 0xce7   :  { %v6054_v49 = vpop.f32.mrf.mxu0 }
 0xce8   :  { %v6077_v9 = vadd.f32 %v6054_v49, %v5807_v22  ;;  %v6086_v40 = vmax.f32 %v6078_v59, 0.0 }
 0xce9   :  { %v11133_v39 = vpop.f32.mrf.mxu0 }
 0xcea   :  { %v6080_v46 = vadd.f32 %v11133_v39, %v5810_v61  ;;  %v6085_v10 = vmax.f32 %v6077_v9, 0.0  ;;  %v7019_v9 = vld [vmem:[#allocation27 + $0x8] sm:$0xf] }
 0xceb   :  { %v6064_v25 = vpop.f32.mrf.mxu0 }
 0xcec   :  { %v6088_v42 = vmax.f32 %v6080_v46, 0.0  ;;  %v6079_v60 = vadd.f32 %v6064_v25, %v5809_v52  ;;  %v6597_v52 = vld [vmem:[#allocation25] sm:$0xff] }
 0xced   :  { %v6873_v46 = vld [vmem:[#allocation25 + $0x40] sm:$0xff] }
 0xcee   :  { %v6087_v57 = vmax.f32 %v6079_v60, 0.0  ;;  %11134 = vmatprep.subr.mxu1 %v6088_v42  ;;  %11156 = vmatprep.subr.mxu0 %v6088_v42  ;;  %v6598_v60 = vld [vmem:[#allocation25 + $0x8] sm:$0xff] }
 0xcef   :  { %11135 = vmatpush3.msra.mxu1 %v6088_v42  ;;  %11157 = vmatpush3.msra.mxu0 %v6088_v42 }
 0xcf0   :  { %11136 = vmatprep.subr.mxu1 %v6087_v57  ;;  %11158 = vmatprep.subr.mxu0 %v6087_v57 }
 0xcf1   :  { %11137 = vmatpush3.msra.mxu1 %v6087_v57  ;;  %11159 = vmatpush3.msra.mxu0 %v6087_v57 }
 0xcf2   :  { %11138 = vmatprep.subr.mxu1 %v6086_v40  ;;  %11160 = vmatprep.subr.mxu0 %v6086_v40 }
 0xcf3   :  { %11139 = vmatpush3.msra.mxu1 %v6086_v40  ;;  %11161 = vmatpush3.msra.mxu0 %v6086_v40  ;;  %v6603_v40 = vld [vmem:[#allocation25 + $0x30] sm:$0xff] }
 0xcf4   :  { %11140 = vmatprep.subr.mxu1 %v6085_v10  ;;  %11162 = vmatprep.subr.mxu0 %v6085_v10 }
 0xcf5   :  { %11141 = vmatpush3.msra.mxu1 %v6085_v10  ;;  %11163 = vmatpush3.msra.mxu0 %v6085_v10  ;;  %v6878_v10 = vld [vmem:[#allocation25 + $0x68] sm:$0xff] }
 0xcf6   :  { %11142 = vmatprep.subr.mxu1 %v6084_v33  ;;  %11164 = vmatprep.subr.mxu0 %v6084_v33 }
 0xcf7   :  { %11143 = vmatpush3.msra.mxu1 %v6084_v33  ;;  %11165 = vmatpush3.msra.mxu0 %v6084_v33  ;;  %v7109_v33 = vld [vmem:[#allocation25 + $0x80] sm:$0xff] }
 0xcf8   :  { %11144 = vmatprep.subr.mxu1 %v6083_v24  ;;  %11166 = vmatprep.subr.mxu0 %v6083_v24 }
 0xcf9   :  { %11145 = vmatpush3.msra.mxu1 %v6083_v24  ;;  %11167 = vmatpush3.msra.mxu0 %v6083_v24 }
 0xcfa   :  { %11146 = vmatprep.subr.mxu1 %v6082_v8  ;;  %11168 = vmatprep.subr.mxu0 %v6082_v8 }
 0xcfb   :  { %11147 = vmatpush3.msra.mxu1 %v6082_v8  ;;  %11169 = vmatpush3.msra.mxu0 %v6082_v8 }
 0xcfc   :  { %11148 = vmatprep.subr.mxu1 %v6081_v13  ;;  %11170 = vmatprep.subr.mxu0 %v6081_v13 }
 0xcfd   :  { %11149 = vmatpush3.msra.mxu1 %v6081_v13  ;;  %11171 = vmatpush3.msra.mxu0 %v6081_v13 }
 0xcfe   :  { %11151 = vmatmul.mubr.msk.f32.vlgmr.msra.gmra.mxu1 %vm428_vm0, %v6090_v23  ;;  %11173 = vmatmul.mubr.msk.f32.vlgmr.msra.gmra.mxu0 %vm428_vm0, %v9046_v38 }
 0xcff   :  { %11153 = vmatprep.mubr.msk.f32.mxu1 %vm428_vm0, %v6091_v19  ;;  %11175 = vmatprep.mubr.msk.f32.mxu0 %vm428_vm0, %v9047_v54 }
 0xd00   :  { %11178 = vmatprep.subr.mxu1 %v6296_v20  ;;  %11186 = vmatprep.subr.mxu0 %v6396_v36 }
 0xd01   :  { %11179 = vmatpush3.msra.mxu1 %v6296_v20  ;;  %11187 = vmatpush3.msra.mxu0 %v6396_v36 }
 0xd02   :  { %11154 = vmatmul.mubr.msk.f32.gmra.mxu1 %vm428_vm0, %v6092_v56  ;;  %11176 = vmatmul.mubr.msk.f32.gmra.mxu0 %vm428_vm0, %v9048_v0 }
 0xd03   :  { %11194 = vmatprep.subr.msk.mxu1 %vm6508_vm4, %v6494_v1 }
 0xdbe   :  { %v11152_v4 = vpop.f32.mrf.mxu1  ;;  %v11174_v62 = vpop.f32.mrf.mxu0 }
 0xdbf   :  { %v6293_v28 = vmax.f32 %v11152_v4, %v11174_v62  ;;  %v7110_v4 = vld [vmem:[#allocation25 + $0x88] sm:$0xff]  ;;  %v7111_v62 = vld [vmem:[#allocation25 + $0x90] sm:$0xff] }
 0xdc0   :  { %v6171_v7 = vpop.f32.mrf.mxu1  ;;  %v6273_v26 = vpop.f32.mrf.mxu0 }
 0xdc1   :  { %v6292_v32 = vmax.f32 %v6171_v7, %v6273_v26  ;;  %v7112_v7 = vld [vmem:[#allocation25 + $0x98] sm:$0xff]  ;;  %v7113_v26 = vld [vmem:[#allocation25 + $0xa0] sm:$0xff] }
 0xdc2   :  { %v11155_v5 = vpop.f32.mrf.mxu1  ;;  %v11177_v2 = vpop.f32.mrf.mxu0 }
 0xdc3   :  { %11180 = vmatprep.mubr.msk.f32.mxu1 %vm6297_vm3, %v6292_v32  ;;  %11188 = vmatprep.mubr.msk.f32.mxu0 %vm6297_vm3, %v6292_v32  ;;  %v6295_v12 = vmax.f32 %v11155_v5, %v11177_v2  ;;  %v7114_v32 = vld [vmem:[#allocation25 + $0xa8] sm:$0xff]  ;;  %v7116_v5 = vld [vmem:[#allocation25 + $0xb8] sm:$0xff]  ;;  %v7270_v2 = vld [vmem:[%s13901_s20] sm:$0xff] }
 0xdc4   :  { %v6181_v58 = vpop.f32.mrf.mxu1  ;;  %v6283_v48 = vpop.f32.mrf.mxu0  ;;  %11181 = vmatmul.mubr.msk.f32.vlgmr.msra.gmra.mxu1 %vm6297_vm3, %v6293_v28  ;;  %11189 = vmatmul.mubr.msk.f32.vlgmr.msra.gmra.mxu0 %vm6297_vm3, %v6293_v28  ;;  %v7115_v28 = vld [vmem:[#allocation25 + $0xb0] sm:$0xff] }
 0xdc5   :  { %v6294_v14 = vmax.f32 %v6181_v58, %v6283_v48  ;;  %11195 = vmatpush3.msk.msra.mxu1 %vm6508_vm4, %v6494_v1 }
 0xdc6   :  { %11222 = vmatprep.subr.msk.mxu1 %vm6508_vm4, %v6783_v29 }
 0xdc7   :  { %11183 = vmatprep.mubr.msk.f32.mxu1 %vm6297_vm3, %v6294_v14  ;;  %11191 = vmatprep.mubr.msk.f32.mxu0 %vm6297_vm3, %v6294_v14 }
 0xdc8   :  { %11184 = vmatmul.mubr.msk.f32.gmra.mxu1 %vm6297_vm3, %v6295_v12  ;;  %11192 = vmatmul.mubr.msk.f32.gmra.mxu0 %vm6297_vm3, %v6295_v12 }
 0xdc9   :  { %11210 = vmatprep.mubr.msk.f32.mxu0 %vm558_vm1, %v6597_v52 }
 0xe84   :  { %v11182_v17 = vpop.f32.mrf.mxu1  ;;  %v11190_v37 = vpop.f32.mrf.mxu0 }
 0xe85   :  { %v13558_v31 = vmax.f32 %v11182_v17, %v11190_v37  ;;  %v6767_v37 = vpop.permute.xlu1 %6766 }
 0xe86   :  { %v6376_v35 = vpop.f32.mrf.mxu1  ;;  %v6463_v51 = vpop.f32.mrf.mxu0 }
 0xe87   :  { %v13556_v49 = vmax.f32 %v6376_v35, %v6463_v51 }
 0xe88   :  { %v11185_v3 = vpop.f32.mrf.mxu1  ;;  %v11193_v61 = vpop.f32.mrf.mxu0 }
 0xe89   :  { %11196 = vmatprep.mubr.msk.f32.mxu1 %vm6495_vm5, %v13556_v49  ;;  %v13567_v21 = vmax.f32 %v11185_v3, %v11193_v61 }
 0xe8a   :  { %v6386_v53 = vpop.f32.mrf.mxu1  ;;  %v6473_v39 = vpop.f32.mrf.mxu0  ;;  %11197 = vmatmul.mubr.msk.f32.vlgmr.msra.gmra.mxu1 %vm6495_vm5, %v13558_v31 }
 0xe8b   :  { %v13564_v30 = vmax.f32 %v6386_v53, %v6473_v39  ;;  %11223 = vmatpush3.msk.msra.mxu1 %vm6508_vm4, %v6783_v29  ;;  %v6772_v29 = vpop.permute.xlu0 %6771  ;;  %v6757_v53 = vpop.permute.xlu1 %6756 }
 0xe8d   :  { %11199 = vmatprep.mubr.msk.f32.mxu1 %vm6495_vm5, %v13564_v30 }
 0xe8e   :  { %11200 = vmatmul.mubr.msk.f32.gmra.mxu1 %vm6495_vm5, %v13567_v21 }
 0xe8f   :  { %11224 = vmatprep.mubr.msk.f32.mxu1 %vm6495_vm5, %v13556_v49 }
 0xe92   :  { %11225 = vmatmul.mubr.msk.f32.vlgmr.msra.gmra.mxu1 %vm6495_vm5, %v13558_v31 }
 0xe93   :  { %11227 = vmatprep.mubr.msk.f32.mxu1 %vm6495_vm5, %v13564_v30 }
 0xe96   :  { %11228 = vmatmul.mubr.msk.f32.gmra.mxu1 %vm6495_vm5, %v13567_v21 }
 0xe97   :  { %11238 = vmatprep.mubr.msk.f32.mxu1 %vm558_vm1, %v6873_v46 }
 0xf4a   :  { %v11198_v47 = vpop.f32.mrf.mxu1 }
 0xf4c   :  { %v6578_v27 = vpop.f32.mrf.mxu1 }
 0xf4e   :  { %v11201_v25 = vpop.f32.mrf.mxu1 }
 0xf4f   :  { %11202 = vmatprep.subr.mxu0 %v11201_v25 }
 0xf50   :  { %v6588_v22 = vpop.f32.mrf.mxu1  ;;  %11203 = vmatpush3.msra.mxu0 %v11201_v25 }
 0xf51   :  { %11204 = vmatprep.subr.mxu0 %v6588_v22 }
 0xf52   :  { %11205 = vmatpush3.msra.mxu0 %v6588_v22  ;;  %v11226_v59 = vpop.f32.mrf.mxu1 }
 0xf53   :  { %11206 = vmatprep.subr.mxu0 %v11198_v47 }
 0xf54   :  { %11207 = vmatpush3.msra.mxu0 %v11198_v47  ;;  %v6853_v42 = vpop.f32.mrf.mxu1 }
 0xf55   :  { %11208 = vmatprep.subr.mxu0 %v6578_v27 }
 0xf56   :  { %11209 = vmatpush3.msra.mxu0 %v6578_v27  ;;  %v11229_v63 = vpop.f32.mrf.mxu1 }
 0xf57   :  { %11211 = vmatmul.mubr.msk.f32.vlgmr.msra.gmra.mxu0 %vm558_vm1, %v6598_v60  ;;  %11230 = vmatprep.subr.mxu1 %v11229_v63 }
 0xf58   :  { %v6863_v57 = vpop.f32.mrf.mxu1  ;;  %11231 = vmatpush3.msra.mxu1 %v11229_v63  ;;  %11213 = vmatprep.mubr.msk.f32.mxu0 %vm558_vm1, %v6599_v55  ;;  %v6747_v63 = vpop.permute.xlu1 %6746 }
 0xf59   :  { %11232 = vmatprep.subr.mxu1 %v6863_v57  ;;  %11250 = vmatprep.subr.msk.mxu0 %vm6508_vm4, %v7019_v9 }
 0xf5a   :  { %11233 = vmatpush3.msra.mxu1 %v6863_v57  ;;  %11251 = vmatpush3.msk.msra.mxu0 %vm6508_vm4, %v7019_v9 }
 0xf5b   :  { %11214 = vmatmul.mubr.msk.f32.gmra.mxu0 %vm558_vm1, %v6600_v11  ;;  %11234 = vmatprep.subr.mxu1 %v11226_v59 }
 0xf5c   :  { %11235 = vmatpush3.msra.mxu1 %v11226_v59  ;;  %11216 = vmatprep.mubr.msk.f32.mxu0 %vm558_vm1, %v6601_v43 }
 0xf5d   :  { %11236 = vmatprep.subr.mxu1 %v6853_v42 }
 0xf5e   :  { %11237 = vmatpush3.msra.mxu1 %v6853_v42 }
 0xf5f   :  { %11217 = vmatmul.mubr.msk.f32.gmra.mxu0 %vm558_vm1, %v6602_v15  ;;  %11239 = vmatmul.mubr.msk.f32.vlgmr.msra.gmra.mxu1 %vm558_vm1, %v6874_v50 }
 0xf60   :  { %11219 = vmatprep.mubr.msk.f32.mxu0 %vm558_vm1, %v6603_v40  ;;  %11241 = vmatprep.mubr.msk.f32.mxu1 %vm558_vm1, %v6875_v6 }
 0xf63   :  { %11220 = vmatmul.mubr.msk.f32.gmra.mxu0 %vm558_vm1, %v6604_v18  ;;  %11242 = vmatmul.mubr.msk.f32.gmra.mxu1 %vm558_vm1, %v6876_v45 }
 0xf64   :  { %11252 = vmatprep.mubr.msk.f32.mxu0 %vm6495_vm5, %v13556_v49  ;;  %11244 = vmatprep.mubr.msk.f32.mxu1 %vm558_vm1, %v6877_v41 }
 0xf67   :  { %11245 = vmatmul.mubr.msk.f32.gmra.mxu1 %vm558_vm1, %v6878_v10  ;;  %11253 = vmatmul.mubr.msk.f32.vlgmr.msra.gmra.mxu0 %vm6495_vm5, %v13558_v31  ;;  %v6762_v31 = vpop.permute.xlu0 %6761 }
 0xf68   :  { %11255 = vmatprep.mubr.msk.f32.mxu0 %vm6495_vm5, %v13564_v30  ;;  %11247 = vmatprep.mubr.msk.f32.mxu1 %vm558_vm1, %v6879_v16 }
 0xf6b   :  { %11248 = vmatmul.mubr.msk.f32.gmra.mxu1 %vm558_vm1, %v6880_v44  ;;  %11256 = vmatmul.mubr.msk.f32.gmra.mxu0 %vm6495_vm5, %v13567_v21  ;;  %v6752_v25 = vpop.permute.xlu0 %6751 }
 0xf6c   :  { %11266 = vmatprep.mubr.msk.f32.mxu0 %vm558_vm1, %v7109_v33  ;;  %11294 = vmatprep.mubr.msk.f32.mxu1 %vm428_vm0, %v7270_v2  ;;  %v9117_v2 = vld [vmem:[%s13901_s20 + $0x40] sm:$0xff] }
 0xf6f   :  { %v6742_v41 = vpop.permute.xlu0 %6741 }
0x1017   :  { %v13608_v34 = vpop.f32.mrf.mxu0 }
0x1018   :  { %v6775_v10 = vadd.f32 %v13608_v34, %v6742_v41 }
0x1019   :  { %v13610_v24 = vpop.f32.mrf.mxu0 }
0x101b   :  { %v13612_v8 = vpop.f32.mrf.mxu0 }
0x101c   :  { %v6777_v9 = vadd.f32 %v13612_v8, %v6752_v25  ;;  %v6737_v8 = vpop.permute.xlu1 %6736 }
0x101d   :  { %v13614_v13 = vpop.f32.mrf.mxu0 }
0x101e   :  { %v6776_v40 = vadd.f32 %v6747_v63, %v13614_v13  ;;  %v6774_v13 = vadd.f32 %v6737_v8, %v13610_v24 }
0x101f   :  { %v11218_v23 = vpop.f32.mrf.mxu0  ;;  %v11240_v58 = vpop.f32.mrf.mxu1 }
0x1020   :  { %v6779_v46 = vadd.f32 %v11218_v23, %v6762_v31  ;;  %v7011_v23 = vadd.f32 %v11240_v58, %v6775_v10  ;;  %v9118_v58 = vld [vmem:[%s13901_s20 + $0x48] sm:$0xff]  ;;  %v9146_v31 = vld [vmem:[%s13901_s20 + $0xa0] sm:$0xff] }
0x1021   :  { %v6715_v38 = vpop.f32.mrf.mxu0  ;;  %v6971_v48 = vpop.f32.mrf.mxu1 }
0x1022   :  { %v6778_v59 = vadd.f32 %v6757_v53, %v6715_v38  ;;  %v7010_v34 = vadd.f32 %v6971_v48, %v6774_v13  ;;  %v9119_v48 = vld [vmem:[%s13901_s20 + $0x50] sm:$0xff]  ;;  %v9149_v53 = vld [vmem:[%s13901_s20 + $0xb8] sm:$0xff] }
0x1023   :  { %v11221_v19 = vpop.f32.mrf.mxu0  ;;  %v11243_v14 = vpop.f32.mrf.mxu1 }
0x1024   :  { %v6781_v30 = vadd.f32 %v11221_v19, %v6772_v29  ;;  %v7013_v6 = vadd.f32 %v11243_v14, %v6777_v9  ;;  %v9120_v14 = vld [vmem:[%s13901_s20 + $0x58] sm:$0xff]  ;;  %v9123_v29 = vld [vmem:[%s13901_s20 + $0x70] sm:$0xff] }
0x1025   :  { %v6725_v54 = vpop.f32.mrf.mxu0  ;;  %v6981_v12 = vpop.f32.mrf.mxu1 }
0x1026   :  { %v6780_v47 = vadd.f32 %v6767_v37, %v6725_v54  ;;  %v7012_v16 = vadd.f32 %v6981_v12, %v6776_v40  ;;  %v9121_v12 = vld [vmem:[%s13901_s20 + $0x60] sm:$0xff] }
0x1027   :  { %v11254_v56 = vpop.f32.mrf.mxu0  ;;  %v11246_v1 = vpop.f32.mrf.mxu1  ;;  %v9142_v37 = vld [vmem:[%s13901_s20 + $0x80] sm:$0xff] }
0x1028   :  { %v7015_v42 = vadd.f32 %v11246_v1, %v6779_v46  ;;  %v9122_v1 = vld [vmem:[%s13901_s20 + $0x68] sm:$0xff]  ;;  %v8007_v46 = vld [vmem:[#allocation30 + $0x8] sm:$0xf] }
0x1029   :  { %v7089_v0 = vpop.f32.mrf.mxu0  ;;  %v6991_v35 = vpop.f32.mrf.mxu1 }
0x102a   :  { %v7014_v11 = vadd.f32 %v6991_v35, %v6778_v59  ;;  %v9143_v35 = vld [vmem:[%s13901_s20 + $0x88] sm:$0xff] }
0x102b   :  { %v11257_v20 = vpop.f32.mrf.mxu0  ;;  %v11249_v3 = vpop.f32.mrf.mxu1 }
0x102c   :  { %11258 = vmatprep.subr.mxu0 %v11257_v20  ;;  %v7017_v27 = vadd.f32 %v11249_v3, %v6781_v30  ;;  %v9147_v3 = vld [vmem:[%s13901_s20 + $0xa8] sm:$0xff]  ;;  %v7727_v30 = vld [vmem:[#allocation30 + $0x4] sm:$0xf] }
0x102d   :  { %v7099_v36 = vpop.f32.mrf.mxu0  ;;  %11259 = vmatpush3.msra.mxu0 %v11257_v20  ;;  %v7001_v21 = vpop.f32.mrf.mxu1 }
0x102e   :  { %11260 = vmatprep.subr.mxu0 %v7099_v36  ;;  %v7016_v60 = vadd.f32 %v7001_v21, %v6780_v47 }
0x102f   :  { %11261 = vmatpush3.msra.mxu0 %v7099_v36 }
0x1030   :  { %11262 = vmatprep.subr.mxu0 %v11254_v56 }
0x1031   :  { %11263 = vmatpush3.msra.mxu0 %v11254_v56 }
0x1032   :  { %11264 = vmatprep.subr.mxu0 %v7089_v0 }
0x1033   :  { %11265 = vmatpush3.msra.mxu0 %v7089_v0 }
0x1034   :  { %11267 = vmatmul.mubr.msk.f32.vlgmr.msra.gmra.mxu0 %vm558_vm1, %v7110_v4  ;;  %v7271_v4 = vld [vmem:[%s13901_s20 + $0x8] sm:$0xff] }
0x1035   :  { %11269 = vmatprep.mubr.msk.f32.mxu0 %vm558_vm1, %v7111_v62  ;;  %v7272_v62 = vld [vmem:[%s13901_s20 + $0x10] sm:$0xff] }
0x1038   :  { %11270 = vmatmul.mubr.msk.f32.gmra.mxu0 %vm558_vm1, %v7112_v7  ;;  %v7273_v7 = vld [vmem:[%s13901_s20 + $0x18] sm:$0xff] }
0x1039   :  { %11272 = vmatprep.mubr.msk.f32.mxu0 %vm558_vm1, %v7113_v26  ;;  %v7274_v26 = vld [vmem:[%s13901_s20 + $0x20] sm:$0xff] }
0x103c   :  { %11273 = vmatmul.mubr.msk.f32.gmra.mxu0 %vm558_vm1, %v7114_v32  ;;  %v7275_v32 = vld [vmem:[%s13901_s20 + $0x28] sm:$0xff] }
0x103d   :  { %11275 = vmatprep.mubr.msk.f32.mxu0 %vm558_vm1, %v7115_v28  ;;  %v7276_v28 = vld [vmem:[%s13901_s20 + $0x30] sm:$0xff] }
0x1040   :  { %11276 = vmatmul.mubr.msk.f32.gmra.mxu0 %vm558_vm1, %v7116_v5  ;;  %v7277_v5 = vld [vmem:[%s13901_s20 + $0x38] sm:$0xff] }
0x10f4   :  { %v11268_v17 = vpop.f32.mrf.mxu0 }
0x10f5   :  { %v7247_v54 = vadd.f32 %v11268_v17, %v7011_v23  ;;  %v9124_v17 = vld [vmem:[%s13901_s20 + $0x78] sm:$0xff] }
0x10f6   :  { %v7207_v51 = vpop.f32.mrf.mxu0 }
0x10f7   :  { %v7246_v0 = vadd.f32 %v7207_v51, %v7010_v34  ;;  %v13653_v24 = vmax.f32 %v7247_v54, 0.0  ;;  %v9144_v51 = vld [vmem:[%s13901_s20 + $0x90] sm:$0xff] }
0x10f8   :  { %v11271_v49 = vpop.f32.mrf.mxu0 }
0x10f9   :  { %v7249_v44 = vadd.f32 %v11271_v49, %v7013_v6  ;;  %v13657_v36 = vmax.f32 %v7246_v0, 0.0  ;;  %v9145_v49 = vld [vmem:[%s13901_s20 + $0x98] sm:$0xff] }
0x10fa   :  { %v7217_v61 = vpop.f32.mrf.mxu0 }
0x10fb   :  { %v7248_v38 = vadd.f32 %v7217_v61, %v7012_v16  ;;  %v13645_v56 = vmax.f32 %v7249_v44, 0.0  ;;  %v9148_v61 = vld [vmem:[%s13901_s20 + $0xb0] sm:$0xff]  ;;  %v8156_v44 = vld [vmem:[%s13904_s23] sm:$0xff] }
0x10fc   :  { %v11274_v39 = vpop.f32.mrf.mxu0 }
0x10fd   :  { %v7251_v43 = vadd.f32 %v11274_v39, %v7015_v42  ;;  %v13649_v20 = vmax.f32 %v7248_v38, 0.0  ;;  %v7407_v39 = vld [vmem:[#allocation30] sm:$0xf] }
0x10fe   :  { %v7227_v52 = vpop.f32.mrf.mxu0  ;;  %11306 = vmatprep.subr.msk.mxu0 %vm6508_vm4, %v7407_v39 }
0x10ff   :  { %v7250_v18 = vadd.f32 %v7227_v52, %v7014_v11  ;;  %v13636_v33 = vmax.f32 %v7251_v43, 0.0  ;;  %11307 = vmatpush3.msk.msra.mxu0 %vm6508_vm4, %v7407_v39 }
0x1100   :  { %v11277_v22 = vpop.f32.mrf.mxu0  ;;  %11348 = vmatprep.subr.msk.mxu0 %vm6508_vm4, %v7727_v30 }
0x1101   :  { %v7253_v55 = vadd.f32 %v11277_v22, %v7017_v27  ;;  %v13641_v19 = vmax.f32 %v7250_v18, 0.0 }
0x1102   :  { %v7237_v57 = vpop.f32.mrf.mxu0 }
0x1103   :  { %v13628_v15 = vmax.f32 %v7253_v55, 0.0  ;;  %v7252_v50 = vadd.f32 %v7237_v57, %v7016_v60 }
0x1105   :  { %v13631_v45 = vmax.f32 %v7252_v50, 0.0  ;;  %11278 = vmatprep.subr.mxu1 %v13628_v15 }
0x1106   :  { %11279 = vmatpush3.msra.mxu1 %v13628_v15 }
0x1107   :  { %11280 = vmatprep.subr.mxu1 %v13631_v45 }
0x1108   :  { %11281 = vmatpush3.msra.mxu1 %v13631_v45 }
0x1109   :  { %11282 = vmatprep.subr.mxu1 %v13636_v33 }
0x110a   :  { %11283 = vmatpush3.msra.mxu1 %v13636_v33 }
0x110b   :  { %11284 = vmatprep.subr.mxu1 %v13641_v19 }
0x110c   :  { %11285 = vmatpush3.msra.mxu1 %v13641_v19 }
0x110d   :  { %11286 = vmatprep.subr.mxu1 %v13645_v56 }
0x110e   :  { %11287 = vmatpush3.msra.mxu1 %v13645_v56 }
0x110f   :  { %11288 = vmatprep.subr.mxu1 %v13649_v20 }
0x1110   :  { %11289 = vmatpush3.msra.mxu1 %v13649_v20 }
0x1111   :  { %11290 = vmatprep.subr.mxu1 %v13653_v24 }
0x1112   :  { %11291 = vmatpush3.msra.mxu1 %v13653_v24 }
0x1113   :  { %11292 = vmatprep.subr.mxu1 %v13657_v36 }
0x1114   :  { %11293 = vmatpush3.msra.mxu1 %v13657_v36 }
0x1115   :  { %11295 = vmatmul.mubr.msk.f32.vlgmr.msra.gmra.mxu1 %vm428_vm0, %v7271_v4  ;;  %11320 = vmatprep.subr.mxu1 %v13628_v15 }
0x1116   :  { %11321 = vmatpush3.msra.mxu1 %v13628_v15  ;;  %11297 = vmatprep.mubr.msk.f32.mxu1 %vm428_vm0, %v7272_v62 }
0x1117   :  { %11322 = vmatprep.subr.mxu1 %v13631_v45 }
0x1118   :  { %11323 = vmatpush3.msra.mxu1 %v13631_v45 }
0x1119   :  { %11298 = vmatmul.mubr.msk.f32.gmra.mxu1 %vm428_vm0, %v7273_v7  ;;  %11324 = vmatprep.subr.mxu1 %v13636_v33 }
0x111a   :  { %11325 = vmatpush3.msra.mxu1 %v13636_v33  ;;  %11300 = vmatprep.mubr.msk.f32.mxu1 %vm428_vm0, %v7274_v26 }
0x111b   :  { %11326 = vmatprep.subr.mxu1 %v13641_v19 }
0x111c   :  { %11327 = vmatpush3.msra.mxu1 %v13641_v19 }
0x111d   :  { %11301 = vmatmul.mubr.msk.f32.gmra.mxu1 %vm428_vm0, %v7275_v32  ;;  %11328 = vmatprep.subr.mxu1 %v13645_v56  ;;  %v7578_v32 = vpop.permute.xlu0 %7577 }
0x111e   :  { %11329 = vmatpush3.msra.mxu1 %v13645_v56  ;;  %11303 = vmatprep.mubr.msk.f32.mxu1 %vm428_vm0, %v7276_v28 }
0x111f   :  { %11330 = vmatprep.subr.mxu1 %v13649_v20 }
0x1120   :  { %11331 = vmatpush3.msra.mxu1 %v13649_v20 }
0x1121   :  { %11304 = vmatmul.mubr.msk.f32.gmra.mxu1 %vm428_vm0, %v7277_v5  ;;  %11332 = vmatprep.subr.mxu1 %v13653_v24  ;;  %v7573_v5 = vpop.permute.xlu1 %7572 }
0x1122   :  { %11333 = vmatpush3.msra.mxu1 %v13653_v24  ;;  %11336 = vmatprep.mubr.msk.f32.mxu1 %vm428_vm0, %v9117_v2 }
0x1123   :  { %11334 = vmatprep.subr.mxu1 %v13657_v36 }
0x1124   :  { %11335 = vmatpush3.msra.mxu1 %v13657_v36 }
0x1125   :  { %11337 = vmatmul.mubr.msk.f32.vlgmr.msra.gmra.mxu1 %vm428_vm0, %v9118_v58  ;;  %11362 = vmatprep.subr.mxu1 %v13628_v15 }
0x1126   :  { %11363 = vmatpush3.msra.mxu1 %v13628_v15  ;;  %11339 = vmatprep.mubr.msk.f32.mxu1 %vm428_vm0, %v9119_v48  ;;  %v7568_v48 = vpop.permute.xlu0 %7567 }
0x1127   :  { %11364 = vmatprep.subr.mxu1 %v13631_v45 }
0x1128   :  { %11365 = vmatpush3.msra.mxu1 %v13631_v45 }
0x1129   :  { %11340 = vmatmul.mubr.msk.f32.gmra.mxu1 %vm428_vm0, %v9120_v14  ;;  %11366 = vmatprep.subr.mxu1 %v13636_v33 }
0x112a   :  { %11367 = vmatpush3.msra.mxu1 %v13636_v33  ;;  %11342 = vmatprep.mubr.msk.f32.mxu1 %vm428_vm0, %v9121_v12  ;;  %v9171_v33 = vld [vmem:[%s13904_s23 + $0x20] sm:$0xff]  ;;  %v7563_v12 = vpop.permute.xlu1 %7562 }
0x112b   :  { %11368 = vmatprep.subr.mxu1 %v13641_v19 }
0x112c   :  { %11369 = vmatpush3.msra.mxu1 %v13641_v19 }
0x112d   :  { %11343 = vmatmul.mubr.msk.f32.gmra.mxu1 %vm428_vm0, %v9122_v1  ;;  %11370 = vmatprep.subr.mxu1 %v13645_v56 }
0x112e   :  { %11371 = vmatpush3.msra.mxu1 %v13645_v56  ;;  %11345 = vmatprep.mubr.msk.f32.mxu1 %vm428_vm0, %v9123_v29 }
0x112f   :  { %11372 = vmatprep.subr.mxu1 %v13649_v20 }
0x1130   :  { %11373 = vmatpush3.msra.mxu1 %v13649_v20 }
0x1131   :  { %11346 = vmatmul.mubr.msk.f32.gmra.mxu1 %vm428_vm0, %v9124_v17  ;;  %11374 = vmatprep.subr.mxu1 %v13653_v24 }
0x1132   :  { %11375 = vmatpush3.msra.mxu1 %v13653_v24  ;;  %11378 = vmatprep.mubr.msk.f32.mxu1 %vm428_vm0, %v9142_v37 }
0x1133   :  { %11376 = vmatprep.subr.mxu1 %v13657_v36 }
0x1134   :  { %11377 = vmatpush3.msra.mxu1 %v13657_v36 }
0x1135   :  { %11379 = vmatmul.mubr.msk.f32.vlgmr.msra.gmra.mxu1 %vm428_vm0, %v9143_v35 }
0x1136   :  { %11381 = vmatprep.mubr.msk.f32.mxu1 %vm428_vm0, %v9144_v51 }
0x1139   :  { %11382 = vmatmul.mubr.msk.f32.gmra.mxu1 %vm428_vm0, %v9145_v49  ;;  %v7558_v49 = vpop.permute.xlu0 %7557 }
0x113a   :  { %11384 = vmatprep.mubr.msk.f32.mxu1 %vm428_vm0, %v9146_v31 }
0x113d   :  { %11385 = vmatmul.mubr.msk.f32.gmra.mxu1 %vm428_vm0, %v9147_v3 }
0x113e   :  { %11387 = vmatprep.mubr.msk.f32.mxu1 %vm428_vm0, %v9148_v61 }
0x1141   :  { %11388 = vmatmul.mubr.msk.f32.gmra.mxu1 %vm428_vm0, %v9149_v53 }
0x1142   :  { %11420 = vmatprep.mubr.msk.f32.mxu1 %vm428_vm0, %v8156_v44 }
0x11d5   :  { %v11296_v21 = vpop.f32.mrf.mxu1 }
0x11d7   :  { %v7368_v52 = vpop.f32.mrf.mxu1 }
0x11d8   :  { %11308 = vmatprep.mubr.msk.f32.mxu0 %vm6495_vm5, %v7368_v52 }
0x11d9   :  { %v11299_v47 = vpop.f32.mrf.mxu1  ;;  %11309 = vmatmul.mubr.msk.f32.vlgmr.msra.gmra.mxu0 %vm6495_vm5, %v11296_v21 }
0x11da   :  { %11349 = vmatpush3.msk.msra.mxu0 %vm6508_vm4, %v7727_v30  ;;  %v7553_v30 = vpop.permute.xlu1 %7552 }
0x11db   :  { %v7378_v27 = vpop.f32.mrf.mxu1  ;;  %11390 = vmatprep.subr.msk.mxu0 %vm6508_vm4, %v8007_v46 }
0x11dc   :  { %11311 = vmatprep.mubr.msk.f32.mxu0 %vm6495_vm5, %v7378_v27 }
0x11dd   :  { %v11302_v25 = vpop.f32.mrf.mxu1  ;;  %11312 = vmatmul.mubr.msk.f32.gmra.mxu0 %vm6495_vm5, %v11299_v47 }
0x11df   :  { %v7388_v22 = vpop.f32.mrf.mxu1 }
0x11e0   :  { %11314 = vmatprep.mubr.msk.f32.mxu0 %vm6495_vm5, %v7388_v22 }
0x11e1   :  { %v11305_v59 = vpop.f32.mrf.mxu1  ;;  %11315 = vmatmul.mubr.msk.f32.gmra.mxu0 %vm6495_vm5, %v11302_v25 }
0x11e3   :  { %v7398_v42 = vpop.f32.mrf.mxu1 }
0x11e4   :  { %11317 = vmatprep.mubr.msk.f32.mxu0 %vm6495_vm5, %v7398_v42 }
0x11e5   :  { %11318 = vmatmul.mubr.msk.f32.gmra.mxu0 %vm6495_vm5, %v11305_v59  ;;  %v11338_v60 = vpop.f32.mrf.mxu1 }
0x11e7   :  { %v7687_v55 = vpop.f32.mrf.mxu1 }
0x11e8   :  { %11350 = vmatprep.mubr.msk.f32.mxu0 %vm6495_vm5, %v7687_v55  ;;  %v7548_v55 = vpop.permute.xlu0 %7547 }
0x11e9   :  { %v11341_v63 = vpop.f32.mrf.mxu1  ;;  %11351 = vmatmul.mubr.msk.f32.vlgmr.msra.gmra.mxu0 %vm6495_vm5, %v11338_v60 }
0x11ea   :  { %11391 = vmatpush3.msk.msra.mxu0 %vm6508_vm4, %v8007_v46 }
0x11eb   :  { %v7697_v9 = vpop.f32.mrf.mxu1 }
0x11ec   :  { %11353 = vmatprep.mubr.msk.f32.mxu0 %vm6495_vm5, %v7697_v9 }
0x11ed   :  { %v11344_v57 = vpop.f32.mrf.mxu1  ;;  %11354 = vmatmul.mubr.msk.f32.gmra.mxu0 %vm6495_vm5, %v11341_v63 }
0x11ef   :  { %v7707_v11 = vpop.f32.mrf.mxu1 }
0x11f0   :  { %11356 = vmatprep.mubr.msk.f32.mxu0 %vm6495_vm5, %v7707_v11 }
0x11f1   :  { %v11347_v43 = vpop.f32.mrf.mxu1  ;;  %11357 = vmatmul.mubr.msk.f32.gmra.mxu0 %vm6495_vm5, %v11344_v57 }
0x11f3   :  { %v7717_v15 = vpop.f32.mrf.mxu1 }
0x11f4   :  { %11359 = vmatprep.mubr.msk.f32.mxu0 %vm6495_vm5, %v7717_v15 }
0x11f5   :  { %11360 = vmatmul.mubr.msk.f32.gmra.mxu0 %vm6495_vm5, %v11347_v43  ;;  %v11380_v50 = vpop.f32.mrf.mxu1  ;;  %v7543_v43 = vpop.permute.xlu1 %7542 }
0x11f7   :  { %v7967_v40 = vpop.f32.mrf.mxu1 }
0x11f8   :  { %11392 = vmatprep.mubr.msk.f32.mxu0 %vm6495_vm5, %v7967_v40 }
0x11f9   :  { %v11383_v6 = vpop.f32.mrf.mxu1  ;;  %11393 = vmatmul.mubr.msk.f32.vlgmr.msra.gmra.mxu0 %vm6495_vm5, %v11380_v50 }
0x11fb   :  { %v7977_v18 = vpop.f32.mrf.mxu1 }
0x11fc   :  { %11395 = vmatprep.mubr.msk.f32.mxu0 %vm6495_vm5, %v7977_v18 }
0x11fd   :  { %v11386_v45 = vpop.f32.mrf.mxu1  ;;  %11396 = vmatmul.mubr.msk.f32.gmra.mxu0 %vm6495_vm5, %v11383_v6 }
0x11ff   :  { %v7987_v41 = vpop.f32.mrf.mxu1 }
0x1200   :  { %11398 = vmatprep.mubr.msk.f32.mxu0 %vm6495_vm5, %v7987_v41 }
0x1201   :  { %v11389_v10 = vpop.f32.mrf.mxu1  ;;  %11399 = vmatmul.mubr.msk.f32.gmra.mxu0 %vm6495_vm5, %v11386_v45 }
0x1203   :  { %v7997_v16 = vpop.f32.mrf.mxu1 }
0x1204   :  { %11401 = vmatprep.mubr.msk.f32.mxu0 %vm6495_vm5, %v7997_v16 }
0x1205   :  { %11402 = vmatmul.mubr.msk.f32.gmra.mxu0 %vm6495_vm5, %v11389_v10 }
0x1206   :  { %11442 = vmatprep.mubr.msk.f32.mxu0 %vm428_vm0, %v9171_v33 }
0x1299   :  { %v11310_v8 = vpop.f32.mrf.mxu0 }
0x129a   :  { %v7581_v63 = vadd.f32 %v11310_v8, %v7548_v55  ;;  %v8157_v8 = vld [vmem:[%s13904_s23 + $0x8] sm:$0xff] }
0x129b   :  { %v7501_v13 = vpop.f32.mrf.mxu0 }
0x129c   :  { %v7580_v15 = vadd.f32 %v7543_v43, %v7501_v13  ;;  %v9172_v13 = vld [vmem:[%s13904_s23 + $0x28] sm:$0xff] }
0x129d   :  { %v11313_v23 = vpop.f32.mrf.mxu0 }
0x129e   :  { %v7583_v21 = vadd.f32 %v11313_v23, %v7558_v49  ;;  %v8158_v23 = vld [vmem:[%s13904_s23 + $0x10] sm:$0xff] }
0x129f   :  { %v7511_v38 = vpop.f32.mrf.mxu0 }
0x12a0   :  { %v7582_v22 = vadd.f32 %v7553_v30, %v7511_v38  ;;  %v9173_v38 = vld [vmem:[%s13904_s23 + $0x30] sm:$0xff] }
0x12a1   :  { %v11316_v19 = vpop.f32.mrf.mxu0 }
0x12a2   :  { %v7585_v37 = vadd.f32 %v11316_v19, %v7568_v48  ;;  %v8159_v19 = vld [vmem:[%s13904_s23 + $0x18] sm:$0xff] }
0x12a3   :  { %v7521_v34 = vpop.f32.mrf.mxu0 }
0x12a4   :  { %v7584_v3 = vadd.f32 %v7563_v12, %v7521_v34  ;;  %v9174_v34 = vld [vmem:[%s13904_s23 + $0x38] sm:$0xff] }
0x12a5   :  { %v11319_v54 = vpop.f32.mrf.mxu0 }
0x12a6   :  { %v7587_v29 = vadd.f32 %v11319_v54, %v7578_v32  ;;  %v8363_v54 = vld [vmem:[%s13966_s28] sm:$0xf] }
0x12a7   :  { %v7531_v56 = vpop.f32.mrf.mxu0 }
0x12a8   :  { %v7586_v35 = vadd.f32 %v7573_v5, %v7531_v56  ;;  %v9184_v56 = vld [vmem:[%s13966_s28 + $0x4] sm:$0xf] }
0x12a9   :  { %v11352_v0 = vpop.f32.mrf.mxu0 }
0x12aa   :  { %v7861_v50 = vadd.f32 %v11352_v0, %v7581_v63 }
0x12ab   :  { %v7821_v20 = vpop.f32.mrf.mxu0 }
0x12ac   :  { %v7860_v18 = vadd.f32 %v7821_v20, %v7580_v15 }
0x12ad   :  { %v11355_v24 = vpop.f32.mrf.mxu0 }
0x12ae   :  { %v7863_v59 = vadd.f32 %v11355_v24, %v7583_v21  ;;  %v8565_v21 = vpop.permute.xlu0 %8564 }
0x12af   :  { %v7831_v36 = vpop.f32.mrf.mxu0 }
0x12b0   :  { %v7862_v9 = vadd.f32 %v7831_v36, %v7582_v22 }
0x12b1   :  { %v11358_v4 = vpop.f32.mrf.mxu0 }
0x12b2   :  { %v7865_v61 = vadd.f32 %v11358_v4, %v7585_v37 }
0x12b3   :  { %v7841_v62 = vpop.f32.mrf.mxu0 }
0x12b4   :  { %v7864_v46 = vadd.f32 %v7841_v62, %v7584_v3 }
0x12b5   :  { %v11361_v7 = vpop.f32.mrf.mxu0 }
0x12b6   :  { %v7867_v51 = vadd.f32 %v11361_v7, %v7587_v29 }
0x12b7   :  { %v7851_v26 = vpop.f32.mrf.mxu0 }
0x12b8   :  { %v7866_v53 = vadd.f32 %v7851_v26, %v7586_v35 }
0x12b9   :  { %v11394_v28 = vpop.f32.mrf.mxu0 }
0x12ba   :  { %v8141_v45 = vadd.f32 %v11394_v28, %v7861_v50 }
0x12bb   :  { %v8101_v2 = vpop.f32.mrf.mxu0 }
0x12bc   :  { %v8140_v10 = vadd.f32 %v8101_v2, %v7860_v18  ;;  %v8149_v44 = vmax.f32 %v8141_v45, 0.0 }
0x12bd   :  { %v11397_v58 = vpop.f32.mrf.mxu0 }
0x12be   :  { %v8143_v57 = vadd.f32 %v11397_v58, %v7863_v59  ;;  %v8148_v33 = vmax.f32 %v8140_v10, 0.0  ;;  %v8558_v58 = vld [vmem:[#allocation33] sm:$0xff] }
0x12bf   :  { %v8111_v14 = vpop.f32.mrf.mxu0 }
0x12c0   :  { %v8142_v40 = vadd.f32 %v8111_v14, %v7862_v9  ;;  %v8151_v41 = vmax.f32 %v8143_v57, 0.0 }
0x12c1   :  { %v11400_v1 = vpop.f32.mrf.mxu0 }
0x12c2   :  { %v8145_v47 = vadd.f32 %v11400_v1, %v7865_v61  ;;  %v8150_v16 = vmax.f32 %v8142_v40, 0.0  ;;  %v8559_v61 = vld [vmem:[#allocation33 + $0x8] sm:$0x3] }
0x12c3   :  { %v8121_v17 = vpop.f32.mrf.mxu0 }
0x12c4   :  { %v8144_v42 = vadd.f32 %v8121_v17, %v7864_v46  ;;  %v8153_v11 = vmax.f32 %v8145_v47, 0.0 }
0x12c5   :  { %v11403_v31 = vpop.f32.mrf.mxu0 }
0x12c6   :  { %v8147_v39 = vadd.f32 %v11403_v31, %v7867_v51  ;;  %v8152_v6 = vmax.f32 %v8144_v42, 0.0 }
0x12c7   :  { %v8131_v52 = vpop.f32.mrf.mxu0 }
0x12c8   :  { %v8155_v27 = vmax.f32 %v8147_v39, 0.0  ;;  %v8146_v25 = vadd.f32 %v8131_v52, %v7866_v53  ;;  %v8570_v53 = vpop.permute.xlu1 %8569 }
0x12ca   :  { %v8154_v60 = vmax.f32 %v8146_v25, 0.0  ;;  %11404 = vmatprep.subr.mxu1 %v8155_v27  ;;  %11426 = vmatprep.subr.mxu0 %v8155_v27 }
0x12cb   :  { %11405 = vmatpush3.msra.mxu1 %v8155_v27  ;;  %11427 = vmatpush3.msra.mxu0 %v8155_v27 }
0x12cc   :  { %11406 = vmatprep.subr.mxu1 %v8154_v60  ;;  %11428 = vmatprep.subr.mxu0 %v8154_v60 }
0x12cd   :  { %11407 = vmatpush3.msra.mxu1 %v8154_v60  ;;  %11429 = vmatpush3.msra.mxu0 %v8154_v60 }
0x12ce   :  { %11408 = vmatprep.subr.mxu1 %v8153_v11  ;;  %11430 = vmatprep.subr.mxu0 %v8153_v11 }
0x12cf   :  { %11409 = vmatpush3.msra.mxu1 %v8153_v11  ;;  %11431 = vmatpush3.msra.mxu0 %v8153_v11 }
0x12d0   :  { %11410 = vmatprep.subr.mxu1 %v8152_v6  ;;  %11432 = vmatprep.subr.mxu0 %v8152_v6 }
0x12d1   :  { %11411 = vmatpush3.msra.mxu1 %v8152_v6  ;;  %11433 = vmatpush3.msra.mxu0 %v8152_v6 }
0x12d2   :  { %11412 = vmatprep.subr.mxu1 %v8151_v41  ;;  %11434 = vmatprep.subr.mxu0 %v8151_v41 }
0x12d3   :  { %11413 = vmatpush3.msra.mxu1 %v8151_v41  ;;  %11435 = vmatpush3.msra.mxu0 %v8151_v41 }
0x12d4   :  { %11414 = vmatprep.subr.mxu1 %v8150_v16  ;;  %11436 = vmatprep.subr.mxu0 %v8150_v16 }
0x12d5   :  { %11415 = vmatpush3.msra.mxu1 %v8150_v16  ;;  %11437 = vmatpush3.msra.mxu0 %v8150_v16 }
0x12d6   :  { %11416 = vmatprep.subr.mxu1 %v8149_v44  ;;  %11438 = vmatprep.subr.mxu0 %v8149_v44 }
0x12d7   :  { %11417 = vmatpush3.msra.mxu1 %v8149_v44  ;;  %11439 = vmatpush3.msra.mxu0 %v8149_v44 }
0x12d8   :  { %11418 = vmatprep.subr.mxu1 %v8148_v33  ;;  %11440 = vmatprep.subr.mxu0 %v8148_v33 }
0x12d9   :  { %11419 = vmatpush3.msra.mxu1 %v8148_v33  ;;  %11441 = vmatpush3.msra.mxu0 %v8148_v33 }
0x12da   :  { %11421 = vmatmul.mubr.msk.f32.vlgmr.msra.gmra.mxu1 %vm428_vm0, %v8157_v8  ;;  %11443 = vmatmul.mubr.msk.f32.vlgmr.msra.gmra.mxu0 %vm428_vm0, %v9172_v13 }
0x12db   :  { %11423 = vmatprep.mubr.msk.f32.mxu1 %vm428_vm0, %v8158_v23  ;;  %11445 = vmatprep.mubr.msk.f32.mxu0 %vm428_vm0, %v9173_v38 }
0x12dc   :  { %11448 = vmatprep.subr.msk.mxu1 %vm6508_vm4, %v8363_v54 }
0x12dd   :  { %11449 = vmatpush3.msk.msra.mxu1 %vm6508_vm4, %v8363_v54 }
0x12de   :  { %11424 = vmatmul.mubr.msk.f32.gmra.mxu1 %vm428_vm0, %v8159_v19  ;;  %11446 = vmatmul.mubr.msk.f32.gmra.mxu0 %vm428_vm0, %v9174_v34 }
0x12df   :  { %11456 = vmatprep.subr.msk.mxu1 %vm6508_vm4, %v9184_v56  ;;  %11472 = vmatprep.mubr.msk.f32.mxu0 %vm558_vm1, %v8558_v58 }
0x139a   :  { %v11422_v0 = vpop.f32.mrf.mxu1  ;;  %v11444_v20 = vpop.f32.mrf.mxu0 }
0x139b   :  { %v8360_v62 = vmax.f32 %v11422_v0, %v11444_v20 }
0x139c   :  { %v8238_v24 = vpop.f32.mrf.mxu1  ;;  %v8340_v36 = vpop.f32.mrf.mxu0 }
0x139d   :  { %v8359_v4 = vmax.f32 %v8238_v24, %v8340_v36 }
0x139e   :  { %v11425_v7 = vpop.f32.mrf.mxu1  ;;  %v11447_v26 = vpop.f32.mrf.mxu0 }
0x139f   :  { %11450 = vmatprep.mubr.msk.f32.mxu1 %vm6495_vm5, %v8359_v4  ;;  %v8362_v2 = vmax.f32 %v11425_v7, %v11447_v26 }
0x13a0   :  { %v8248_v32 = vpop.f32.mrf.mxu1  ;;  %v8350_v28 = vpop.f32.mrf.mxu0  ;;  %11451 = vmatmul.mubr.msk.f32.vlgmr.msra.gmra.mxu1 %vm6495_vm5, %v8360_v62 }
0x13a1   :  { %v8361_v5 = vmax.f32 %v8248_v32, %v8350_v28  ;;  %11457 = vmatpush3.msk.msra.mxu1 %vm6508_vm4, %v9184_v56 }
0x13a3   :  { %11453 = vmatprep.mubr.msk.f32.mxu1 %vm6495_vm5, %v8361_v5 }
0x13a4   :  { %11454 = vmatmul.mubr.msk.f32.gmra.mxu1 %vm6495_vm5, %v8362_v2 }
0x13a5   :  { %11458 = vmatprep.mubr.msk.f32.mxu1 %vm6495_vm5, %v8359_v4 }
0x13a8   :  { %11459 = vmatmul.mubr.msk.f32.vlgmr.msra.gmra.mxu1 %vm6495_vm5, %v8360_v62 }
0x13a9   :  { %11461 = vmatprep.mubr.msk.f32.mxu1 %vm6495_vm5, %v8361_v5 }
0x13ac   :  { %11462 = vmatmul.mubr.msk.f32.gmra.mxu1 %vm6495_vm5, %v8362_v2 }
0x1460   :  { %v11452_v48 = vpop.f32.mrf.mxu1 }
0x1462   :  { %v8445_v14 = vpop.f32.mrf.mxu1 }
0x1464   :  { %v11455_v12 = vpop.f32.mrf.mxu1 }
0x1466   :  { %v8455_v1 = vpop.f32.mrf.mxu1 }
0x1468   :  { %v11460_v29 = vpop.f32.mrf.mxu1 }
0x1469   :  { %v8555_v31 = vmax.f32 %v11452_v48, %v11460_v29 }
0x146a   :  { %v8535_v17 = vpop.f32.mrf.mxu1 }
0x146b   :  { %v8554_v3 = vmax.f32 %v8445_v14, %v8535_v17 }
0x146c   :  { %v11463_v37 = vpop.f32.mrf.mxu1 }
0x146d   :  { %v8557_v35 = vmax.f32 %v11455_v12, %v11463_v37 }
0x146e   :  { %v8545_v51 = vpop.f32.mrf.mxu1 }
0x146f   :  { %v8556_v49 = vmax.f32 %v8455_v1, %v8545_v51  ;;  %11464 = vmatprep.subr.mxu0 %v8557_v35 }
0x1470   :  { %11465 = vmatpush3.msra.mxu0 %v8557_v35 }
0x1471   :  { %11466 = vmatprep.subr.mxu0 %v8556_v49 }
0x1472   :  { %11467 = vmatpush3.msra.mxu0 %v8556_v49 }
0x1473   :  { %11468 = vmatprep.subr.mxu0 %v8555_v31 }
0x1474   :  { %11469 = vmatpush3.msra.mxu0 %v8555_v31 }
0x1475   :  { %11470 = vmatprep.subr.mxu0 %v8554_v3 }
0x1476   :  { %11471 = vmatpush3.msra.mxu0 %v8554_v3 }
0x1477   :  { %11473 = vmatmul.mubr.msk.f32.vlgmr.msra.gmra.mxu0 %vm558_vm1, %v8559_v61 }
0x1537   :  { %v11474_v39 = vpop.f32.mrf.mxu0 }
0x1538   :  { %v8650_v30 = vadd.f32 %v11474_v39, %v8570_v53 }
0x1539   :  { %v8644_v52 = vpop.f32.mrf.mxu0 }
0x153a   :  { %v8645_v46 = vadd.f32 %v8644_v52, %v8565_v21  ;;  %v8656_v47 = vsel %vm8655_vm6, %v8650_v30, -inf }
0x153c   :  { %v8654_v27 = vsel %vm8653_vm7, %v8645_v46, -inf }
0x153d   :  { %v8657_v25 = vmax.f32 %v8654_v27, %v8656_v47 }
0x153f   :  { %v8658_v22 = vrot.slane %v8657_v25, 4 }
0x1541   :  { %v8659_v59 = vmax.f32 %v8657_v25, %v8658_v22 }
0x1543   :  { %v8660_v42 = vrot.slane %v8659_v59, 2 }
0x1545   :  { %v8661_v60 = vmax.f32 %v8659_v59, %v8660_v42 }
0x1547   :  { %v8662_v55 = vrot.slane %v8661_v60, 1 }
0x1549   :  { %v8663_v63 = vmax.f32 %v8661_v60, %v8662_v55 }
0x154b   :  { %v8664_v9 = vsub.f32 %v8645_v46, %v8663_v63  ;;  %v8665_v57 = vsub.f32 %v8650_v30, %v8663_v63 }
0x154d   :  { %v8666_v11 = vmul.f32 1.442695, %v8664_v9  ;;  %v8668_v43 = vmul.f32 1.442695, %v8665_v57 }
0x154f   :  { %11506 = vpow2.f32 %v8666_v11 }
0x1550   :  { %11508 = vpow2.f32 %v8668_v43 }
0x155c   :  { %v11507_v15 = vpop.eup %11506 }
0x155d   :  { %v11509_v50 = vpop.eup %11508  ;;  %v8670_v40 = vsel %vm8653_vm7, %v11507_v15, 0.0 }
0x155e   :  { %v8671_v6 = vsel %vm8655_vm6, %v11509_v50, 0.0 }
0x155f   :  { %v8672_v18 = vadd.f32 %v8671_v6, %v8670_v40 }
0x1561   :  { %v8673_v45 = vrot.slane %v8672_v18, 4 }
0x1563   :  { %v8674_v41 = vadd.f32 %v8673_v45, %v8672_v18 }
0x1565   :  { %v8675_v10 = vrot.slane %v8674_v41, 2 }
0x1567   :  { %v8676_v16 = vadd.f32 %v8675_v10, %v8674_v41 }
0x1569   :  { %v8677_v44 = vrot.slane %v8676_v16, 1 }
0x156b   :  { %v8678_v33 = vadd.f32 %v8677_v44, %v8676_v16 }
0x156d   :  { %11510 = vlog2.f32 %v8678_v33 }
0x157a   :  { %v11511_v8 = vpop.eup %11510 }
0x157b   :  { %v8680_v13 = vmul.f32 0.6931472, %v11511_v8 }
0x157d   :  { %v8681_v23 = vsub.f32 %v8664_v9, %v8680_v13  ;;  %v8682_v38 = vsub.f32 %v8665_v57, %v8680_v13 }
0x157f   :  { %8683 = vst.msk [vmem:[%s13967_s7] sm:$0xff] %vm8653_vm7, %v8681_v23 }
0x1580   :  { %8684 = vst.msk [vmem:[%s13967_s7 + $0x8] sm:$0x3] %vm8655_vm6, %v8682_v38 }
0x1581   :  { %8689 = vsyncpa [#allocation3], 1 }
0x1582   :  { %8690 = vsyncpa [#allocation5], 1 }
0x1583   :  { %8691 = vsyncpa [#allocation8], 1 }
0x1584   :  { %8692 = vsyncpa [#allocation11], 1 }
0x1585   :  { %8693 = vsyncpa [#allocation14], 1 }
0x1586   :  { %8694 = vsyncpa [#allocation17], 1 }
0x1587   :  { %8695 = vsyncpa [#allocation20], 1 }
0x1588   :  { %8696 = vsyncpa [#allocation23], 1 }
0x1589   :  { %8697 = vsyncpa [#allocation26], 1 }
0x158a   :  { %8698 = vsyncpa [#allocation29], 1 }
0x158b   :  { %8699 = vsyncpa [#allocation32], 1 }
0x158c   :  { %8700 = vsyncpa [#allocation35], 1 }

</bundles_post_ra>
